<compile_context>
chip_gen: v7x
topology: tpu7x:2x2x1
jax: 0.10.0
libtpu: 0.0.40
codegen_flags: <defaults>
</compile_context>

<pallas_src>
import numpy as np
import jax
import jax.numpy as jnp
from jax import lax
from jax.experimental import pallas as pl
from jax.experimental.pallas import tpu as pltpu

COMPUTE_DTYPE = jnp.bfloat16   # MXU operand dtype; accumulate + elementwise in f32.
B_TILE = 8                     # images per grid step; must be a multiple of 8.


# --------------------------------------------------------------------------
# Fused Pallas kernel: B_TILE images per grid step, fully resident in VMEM.
# Activation slabs are "H-outer": row r = h * B_TILE + b.
# --------------------------------------------------------------------------
def _simple_cnn_kernel(x_ref, a1_ref, b1_ref, a2_ref, b2_ref,
                       wfc1_ref, bfc1_ref, wfc2_ref, bfc2_ref, out_ref):
    f32 = jnp.float32
    cd = COMPUTE_DTYPE
    bt = x_ref.shape[1]                       # images per step (multiple of 8)

    def shift_down(y):        # out[r] = y[r - bt]  (image row h-1), zero at h == 0
        zero = jnp.zeros((bt, y.shape[1]), y.dtype)
        return jnp.concatenate([zero, y[:-bt]], axis=0)

    def shift_up(y):          # out[r] = y[r + bt]  (image row h+1), zero at h == H-1
        zero = jnp.zeros((bt, y.shape[1]), y.dtype)
        return jnp.concatenate([y[bt:], zero], axis=0)

    # ---- conv1 (3x3, pad 1, 1->16) + bias + ReLU ---------------------------------
    # x block: (28, bt, 28) -> (28*bt, 28), layout-preserving reshape (bt % 8 == 0).
    # Each tap kh is one matmul against the banded matrix a1[kh] (28 x 512); the W
    # taps, W zero-pad and the W-parity split of pool1 are folded into its columns
    # (lane = parity*256 + wp*16 + c_out, wp 0..13 used).  The H tap offsets become
    # zero-filled sublane shifts of the matmul outputs (exactly conv's H zero-pad).
    x = x_ref[...].reshape(28 * bt, 28).astype(cd)
    y0 = jnp.dot(x, a1_ref[0], preferred_element_type=f32)
    y1 = jnp.dot(x, a1_ref[1], preferred_element_type=f32)
    y2 = jnp.dot(x, a1_ref[2], preferred_element_type=f32)
    r1 = y1 + shift_down(y0) + shift_up(y2)                    # (28*bt, 512) f32
    r1 = jnp.maximum(r1 + b1_ref[...], 0.0)

    # ---- maxpool 2x2 / 2: W via lane halves, H via aligned sublane halves --------
    r1m = jnp.maximum(r1[:, :256], r1[:, 256:])                # (28*bt, 256) f32
    r1m = r1m.reshape(14, 2 * bt, 256)                         # h-pairs -> sublane halves
    p1 = jnp.maximum(r1m[:, :bt, :], r1m[:, bt:, :]).reshape(14 * bt, 256)

    # ---- conv2 (3x3, pad 1, 16->32) + bias + ReLU ---------------------------------
    # Input lanes = wp_in*16 + c_in (wp_in 14,15 are padding; their a2 rows are 0).
    p1c = p1.astype(cd)
    z0 = jnp.dot(p1c, a2_ref[0], preferred_element_type=f32)
    z1 = jnp.dot(p1c, a2_ref[1], preferred_element_type=f32)
    z2 = jnp.dot(p1c, a2_ref[2], preferred_element_type=f32)
    r2 = z1 + shift_down(z0) + shift_up(z2)                    # (14*bt, 512) f32
    r2 = jnp.maximum(r2 + b2_ref[...], 0.0)

    # ---- maxpool 2x2 / 2 ----------------------------------------------------------
    r2m = jnp.maximum(r2[:, :256], r2[:, 256:])                # (14*bt, 256) f32
    r2m = r2m.reshape(7, 2 * bt, 256)
    p2 = jnp.maximum(r2m[:, :bt, :], r2m[:, bt:, :])           # (7, bt, 256) f32

    # ---- fc1 (1568 -> 128, K zero-padded to 1792) + ReLU --------------------------
    # Torch's view(-1, 32*7*7) flatten order is absorbed into the host-side wfc1
    # layout; concatenating the 7 pooled-row slabs along lanes gives one K=1792
    # matmul with M = bt (instead of 7 M=1 matmuls).
    p2cat = jnp.concatenate([p2[h] for h in range(7)], axis=1).astype(cd)  # (bt, 1792)
    f1 = jnp.dot(p2cat, wfc1_ref[...], preferred_element_type=f32) + bfc1_ref[...]
    f1 = jnp.maximum(f1, 0.0)                                  # (bt, 128) f32

    # ---- fc2 (128 -> 10, zero-padded to 128 lanes => lane-dense batched store) ----
    out = jnp.dot(f1.astype(cd), wfc2_ref[...], preferred_element_type=f32) + bfc2_ref[...]
    out_ref[...] = out.astype(out_ref.dtype)                   # (bt, 128)


# --------------------------------------------------------------------------
# Parameters: deterministic, PyTorch-default-like uniform init (torch layout).
# --------------------------------------------------------------------------
def init_params(key):
    ks = jax.random.split(key, 8)

    def u(k, shape, fan_in):
        bound = 1.0 / jnp.sqrt(float(fan_in))
        return jax.random.uniform(k, shape, jnp.float32, -bound, bound)

    return {
        "conv1_w": u(ks[0], (16, 1, 3, 3), 1 * 9),       # OIHW (torch layout)
        "conv1_b": u(ks[1], (16,), 1 * 9),
        "conv2_w": u(ks[2], (32, 16, 3, 3), 16 * 9),
        "conv2_b": u(ks[3], (32,), 16 * 9),
        "fc1_w":   u(ks[4], (128, 32 * 7 * 7), 32 * 7 * 7),
        "fc1_b":   u(ks[5], (128,), 32 * 7 * 7),
        "fc2_w":   u(ks[6], (10, 128), 128),
        "fc2_b":   u(ks[7], (10,), 128),
    }


# --------------------------------------------------------------------------
# One-time, host-side (outside jit) conversion of torch-layout params into the
# parity-merged banded / re-laid-out matrices the kernel consumes.
# --------------------------------------------------------------------------
def prepare_params(params, compute_dtype=COMPUTE_DTYPE):
    f32 = np.float32
    w1 = np.asarray(params["conv1_w"], f32)    # (16, 1, 3, 3)
    b1 = np.asarray(params["conv1_b"], f32)    # (16,)
    w2 = np.asarray(params["conv2_w"], f32)    # (32, 16, 3, 3)
    b2 = np.asarray(params["conv2_b"], f32)    # (32,)
    wf1 = np.asarray(params["fc1_w"], f32)     # (128, 1568)
    bf1 = np.asarray(params["fc1_b"], f32)     # (128,)
    wf2 = np.asarray(params["fc2_w"], f32)     # (10, 128)
    bf2 = np.asarray(params["fc2_b"], f32)     # (10,)

    # conv1 bands: A1[kh][w_in, p*256 + wp*16 + c] = w1[c, 0, kh, kw]
    # with w_out = 2*wp + p, w_in = w_out + kw - 1 (W zero-pad folded in; wp 14,15 pad).
    A1 = np.zeros((3, 28, 2, 16, 16), f32)
    for kh in range(3):
        for p in range(2):
            for wp in range(14):
                w_out = 2 * wp + p
                for kw in range(3):
                    w_in = w_out + kw - 1
                    if 0 <= w_in < 28:
                        A1[kh, w_in, p, wp, :] = w1[:, 0, kh, kw]
    A1 = A1.reshape(3, 28, 512)

    # conv2 bands: rows = input lanes (wp_in*16 + ci), 256 with wp_in 14,15 zero;
    # cols = p*256 + wp_out*32 + co, with wp_out == 7 (padding) zero.
    A2 = np.zeros((3, 16, 16, 2, 8, 32), f32)
    for kh in range(3):
        for p in range(2):
            for wp in range(7):
                w_out = 2 * wp + p
                for kw in range(3):
                    w_in = w_out + kw - 1
                    if 0 <= w_in < 14:
                        A2[kh, w_in, :, p, wp, :] = w2[:, :, kh, kw].T   # (ci, co)
    A2 = A2.reshape(3, 256, 512)

    # fc1: permute columns from torch's (c, h, w) flatten into the kernel's
    # (h'*256 + wp*32 + co) layout; wp == 7 padding rows stay zero.
    Wfc1 = np.zeros((7, 8, 32, 128), f32)
    Wfc1[:, :7] = wf1.reshape(128, 32, 7, 7).transpose(2, 3, 1, 0)   # (h, w, c, out)
    Wfc1 = Wfc1.reshape(7 * 256, 128)

    # fc2: zero-pad output dim 10 -> 128 for a lane-dense store.
    Wfc2 = np.zeros((128, 128), f32)
    Wfc2[:, :10] = wf2.T
    bfc2 = np.zeros((128,), f32)
    bfc2[:10] = bf2

    as_cd = lambda a: jnp.asarray(a, dtype=compute_dtype)
    return {
        "a1": as_cd(A1),
        "b1row": jnp.asarray(np.tile(b1, 32).reshape(1, 512), jnp.float32),
        "a2": as_cd(A2),
        "b2row": jnp.asarray(np.tile(b2, 16).reshape(1, 512), jnp.float32),
        "wfc1": as_cd(Wfc1),
        "bfc1": jnp.asarray(bf1.reshape(1, 128), jnp.float32),
        "wfc2": as_cd(Wfc2),
        "bfc2": jnp.asarray(bfc2.reshape(1, 128), jnp.float32),
    }


# --------------------------------------------------------------------------
# Forward pass (matches SimpleCNN.forward, eval mode).
# --------------------------------------------------------------------------
def simple_cnn_forward(kp, x_nchw, b_tile=B_TILE):
    # x_nchw: (B, 1, 28, 28) float32 (same convention as the PyTorch module).
    assert b_tile % 8 == 0
    B = x_nchw.shape[0]
    n_tiles = -(-B // b_tile)
    Bp = n_tiles * b_tile

    x = x_nchw.reshape(B, 28, 28).astype(jnp.float32)
    if Bp != B:                                   # pad batch to a B_TILE multiple
        x = jnp.concatenate([x, jnp.zeros((Bp - B, 28, 28), jnp.float32)], axis=0)
    xt = jnp.transpose(x, (1, 0, 2))              # (28, Bp, 28): H-outer layout
    # dropout1 / dropout2 (Dropout2d(0.25)): identity in eval mode.
    # TODO(synk): training-mode per-channel random dropout not implemented.

    def _full(a):
        n = a.ndim
        return pl.BlockSpec(a.shape, lambda i, _n=n: (0,) * _n)

    weights = [kp["a1"], kp["b1row"], kp["a2"], kp["b2row"],
               kp["wfc1"], kp["bfc1"], kp["wfc2"], kp["bfc2"]]

    macs = n_tiles * (3 * (28 * b_tile) * 28 * 512
                      + 3 * (14 * b_tile) * 256 * 512
                      + b_tile * 1792 * 128 + b_tile * 128 * 128)
    weight_bytes = sum(int(np.prod(a.shape)) * a.dtype.itemsize for a in weights)
    cost = pl.CostEstimate(
        flops=2 * macs, transcendentals=0,
        bytes_accessed=int(Bp * 28 * 28 * 4 + weight_bytes + Bp * 128 * 4))

    out = pl.pallas_call(
        _simple_cnn_kernel,
        out_shape=jax.ShapeDtypeStruct((Bp, 128), jnp.float32),
        grid=(n_tiles,),
        in_specs=[pl.BlockSpec((28, b_tile, 28), lambda i: (0, i, 0))]
                 + [_full(a) for a in weights],
        out_specs=pl.BlockSpec((b_tile, 128), lambda i: (i, 0)),
        compiler_params=pltpu.CompilerParams(
            dimension_semantics=("parallel",),
            vmem_limit_bytes=32 * 1024 * 1024),
        cost_estimate=cost,
    )(xt, *weights)

    return out[:B, :10]


# --------------------------------------------------------------------------
# Pure-JAX reference (f32) for a numerical sanity check.
# --------------------------------------------------------------------------
def reference_forward(params, x_nchw):
    dn = ("NCHW", "OIHW", "NCHW")
    y = lax.conv_general_dilated(x_nchw, params["conv1_w"], (1, 1),
                                 ((1, 1), (1, 1)), dimension_numbers=dn)
    y = jax.nn.relu(y + params["conv1_b"][None, :, None, None])
    y = lax.reduce_window(y, -jnp.inf, lax.max, (1, 1, 2, 2), (1, 1, 2, 2), "VALID")
    y = lax.conv_general_dilated(y, params["conv2_w"], (1, 1),
                                 ((1, 1), (1, 1)), dimension_numbers=dn)
    y = jax.nn.relu(y + params["conv2_b"][None, :, None, None])
    y = lax.reduce_window(y, -jnp.inf, lax.max, (1, 1, 2, 2), (1, 1, 2, 2), "VALID")
    y = y.reshape(y.shape[0], -1)                 # torch view(-1, 32*7*7): (C,H,W) order
    y = jax.nn.relu(y @ params["fc1_w"].T + params["fc1_b"])
    return y @ params["fc2_w"].T + params["fc2_b"]


# --------------------------------------------------------------------------
if __name__ == "__main__":
    key = jax.random.PRNGKey(0)
    pkey, xkey = jax.random.split(key)

    params = init_params(pkey)                 # torch-layout params
    kparams = prepare_params(params)           # one-time host-side re-layout (outside jit)
    x = jax.random.normal(xkey, (2, 1, 28, 28), dtype=jnp.float32)

    out = jax.block_until_ready(jax.jit(simple_cnn_forward)(kparams, x))

    assert out.shape == (2, 10), out.shape
    assert bool(jnp.all(jnp.isfinite(out)))

    ref = jax.block_until_ready(jax.jit(reference_forward)(params, x))
    max_err = float(jnp.max(jnp.abs(out - ref)))
    assert max_err < 5e-2, f"mismatch vs reference: {max_err}"

    print("KERNEL_OK")
</pallas_src>

<mosaic_0001>
module attributes {stable_mosaic.version = 11 : i64} {
  func.func @_simple_cnn_kernel(%arg0: i32, %arg1: memref<28x8x28xf32, #tpu.memory_space<vmem>>, %arg2: memref<3x28x512xbf16, #tpu.memory_space<vmem>>, %arg3: memref<1x512xf32, #tpu.memory_space<vmem>>, %arg4: memref<3x256x512xbf16, #tpu.memory_space<vmem>>, %arg5: memref<1x512xf32, #tpu.memory_space<vmem>>, %arg6: memref<1792x128xbf16, #tpu.memory_space<vmem>>, %arg7: memref<1x128xf32, #tpu.memory_space<vmem>>, %arg8: memref<128x128xbf16, #tpu.memory_space<vmem>>, %arg9: memref<1x128xf32, #tpu.memory_space<vmem>>, %arg10: memref<8x128xf32, #tpu.memory_space<vmem>>) attributes {dimension_semantics = [#tpu.dimension_semantics<parallel>], iteration_bounds = array<i64: 1>, scalar_prefetch = 0 : i64, scratch_operands = 0 : i64, tpu.core_type = #tpu.core_type<tc>, window_params = [{transform_indices = @transform_0, window_bounds = array<i64: 28, 8, 28>}, {pipeline_mode = #tpu.pipeline_mode<synchronous>, transform_indices = @transform_1, window_bounds = array<i64: 3, 28, 512>}, {pipeline_mode = #tpu.pipeline_mode<synchronous>, transform_indices = @transform_2, window_bounds = array<i64: 1, 512>}, {pipeline_mode = #tpu.pipeline_mode<synchronous>, transform_indices = @transform_3, window_bounds = array<i64: 3, 256, 512>}, {pipeline_mode = #tpu.pipeline_mode<synchronous>, transform_indices = @transform_4, window_bounds = array<i64: 1, 512>}, {pipeline_mode = #tpu.pipeline_mode<synchronous>, transform_indices = @transform_5, window_bounds = array<i64: 1792, 128>}, {pipeline_mode = #tpu.pipeline_mode<synchronous>, transform_indices = @transform_6, window_bounds = array<i64: 1, 128>}, {pipeline_mode = #tpu.pipeline_mode<synchronous>, transform_indices = @transform_7, window_bounds = array<i64: 128, 128>}, {pipeline_mode = #tpu.pipeline_mode<synchronous>, transform_indices = @transform_8, window_bounds = array<i64: 1, 128>}, {transform_indices = @transform_9, window_bounds = array<i64: 8, 128>}]} {
    %c0 = arith.constant 0 : index
    %c0_0 = arith.constant 0 : index
    %c0_1 = arith.constant 0 : index
    %0 = vector.load %arg1[%c0, %c0_0, %c0_1] : memref<28x8x28xf32, #tpu.memory_space<vmem>>, vector<28x8x28xf32>
    %1 = vector.shape_cast %0 : vector<28x8x28xf32> to vector<224x28xf32>
    %2 = arith.truncf %1 : vector<224x28xf32> to vector<224x28xbf16>
    %c0_2 = arith.constant 0 : index
    %c0_3 = arith.constant 0 : index
    %c0_4 = arith.constant 0 : index
    %3 = vector.load %arg2[%c0_2, %c0_3, %c0_4] : memref<3x28x512xbf16, #tpu.memory_space<vmem>>, vector<1x28x512xbf16>
    %4 = vector.shape_cast %3 : vector<1x28x512xbf16> to vector<28x512xbf16>
    %cst = arith.constant dense<0.000000e+00> : vector<224x512xf32>
    %5 = tpu.matmul %2, %4, %cst {dimension_numbers = #tpu.dot_dimension_numbers<[1], [0], [0], [1], [0, 0, 1, 1], [], []>} : vector<224x28xbf16>, vector<28x512xbf16>, vector<224x512xf32> -> vector<224x512xf32>
    %c1 = arith.constant 1 : index
    %c0_5 = arith.constant 0 : index
    %c0_6 = arith.constant 0 : index
    %6 = vector.load %arg2[%c1, %c0_5, %c0_6] : memref<3x28x512xbf16, #tpu.memory_space<vmem>>, vector<1x28x512xbf16>
    %7 = vector.shape_cast %6 : vector<1x28x512xbf16> to vector<28x512xbf16>
    %cst_7 = arith.constant dense<0.000000e+00> : vector<224x512xf32>
    %8 = tpu.matmul %2, %7, %cst_7 {dimension_numbers = #tpu.dot_dimension_numbers<[1], [0], [0], [1], [0, 0, 1, 1], [], []>} : vector<224x28xbf16>, vector<28x512xbf16>, vector<224x512xf32> -> vector<224x512xf32>
    %c2 = arith.constant 2 : index
    %c0_8 = arith.constant 0 : index
    %c0_9 = arith.constant 0 : index
    %9 = vector.load %arg2[%c2, %c0_8, %c0_9] : memref<3x28x512xbf16, #tpu.memory_space<vmem>>, vector<1x28x512xbf16>
    %10 = vector.shape_cast %9 : vector<1x28x512xbf16> to vector<28x512xbf16>
    %cst_10 = arith.constant dense<0.000000e+00> : vector<224x512xf32>
    %11 = tpu.matmul %2, %10, %cst_10 {dimension_numbers = #tpu.dot_dimension_numbers<[1], [0], [0], [1], [0, 0, 1, 1], [], []>} : vector<224x28xbf16>, vector<28x512xbf16>, vector<224x512xf32> -> vector<224x512xf32>
    %cst_11 = arith.constant 0.000000e+00 : f32
    %12 = vector.broadcast %cst_11 : f32 to vector<8x512xf32>
    %13 = vector.extract_strided_slice %5 {offsets = [0, 0], sizes = [216, 512], strides = [1, 1]} : vector<224x512xf32> to vector<216x512xf32>
    %14 = tpu.concatenate %12, %13 in 0 : vector<8x512xf32>, vector<216x512xf32> -> vector<224x512xf32>
    %15 = arith.addf %8, %14 : vector<224x512xf32>
    %cst_12 = arith.constant 0.000000e+00 : f32
    %16 = vector.broadcast %cst_12 : f32 to vector<8x512xf32>
    %17 = vector.extract_strided_slice %11 {offsets = [8, 0], sizes = [216, 512], strides = [1, 1]} : vector<224x512xf32> to vector<216x512xf32>
    %18 = tpu.concatenate %17, %16 in 0 : vector<216x512xf32>, vector<8x512xf32> -> vector<224x512xf32>
    %19 = arith.addf %15, %18 : vector<224x512xf32>
    %c0_13 = arith.constant 0 : index
    %c0_14 = arith.constant 0 : index
    %20 = vector.load %arg3[%c0_13, %c0_14] : memref<1x512xf32, #tpu.memory_space<vmem>>, vector<1x512xf32>
    %21 = vector.broadcast %20 : vector<1x512xf32> to vector<224x512xf32>
    %22 = arith.addf %19, %21 : vector<224x512xf32>
    %cst_15 = arith.constant 0.000000e+00 : f32
    %23 = vector.broadcast %cst_15 : f32 to vector<224x512xf32>
    %24 = arith.maximumf %22, %23 : vector<224x512xf32>
    %25 = vector.extract_strided_slice %24 {offsets = [0, 0], sizes = [224, 256], strides = [1, 1]} : vector<224x512xf32> to vector<224x256xf32>
    %26 = vector.extract_strided_slice %24 {offsets = [0, 256], sizes = [224, 256], strides = [1, 1]} : vector<224x512xf32> to vector<224x256xf32>
    %27 = arith.maximumf %25, %26 : vector<224x256xf32>
    %28 = vector.shape_cast %27 : vector<224x256xf32> to vector<14x16x256xf32>
    %29 = vector.extract_strided_slice %28 {offsets = [0, 0, 0], sizes = [14, 8, 256], strides = [1, 1, 1]} : vector<14x16x256xf32> to vector<14x8x256xf32>
    %30 = vector.extract_strided_slice %28 {offsets = [0, 8, 0], sizes = [14, 8, 256], strides = [1, 1, 1]} : vector<14x16x256xf32> to vector<14x8x256xf32>
    %31 = arith.maximumf %29, %30 : vector<14x8x256xf32>
    %32 = vector.shape_cast %31 : vector<14x8x256xf32> to vector<112x256xf32>
    %33 = arith.truncf %32 : vector<112x256xf32> to vector<112x256xbf16>
    %c0_16 = arith.constant 0 : index
    %c0_17 = arith.constant 0 : index
    %c0_18 = arith.constant 0 : index
    %34 = vector.load %arg4[%c0_16, %c0_17, %c0_18] : memref<3x256x512xbf16, #tpu.memory_space<vmem>>, vector<1x256x512xbf16>
    %35 = vector.shape_cast %34 : vector<1x256x512xbf16> to vector<256x512xbf16>
    %cst_19 = arith.constant dense<0.000000e+00> : vector<112x512xf32>
    %36 = tpu.matmul %33, %35, %cst_19 {dimension_numbers = #tpu.dot_dimension_numbers<[1], [0], [0], [1], [0, 0, 1, 1], [], []>} : vector<112x256xbf16>, vector<256x512xbf16>, vector<112x512xf32> -> vector<112x512xf32>
    %c1_20 = arith.constant 1 : index
    %c0_21 = arith.constant 0 : index
    %c0_22 = arith.constant 0 : index
    %37 = vector.load %arg4[%c1_20, %c0_21, %c0_22] : memref<3x256x512xbf16, #tpu.memory_space<vmem>>, vector<1x256x512xbf16>
    %38 = vector.shape_cast %37 : vector<1x256x512xbf16> to vector<256x512xbf16>
    %cst_23 = arith.constant dense<0.000000e+00> : vector<112x512xf32>
    %39 = tpu.matmul %33, %38, %cst_23 {dimension_numbers = #tpu.dot_dimension_numbers<[1], [0], [0], [1], [0, 0, 1, 1], [], []>} : vector<112x256xbf16>, vector<256x512xbf16>, vector<112x512xf32> -> vector<112x512xf32>
    %c2_24 = arith.constant 2 : index
    %c0_25 = arith.constant 0 : index
    %c0_26 = arith.constant 0 : index
    %40 = vector.load %arg4[%c2_24, %c0_25, %c0_26] : memref<3x256x512xbf16, #tpu.memory_space<vmem>>, vector<1x256x512xbf16>
    %41 = vector.shape_cast %40 : vector<1x256x512xbf16> to vector<256x512xbf16>
    %cst_27 = arith.constant dense<0.000000e+00> : vector<112x512xf32>
    %42 = tpu.matmul %33, %41, %cst_27 {dimension_numbers = #tpu.dot_dimension_numbers<[1], [0], [0], [1], [0, 0, 1, 1], [], []>} : vector<112x256xbf16>, vector<256x512xbf16>, vector<112x512xf32> -> vector<112x512xf32>
    %cst_28 = arith.constant 0.000000e+00 : f32
    %43 = vector.broadcast %cst_28 : f32 to vector<8x512xf32>
    %44 = vector.extract_strided_slice %36 {offsets = [0, 0], sizes = [104, 512], strides = [1, 1]} : vector<112x512xf32> to vector<104x512xf32>
    %45 = tpu.concatenate %43, %44 in 0 : vector<8x512xf32>, vector<104x512xf32> -> vector<112x512xf32>
    %46 = arith.addf %39, %45 : vector<112x512xf32>
    %cst_29 = arith.constant 0.000000e+00 : f32
    %47 = vector.broadcast %cst_29 : f32 to vector<8x512xf32>
    %48 = vector.extract_strided_slice %42 {offsets = [8, 0], sizes = [104, 512], strides = [1, 1]} : vector<112x512xf32> to vector<104x512xf32>
    %49 = tpu.concatenate %48, %47 in 0 : vector<104x512xf32>, vector<8x512xf32> -> vector<112x512xf32>
    %50 = arith.addf %46, %49 : vector<112x512xf32>
    %c0_30 = arith.constant 0 : index
    %c0_31 = arith.constant 0 : index
    %51 = vector.load %arg5[%c0_30, %c0_31] : memref<1x512xf32, #tpu.memory_space<vmem>>, vector<1x512xf32>
    %52 = vector.broadcast %51 : vector<1x512xf32> to vector<112x512xf32>
    %53 = arith.addf %50, %52 : vector<112x512xf32>
    %cst_32 = arith.constant 0.000000e+00 : f32
    %54 = vector.broadcast %cst_32 : f32 to vector<112x512xf32>
    %55 = arith.maximumf %53, %54 : vector<112x512xf32>
    %56 = vector.extract_strided_slice %55 {offsets = [0, 0], sizes = [112, 256], strides = [1, 1]} : vector<112x512xf32> to vector<112x256xf32>
    %57 = vector.extract_strided_slice %55 {offsets = [0, 256], sizes = [112, 256], strides = [1, 1]} : vector<112x512xf32> to vector<112x256xf32>
    %58 = arith.maximumf %56, %57 : vector<112x256xf32>
    %59 = vector.shape_cast %58 : vector<112x256xf32> to vector<7x16x256xf32>
    %60 = vector.extract_strided_slice %59 {offsets = [0, 0, 0], sizes = [7, 8, 256], strides = [1, 1, 1]} : vector<7x16x256xf32> to vector<7x8x256xf32>
    %61 = vector.extract_strided_slice %59 {offsets = [0, 8, 0], sizes = [7, 8, 256], strides = [1, 1, 1]} : vector<7x16x256xf32> to vector<7x8x256xf32>
    %62 = arith.maximumf %60, %61 : vector<7x8x256xf32>
    %63 = vector.extract_strided_slice %62 {offsets = [0, 0, 0], sizes = [1, 8, 256], strides = [1, 1, 1]} : vector<7x8x256xf32> to vector<1x8x256xf32>
    %64 = vector.shape_cast %63 : vector<1x8x256xf32> to vector<8x256xf32>
    %65 = vector.extract_strided_slice %62 {offsets = [1, 0, 0], sizes = [1, 8, 256], strides = [1, 1, 1]} : vector<7x8x256xf32> to vector<1x8x256xf32>
    %66 = vector.shape_cast %65 : vector<1x8x256xf32> to vector<8x256xf32>
    %67 = vector.extract_strided_slice %62 {offsets = [2, 0, 0], sizes = [1, 8, 256], strides = [1, 1, 1]} : vector<7x8x256xf32> to vector<1x8x256xf32>
    %68 = vector.shape_cast %67 : vector<1x8x256xf32> to vector<8x256xf32>
    %69 = vector.extract_strided_slice %62 {offsets = [3, 0, 0], sizes = [1, 8, 256], strides = [1, 1, 1]} : vector<7x8x256xf32> to vector<1x8x256xf32>
    %70 = vector.shape_cast %69 : vector<1x8x256xf32> to vector<8x256xf32>
    %71 = vector.extract_strided_slice %62 {offsets = [4, 0, 0], sizes = [1, 8, 256], strides = [1, 1, 1]} : vector<7x8x256xf32> to vector<1x8x256xf32>
    %72 = vector.shape_cast %71 : vector<1x8x256xf32> to vector<8x256xf32>
    %73 = vector.extract_strided_slice %62 {offsets = [5, 0, 0], sizes = [1, 8, 256], strides = [1, 1, 1]} : vector<7x8x256xf32> to vector<1x8x256xf32>
    %74 = vector.shape_cast %73 : vector<1x8x256xf32> to vector<8x256xf32>
    %75 = vector.extract_strided_slice %62 {offsets = [6, 0, 0], sizes = [1, 8, 256], strides = [1, 1, 1]} : vector<7x8x256xf32> to vector<1x8x256xf32>
    %76 = vector.shape_cast %75 : vector<1x8x256xf32> to vector<8x256xf32>
    %77 = tpu.concatenate %64, %66, %68, %70, %72, %74, %76 in 1 : vector<8x256xf32>, vector<8x256xf32>, vector<8x256xf32>, vector<8x256xf32>, vector<8x256xf32>, vector<8x256xf32>, vector<8x256xf32> -> vector<8x1792xf32>
    %78 = arith.truncf %77 : vector<8x1792xf32> to vector<8x1792xbf16>
    %c0_33 = arith.constant 0 : index
    %c0_34 = arith.constant 0 : index
    %79 = vector.load %arg6[%c0_33, %c0_34] : memref<1792x128xbf16, #tpu.memory_space<vmem>>, vector<1792x128xbf16>
    %cst_35 = arith.constant dense<0.000000e+00> : vector<8x128xf32>
    %80 = tpu.matmul %78, %79, %cst_35 {dimension_numbers = #tpu.dot_dimension_numbers<[1], [0], [0], [1], [0, 0, 1, 1], [], []>} : vector<8x1792xbf16>, vector<1792x128xbf16>, vector<8x128xf32> -> vector<8x128xf32>
    %c0_36 = arith.constant 0 : index
    %c0_37 = arith.constant 0 : index
    %81 = vector.load %arg7[%c0_36, %c0_37] : memref<1x128xf32, #tpu.memory_space<vmem>>, vector<1x128xf32>
    %82 = vector.broadcast %81 : vector<1x128xf32> to vector<8x128xf32>
    %83 = arith.addf %80, %82 : vector<8x128xf32>
    %cst_38 = arith.constant 0.000000e+00 : f32
    %84 = vector.broadcast %cst_38 : f32 to vector<8x128xf32>
    %85 = arith.maximumf %83, %84 : vector<8x128xf32>
    %86 = arith.truncf %85 : vector<8x128xf32> to vector<8x128xbf16>
    %c0_39 = arith.constant 0 : index
    %c0_40 = arith.constant 0 : index
    %87 = vector.load %arg8[%c0_39, %c0_40] : memref<128x128xbf16, #tpu.memory_space<vmem>>, vector<128x128xbf16>
    %cst_41 = arith.constant dense<0.000000e+00> : vector<8x128xf32>
    %88 = tpu.matmul %86, %87, %cst_41 {dimension_numbers = #tpu.dot_dimension_numbers<[1], [0], [0], [1], [0, 0, 1, 1], [], []>} : vector<8x128xbf16>, vector<128x128xbf16>, vector<8x128xf32> -> vector<8x128xf32>
    %c0_42 = arith.constant 0 : index
    %c0_43 = arith.constant 0 : index
    %89 = vector.load %arg9[%c0_42, %c0_43] : memref<1x128xf32, #tpu.memory_space<vmem>>, vector<1x128xf32>
    %90 = vector.broadcast %89 : vector<1x128xf32> to vector<8x128xf32>
    %91 = arith.addf %88, %90 : vector<8x128xf32>
    %c0_44 = arith.constant 0 : index
    %c0_45 = arith.constant 0 : index
    %92 = vector.load %arg10[%c0_44, %c0_45] : memref<8x128xf32, #tpu.memory_space<vmem>>, vector<8x128xf32>
    tpu.vector_store %arg10[%c0_44, %c0_45], %91 {strides = array<i32>} : memref<8x128xf32, #tpu.memory_space<vmem>>, vector<8x128xf32>,
    return
  }
  func.func @transform_0(%arg0: i32) -> (i32, i32, i32) {
    %c0_i32 = arith.constant 0 : i32
    %c0_i32_0 = arith.constant 0 : i32
    %c0_i32_1 = arith.constant 0 : i32
    return %c0_i32, %arg0, %c0_i32_0 : i32, i32, i32
  }
  func.func @transform_1(%arg0: i32) -> (i32, i32, i32) {
    %c0_i32 = arith.constant 0 : i32
    %c0_i32_0 = arith.constant 0 : i32
    %c0_i32_1 = arith.constant 0 : i32
    %c0_i32_2 = arith.constant 0 : i32
    return %c0_i32, %c0_i32_0, %c0_i32_1 : i32, i32, i32
  }
  func.func @transform_2(%arg0: i32) -> (i32, i32) {
    %c0_i32 = arith.constant 0 : i32
    %c0_i32_0 = arith.constant 0 : i32
    %c0_i32_1 = arith.constant 0 : i32
    return %c0_i32, %c0_i32_0 : i32, i32
  }
  func.func @transform_3(%arg0: i32) -> (i32, i32, i32) {
    %c0_i32 = arith.constant 0 : i32
    %c0_i32_0 = arith.constant 0 : i32
    %c0_i32_1 = arith.constant 0 : i32
    %c0_i32_2 = arith.constant 0 : i32
    return %c0_i32, %c0_i32_0, %c0_i32_1 : i32, i32, i32
  }
  func.func @transform_4(%arg0: i32) -> (i32, i32) {
    %c0_i32 = arith.constant 0 : i32
    %c0_i32_0 = arith.constant 0 : i32
    %c0_i32_1 = arith.constant 0 : i32
    return %c0_i32, %c0_i32_0 : i32, i32
  }
  func.func @transform_5(%arg0: i32) -> (i32, i32) {
    %c0_i32 = arith.constant 0 : i32
    %c0_i32_0 = arith.constant 0 : i32
    %c0_i32_1 = arith.constant 0 : i32
    return %c0_i32, %c0_i32_0 : i32, i32
  }
  func.func @transform_6(%arg0: i32) -> (i32, i32) {
    %c0_i32 = arith.constant 0 : i32
    %c0_i32_0 = arith.constant 0 : i32
    %c0_i32_1 = arith.constant 0 : i32
    return %c0_i32, %c0_i32_0 : i32, i32
  }
  func.func @transform_7(%arg0: i32) -> (i32, i32) {
    %c0_i32 = arith.constant 0 : i32
    %c0_i32_0 = arith.constant 0 : i32
    %c0_i32_1 = arith.constant 0 : i32
    return %c0_i32, %c0_i32_0 : i32, i32
  }
  func.func @transform_8(%arg0: i32) -> (i32, i32) {
    %c0_i32 = arith.constant 0 : i32
    %c0_i32_0 = arith.constant 0 : i32
    %c0_i32_1 = arith.constant 0 : i32
    return %c0_i32, %c0_i32_0 : i32, i32
  }
  func.func @transform_9(%arg0: i32) -> (i32, i32) {
    %c0_i32 = arith.constant 0 : i32
    %c0_i32_0 = arith.constant 0 : i32
    return %arg0, %c0_i32 : i32, i32
  }
}

</mosaic_0001>

<bundles_post_ra>
// kernel: simple_cnn_forward.1
= control target key start
LH: loop header
LB: loop body
LE: loop exit
PB: predicated region body
PF: predicated region fallthrough
CT: control target
= control target key end

     0   :  { %14 = vsyncpa [#allocation3], 0  ;;  %s8535_s0 = inlined_call_operand.vmem [shape: f32[28,8,28], index: 0, kind: input, shape index: {}]   ;;  %s8536_s1 = inlined_call_operand.vmem [shape: bf16[3,28,512], index: 1, kind: input, shape index: {}]   ;;  %s8537_s2 = inlined_call_operand.vmem [shape: f32[1,512], index: 2, kind: input, shape index: {}]   ;;  %s8538_s3 = inlined_call_operand.hbm [shape: bf16[3,256,512], index: 3, kind: input, shape index: {}]   ;;  %s8539_s4 = inlined_call_operand.vmem [shape: f32[1,512], index: 4, kind: input, shape index: {}]   ;;  %s8540_s5 = inlined_call_operand.hbm [shape: bf16[1792,128], index: 5, kind: input, shape index: {}]   ;;  %s8541_s6 = inlined_call_operand.vmem [shape: f32[1,128], index: 6, kind: input, shape index: {}]   ;;  %s8542_s7 = inlined_call_operand.vmem [shape: bf16[128,128], index: 7, kind: input, shape index: {}]   ;;  %s8543_s8 = inlined_call_operand.vmem [shape: f32[1,128], index: 8, kind: input, shape index: {}]   ;;  %s8544_s9 = inlined_call_operand.vmem [shape: f32[8,128], index: 9, kind: output, shape index: {}]  }
   0x1   :  { %15 = vsyncpa [#allocation5], 0  ;;  %s6244_s30 = smov [#allocation2]   ;;  %s6196_s13 = scalar_lea.hbm %s8538_s3, 24576 }
   0x2   :  { %s27_s10 = sshll.u32 %s6244_s30, 4  ;;  %p6197_p0 = scmp.ne.s32.totalorder %s8538_s3, %s6196_s13  ;;  %s28_s10 = int_to_ptr.vmem [resolvable:$true] %s27_s10 }
   0x3   :  { %p6200_p1 = scmp.lt.u32.totalorder %s6196_s13, %s8538_s3 }
   0x5   :  { %p6202_p2 = pnand %p6200_p1, %p6197_p0 }
   0x7   :  { %6205 = shalt.err (!%p6202_p2)
}
   0x8   :  { %s6206_s18 = scalar_lea.vmem %s28_s10, 24576  ;;  %p6211_p4 = scmp.lt.s32.totalorder %s28_s10, %s28_s10 }
   0x9   :  { %p6207_p3 = scmp.ne.s32.totalorder %s28_s10, %s6206_s18  ;;  %p6212_p5 = scmp.lt.s32.totalorder %s6206_s18, %s6206_s18 }
   0xb   :  { %p6213_p6 = por %p6212_p5, %p6211_p4 }
   0xd   :  { %p6214_p7 = pnand %p6213_p6, %p6207_p3 }
   0xf   :  { %6217 = shalt.err (!%p6214_p7)
}
  0x10   :  { %s6245_s19 = smov 256   ;;  %s6246_s20 = smov 16  }
  0x11   :  { %33 = dma.hbm_to_vmem [thread:$0]  %s8538_s3, 24576, %s28_s10, [#allocation3], %s6245_s19, %s6245_s19, %s6246_s20  }
  0x12   :  { %s6247_s23 = smov [#allocation4]   ;;  %s6218_s27 = scalar_lea.hbm %s8540_s5, 14336 }
  0x13   :  { %s41_s24 = sshll.u32 %s6247_s23, 4  ;;  %p6219_p8 = scmp.ne.s32.totalorder %s8540_s5, %s6218_s27  ;;  %s42_s24 = int_to_ptr.vmem [resolvable:$true] %s41_s24 }
  0x14   :  { %p6222_p9 = scmp.lt.u32.totalorder %s6218_s27, %s8540_s5 }
  0x16   :  { %p6224_p10 = pnand %p6222_p9, %p6219_p8 }
  0x18   :  { %6227 = shalt.err (!%p6224_p10)
}
  0x19   :  { %s6228_s12 = scalar_lea.vmem %s42_s24, 14336  ;;  %p6233_p12 = scmp.lt.s32.totalorder %s42_s24, %s42_s24 }
  0x1a   :  { %p6229_p11 = scmp.ne.s32.totalorder %s42_s24, %s6228_s12  ;;  %p6234_p13 = scmp.lt.s32.totalorder %s6228_s12, %s6228_s12 }
  0x1c   :  { %p6235_p0 = por %p6234_p13, %p6233_p12 }
  0x1e   :  { %p6236_p1 = pnand %p6235_p0, %p6229_p11 }
  0x20   :  { %6239 = shalt.err (!%p6236_p1)
}
  0x21   :  { %s6248_s3 = smov 64   ;;  %s6249_s10 = smov 4  }
  0x22   :  { %47 = dma.hbm_to_vmem [thread:$0]  %s8540_s5, 14336, %s42_s24, [#allocation5], %s6248_s3, %s6248_s3, %s6249_s10  }
  0x23   :  { %6240 = dma.done.wait [#allocation3], 24576  }
  0x24   :  { %6241 = vsyncadd [#allocation3], 4294942720 }
  0x25   :  { %6242 = dma.done.wait [#allocation5], 14336  }
  0x26   :  { %6243 = vsyncadd [#allocation5], 4294952960  ;;  %v8545_v0 = vmov 0   ;;  %v5752_v1 = vld [vmem:[%s8536_s1 + $0x4] ss:$16 sps:$4 sm:$0xff]   ;;  %vm190_vm0 = vcmask 1045504  }
  0x27   :  { %235 = vmatprep.mubr.bf16.mxu0 %v8545_v0  ;;  %406 = vmatprep.mubr.bf16.mxu1 %v8545_v0  ;;  %v5754_v2 = vld [vmem:[%s8536_s1 + $0xc] ss:$16 sps:$4 sm:$0xff]   ;;  %v5756_v3 = vld [vmem:[%s8536_s1] ss:$16 sps:$4 sm:$0xff]   ;;  %v5757_v4 = vld [vmem:[%s8536_s1 + $0x8] ss:$16 sps:$4 sm:$0xff]  }
  0x28   :  { %203 = vmatprep.subr.bf16.mxu0 %v5752_v1  ;;  %374 = vmatprep.subr.bf16.mxu1 %v5754_v2  ;;  %v5758_v5 = vld [vmem:[%s8536_s1 + $0x24] ss:$16 sps:$4 sm:$0x3f]   ;;  %v5760_v6 = vld [vmem:[%s8536_s1 + $0x2c] ss:$16 sps:$4 sm:$0x3f]  }
  0x29   :  { %204 = vmatpush1.bf16.msra.mxu0 %v5756_v3  ;;  %375 = vmatpush1.bf16.msra.mxu1 %v5757_v4  ;;  %v61_v7 = vld [vmem:[%s8535_s0] sm:$0xff]  ;;  %v5763_v9 = vld [vmem:[%s8536_s1 + $0x28] ss:$16 sps:$4 sm:$0x3f]   ;;  %vm147_vm1 = vcmask 228352   ;;  %v63_v18 = vld [vmem:[%s8535_s0 + $0x10] sm:$0xff] }
  0x2a   :  { %5124 = vmatprep.subr.msk.bf16.mxu0 %vm190_vm0, %v5758_v5  ;;  %v5762_v8 = vld [vmem:[%s8536_s1 + $0x20] ss:$16 sps:$4 sm:$0x3f]   ;;  %5139 = vmatprep.subr.msk.bf16.mxu1 %vm190_vm0, %v5760_v6  ;;  %v62_v10 = vld [vmem:[%s8535_s0 + $0x8] sm:$0xff]  ;;  %v198_v12 = vsel %vm190_vm0, %v5763_v9, 0  ;;  %v64_v19 = vld [vmem:[%s8535_s0 + $0x18] sm:$0xff] }
  0x2b   :  { %v192_v11 = vsel %vm190_vm0, %v5762_v8, 0  ;;  %v6363_v13 = vpack.c.bf16 %v62_v10, %v61_v7  ;;  %v5766_v14 = vld [vmem:[%s8536_s1 + $0x84] ss:$16 sps:$4 sm:$0xff]   ;;  %v5764_v15 = vld [vmem:[%s8536_s1 + $0x80] ss:$16 sps:$4 sm:$0xff]   ;;  %v6392_v21 = vpack.c.bf16 %v64_v19, %v63_v18  ;;  %v66_v28 = vld [vmem:[%s8535_s0 + $0x28] sm:$0xff] }
  0x2c   :  { %v5767_v16 = vld [vmem:[%s8536_s1 + $0x88] ss:$16 sps:$4 sm:$0xff]   ;;  %v5769_v17 = vld [vmem:[%s8536_s1 + $0x8c] ss:$16 sps:$4 sm:$0xff]   ;;  %v65_v27 = vld [vmem:[%s8535_s0 + $0x20] sm:$0xff]  ;;  %vm6252_vm2 = vmmov 0  }
  0x2d   :  { %206 = vmatpush1.bf16.msra.mxu0 %v192_v11  ;;  %377 = vmatpush1.bf16.msra.mxu1 %v198_v12  ;;  %v5770_v20 = vld [vmem:[%s8536_s1 + $0xa4] ss:$16 sps:$4 sm:$0x3f]   ;;  %v5772_v22 = vld [vmem:[%s8536_s1 + $0xac] ss:$16 sps:$4 sm:$0x3f]   ;;  %v6422_v30 = vpack.c.bf16 %v66_v28, %v65_v27 }
  0x2e   :  { %611 = vmatprep.subr.bf16.mxu0 %v5766_v14  ;;  %782 = vmatprep.subr.bf16.mxu1 %v5769_v17  ;;  %v5774_v23 = vld [vmem:[%s8536_s1 + $0xa0] ss:$16 sps:$4 sm:$0x3f]   ;;  %v5775_v24 = vld [vmem:[%s8536_s1 + $0xa8] ss:$16 sps:$4 sm:$0x3f]  }
  0x2f   :  { %v600_v25 = vsel %vm190_vm0, %v5774_v23, 0  ;;  %v606_v26 = vsel %vm190_vm0, %v5775_v24, 0  ;;  %v5778_v29 = vld [vmem:[%s8536_s1 + $0x44] ss:$16 sps:$4 sm:$0xff]   ;;  %v5781_v31 = vld [vmem:[%s8536_s1 + $0x4c] ss:$16 sps:$4 sm:$0xff]  }
  0x30   :  { %5125 = vmatmul.mubr.msk.bf16.vlgmr.msra.gmra.mrb[0].mxu0 %vm147_vm1, %v6363_v13  ;;  %5140 = vmatmul.mubr.msk.bf16.vlgmr.msra.gmra.mrb[0].mxu1 %vm147_vm1, %v6363_v13  ;;  %v67_v32 = vld [vmem:[%s8535_s0 + $0x30] sm:$0xff]  ;;  %v68_v33 = vld [vmem:[%s8535_s0 + $0x38] sm:$0xff]  ;;  %v69_v35 = vld [vmem:[%s8535_s0 + $0x40] sm:$0xff] }
  0x31   :  { %612 = vmatpush1.bf16.msra.mxu0 %v5764_v15  ;;  %783 = vmatpush1.bf16.msra.mxu1 %v5767_v16  ;;  %v6439_v34 = vpack.c.bf16 %v68_v33, %v67_v32  ;;  %v70_v36 = vld [vmem:[%s8535_s0 + $0x48] sm:$0xff]  ;;  %v71_v38 = vld [vmem:[%s8535_s0 + $0x50] sm:$0xff]  ;;  %v72_v39 = vld [vmem:[%s8535_s0 + $0x58] sm:$0xff] }
  0x32   :  { %245 = vmatprep.mubr.bf16.mxu0 %v8545_v0  ;;  %416 = vmatprep.mubr.bf16.mxu1 %v8545_v0  ;;  %v6453_v37 = vpack.c.bf16 %v70_v36, %v69_v35  ;;  %v6467_v40 = vpack.c.bf16 %v72_v39, %v71_v38  ;;  %v73_v41 = vld [vmem:[%s8535_s0 + $0x60] sm:$0xff]  ;;  %v74_v42 = vld [vmem:[%s8535_s0 + $0x68] sm:$0xff]  ;;  %v75_v44 = vld [vmem:[%s8535_s0 + $0x70] sm:$0xff] }
  0x33   :  { %5178 = vmatprep.subr.msk.bf16.mxu0 %vm190_vm0, %v5770_v20  ;;  %5193 = vmatprep.subr.msk.bf16.mxu1 %vm190_vm0, %v5772_v22  ;;  %v6481_v43 = vpack.c.bf16 %v74_v42, %v73_v41  ;;  %v76_v45 = vld [vmem:[%s8535_s0 + $0x78] sm:$0xff]  ;;  %v77_v47 = vld [vmem:[%s8535_s0 + $0x80] sm:$0xff]  ;;  %v78_v48 = vld [vmem:[%s8535_s0 + $0x88] sm:$0xff] }
  0x34   :  { %v6495_v46 = vpack.c.bf16 %v76_v45, %v75_v44  ;;  %v6509_v49 = vpack.c.bf16 %v78_v48, %v77_v47  ;;  %v79_v50 = vld [vmem:[%s8535_s0 + $0x90] sm:$0xff]  ;;  %v80_v51 = vld [vmem:[%s8535_s0 + $0x98] sm:$0xff]  ;;  %v81_v53 = vld [vmem:[%s8535_s0 + $0xa0] sm:$0xff] }
  0x35   :  { %614 = vmatpush1.bf16.msra.mxu0 %v600_v25  ;;  %785 = vmatpush1.bf16.msra.mxu1 %v606_v26  ;;  %v6523_v52 = vpack.c.bf16 %v80_v51, %v79_v50  ;;  %v82_v54 = vld [vmem:[%s8535_s0 + $0xa8] sm:$0xff]  ;;  %v5786_v55 = vld [vmem:[%s8536_s1 + $0x60] ss:$16 sps:$4 sm:$0x3f]   ;;  %v84_v59 = vld [vmem:[%s8535_s0 + $0xb8] sm:$0xff] }
  0x36   :  { %1001 = vmatprep.subr.bf16.mxu0 %v5778_v29  ;;  %1174 = vmatprep.subr.bf16.mxu1 %v5781_v31  ;;  %v5787_v56 = vld [vmem:[%s8536_s1 + $0x68] ss:$16 sps:$4 sm:$0x3f]   ;;  %v6543_v57 = vpack.c.bf16 %v82_v54, %v81_v53  ;;  %v83_v58 = vld [vmem:[%s8535_s0 + $0xb0] sm:$0xff]  ;;  %v990_v60 = vsel %vm190_vm0, %v5786_v55, 0  ;;  %v85_v63 = vld [vmem:[%s8535_s0 + $0xc0] sm:$0xff] }
  0x37   :  { %v996_v61 = vsel %vm190_vm0, %v5787_v56, 0  ;;  %v6559_v62 = vpack.c.bf16 %v84_v59, %v83_v58  ;;  %v86_v1 = vld [vmem:[%s8535_s0 + $0xc8] sm:$0xff]  ;;  %v87_v3 = vld [vmem:[%s8535_s0 + $0xd0] sm:$0xff]  ;;  %v88_v4 = vld [vmem:[%s8535_s0 + $0xd8] sm:$0xff] }
  0x38   :  { %5126 = vmatmul.mubr.msk.bf16.gmra.mrb[4].mxu0 %vm147_vm1, %v6392_v21  ;;  %5141 = vmatmul.mubr.msk.bf16.gmra.mrb[4].mxu1 %vm147_vm1, %v6392_v21  ;;  %v6573_v2 = vpack.c.bf16 %v86_v1, %v85_v63  ;;  %v6587_v5 = vpack.c.bf16 %v88_v4, %v87_v3  ;;  %v5776_v6 = vld [vmem:[%s8536_s1 + $0x40] ss:$16 sps:$4 sm:$0xff]   ;;  %v5779_v7 = vld [vmem:[%s8536_s1 + $0x48] ss:$16 sps:$4 sm:$0xff]  }
  0x39   :  { %255 = vmatprep.mubr.bf16.mxu0 %v8545_v0  ;;  %426 = vmatprep.mubr.bf16.mxu1 %v8545_v0  ;;  %v5782_v8 = vld [vmem:[%s8536_s1 + $0x64] ss:$16 sps:$4 sm:$0x3f]   ;;  %v5784_v9 = vld [vmem:[%s8536_s1 + $0x6c] ss:$16 sps:$4 sm:$0x3f]  }
  0x40   :  { %5127 = vmatmul.mubr.msk.bf16.gmra.mrb[8].mxu0 %vm147_vm1, %v6422_v30  ;;  %5142 = vmatmul.mubr.msk.bf16.gmra.mrb[8].mxu1 %vm147_vm1, %v6422_v30 }
  0x41   :  { %265 = vmatprep.mubr.bf16.mxu0 %v8545_v0  ;;  %436 = vmatprep.mubr.bf16.mxu1 %v8545_v0 }
  0x48   :  { %5128 = vmatmul.mubr.msk.bf16.gmra.mrb[12].mxu0 %vm147_vm1, %v6439_v34  ;;  %5143 = vmatmul.mubr.msk.bf16.gmra.mrb[12].mxu1 %vm147_vm1, %v6439_v34 }
  0x49   :  { %275 = vmatprep.mubr.bf16.mxu0 %v8545_v0  ;;  %446 = vmatprep.mubr.bf16.mxu1 %v8545_v0 }
  0x50   :  { %5129 = vmatmul.mubr.msk.bf16.gmra.mrb[16].mxu0 %vm147_vm1, %v6453_v37  ;;  %5144 = vmatmul.mubr.msk.bf16.gmra.mrb[16].mxu1 %vm147_vm1, %v6453_v37 }
  0x51   :  { %285 = vmatprep.mubr.bf16.mxu0 %v8545_v0  ;;  %456 = vmatprep.mubr.bf16.mxu1 %v8545_v0 }
  0x58   :  { %5130 = vmatmul.mubr.msk.bf16.gmra.mrb[20].mxu0 %vm147_vm1, %v6467_v40  ;;  %5145 = vmatmul.mubr.msk.bf16.gmra.mrb[20].mxu1 %vm147_vm1, %v6467_v40 }
  0x59   :  { %295 = vmatprep.mubr.bf16.mxu0 %v8545_v0  ;;  %466 = vmatprep.mubr.bf16.mxu1 %v8545_v0 }
  0x60   :  { %5131 = vmatmul.mubr.msk.bf16.gmra.mrb[24].mxu0 %vm147_vm1, %v6481_v43  ;;  %5146 = vmatmul.mubr.msk.bf16.gmra.mrb[24].mxu1 %vm147_vm1, %v6481_v43 }
  0x61   :  { %305 = vmatprep.mubr.bf16.mxu0 %v8545_v0  ;;  %476 = vmatprep.mubr.bf16.mxu1 %v8545_v0 }
  0x68   :  { %5132 = vmatmul.mubr.msk.bf16.gmra.mrb[28].mxu0 %vm147_vm1, %v6495_v46  ;;  %5147 = vmatmul.mubr.msk.bf16.gmra.mrb[28].mxu1 %vm147_vm1, %v6495_v46 }
  0x69   :  { %315 = vmatprep.mubr.bf16.mxu0 %v8545_v0  ;;  %486 = vmatprep.mubr.bf16.mxu1 %v8545_v0 }
  0x70   :  { %5133 = vmatmul.mubr.msk.bf16.gmra.mrb[32].mxu0 %vm147_vm1, %v6509_v49  ;;  %5148 = vmatmul.mubr.msk.bf16.gmra.mrb[32].mxu1 %vm147_vm1, %v6509_v49 }
  0x71   :  { %325 = vmatprep.mubr.bf16.mxu0 %v8545_v0  ;;  %496 = vmatprep.mubr.bf16.mxu1 %v8545_v0 }
  0x78   :  { %5134 = vmatmul.mubr.msk.bf16.gmra.mrb[36].mxu0 %vm147_vm1, %v6523_v52  ;;  %5149 = vmatmul.mubr.msk.bf16.gmra.mrb[36].mxu1 %vm147_vm1, %v6523_v52 }
  0x79   :  { %335 = vmatprep.mubr.bf16.mxu0 %v8545_v0  ;;  %506 = vmatprep.mubr.bf16.mxu1 %v8545_v0 }
  0x80   :  { %5135 = vmatmul.mubr.msk.bf16.gmra.mrb[40].mxu0 %vm147_vm1, %v6543_v57  ;;  %5150 = vmatmul.mubr.msk.bf16.gmra.mrb[40].mxu1 %vm147_vm1, %v6543_v57 }
  0x81   :  { %345 = vmatprep.mubr.bf16.mxu0 %v8545_v0  ;;  %516 = vmatprep.mubr.bf16.mxu1 %v8545_v0 }
  0x88   :  { %5136 = vmatmul.mubr.msk.bf16.gmra.mrb[44].mxu0 %vm147_vm1, %v6559_v62  ;;  %5151 = vmatmul.mubr.msk.bf16.gmra.mrb[44].mxu1 %vm147_vm1, %v6559_v62 }
  0x89   :  { %355 = vmatprep.mubr.bf16.mxu0 %v8545_v0  ;;  %526 = vmatprep.mubr.bf16.mxu1 %v8545_v0 }
  0x90   :  { %5137 = vmatmul.mubr.msk.bf16.gmra.mrb[48].mxu0 %vm147_vm1, %v6573_v2  ;;  %5152 = vmatmul.mubr.msk.bf16.gmra.mrb[48].mxu1 %vm147_vm1, %v6573_v2 }
  0x91   :  { %365 = vmatprep.mubr.bf16.mxu0 %v8545_v0  ;;  %536 = vmatprep.mubr.bf16.mxu1 %v8545_v0 }
  0x98   :  { %5138 = vmatmul.mubr.msk.bf16.gmra.mrb[52].mxu0 %vm147_vm1, %v6587_v5  ;;  %5153 = vmatmul.mubr.msk.bf16.gmra.mrb[52].mxu1 %vm147_vm1, %v6587_v5 }
  0x99   :  { %643 = vmatprep.mubr.bf16.mxu0 %v8545_v0  ;;  %814 = vmatprep.mubr.bf16.mxu1 %v8545_v0 }
  0xa0   :  { %5179 = vmatmul.mubr.msk.bf16.vlgmr.msra.gmra.mrb[56].mxu0 %vm147_vm1, %v6363_v13  ;;  %5194 = vmatmul.mubr.msk.bf16.vlgmr.msra.gmra.mrb[56].mxu1 %vm147_vm1, %v6363_v13 }
  0xa1   :  { %1002 = vmatpush1.bf16.msra.mxu0 %v5776_v6  ;;  %1175 = vmatpush1.bf16.msra.mxu1 %v5779_v7 }
  0xa2   :  { %651 = vmatprep.mubr.bf16.mxu0 %v8545_v0  ;;  %822 = vmatprep.mubr.bf16.mxu1 %v8545_v0 }
  0xa3   :  { %5216 = vmatprep.subr.msk.bf16.mxu0 %vm190_vm0, %v5782_v8  ;;  %5231 = vmatprep.subr.msk.bf16.mxu1 %vm190_vm0, %v5784_v9  ;;  %v5788_v9 = vld [vmem:[#allocation2] ss:$16 sps:$4 sm:$0xff]  }
  0xa5   :  { %1004 = vmatpush1.bf16.msra.mxu0 %v990_v60  ;;  %1177 = vmatpush1.bf16.msra.mxu1 %v996_v61 }
  0xa8   :  { %5180 = vmatmul.mubr.msk.bf16.gmra.mrb[60].mxu0 %vm147_vm1, %v6392_v21  ;;  %5195 = vmatmul.mubr.msk.bf16.gmra.mrb[60].mxu1 %vm147_vm1, %v6392_v21 }
  0xa9   :  { %661 = vmatprep.mubr.bf16.mxu0 %v8545_v0  ;;  %832 = vmatprep.mubr.bf16.mxu1 %v8545_v0 }
  0xb0   :  { %5181 = vmatmul.mubr.msk.bf16.gmra.mrb[64].mxu0 %vm147_vm1, %v6422_v30  ;;  %5196 = vmatmul.mubr.msk.bf16.gmra.mrb[64].mxu1 %vm147_vm1, %v6422_v30 }
  0xb1   :  { %671 = vmatprep.mubr.bf16.mxu0 %v8545_v0  ;;  %842 = vmatprep.mubr.bf16.mxu1 %v8545_v0 }
  0xb8   :  { %5182 = vmatmul.mubr.msk.bf16.gmra.mrb[68].mxu0 %vm147_vm1, %v6439_v34  ;;  %5197 = vmatmul.mubr.msk.bf16.gmra.mrb[68].mxu1 %vm147_vm1, %v6439_v34 }
  0xb9   :  { %681 = vmatprep.mubr.bf16.mxu0 %v8545_v0  ;;  %852 = vmatprep.mubr.bf16.mxu1 %v8545_v0 }
  0xc0   :  { %5183 = vmatmul.mubr.msk.bf16.gmra.mrb[72].mxu0 %vm147_vm1, %v6453_v37  ;;  %5198 = vmatmul.mubr.msk.bf16.gmra.mrb[72].mxu1 %vm147_vm1, %v6453_v37 }
  0xc1   :  { %691 = vmatprep.mubr.bf16.mxu0 %v8545_v0  ;;  %862 = vmatprep.mubr.bf16.mxu1 %v8545_v0 }
  0xc8   :  { %5184 = vmatmul.mubr.msk.bf16.gmra.mrb[76].mxu0 %vm147_vm1, %v6467_v40  ;;  %5199 = vmatmul.mubr.msk.bf16.gmra.mrb[76].mxu1 %vm147_vm1, %v6467_v40 }
  0xc9   :  { %701 = vmatprep.mubr.bf16.mxu0 %v8545_v0  ;;  %872 = vmatprep.mubr.bf16.mxu1 %v8545_v0 }
  0xd0   :  { %5185 = vmatmul.mubr.msk.bf16.gmra.mrb[80].mxu0 %vm147_vm1, %v6481_v43  ;;  %5200 = vmatmul.mubr.msk.bf16.gmra.mrb[80].mxu1 %vm147_vm1, %v6481_v43 }
  0xd1   :  { %711 = vmatprep.mubr.bf16.mxu0 %v8545_v0  ;;  %882 = vmatprep.mubr.bf16.mxu1 %v8545_v0 }
  0xd8   :  { %5186 = vmatmul.mubr.msk.bf16.gmra.mrb[84].mxu0 %vm147_vm1, %v6495_v46  ;;  %5201 = vmatmul.mubr.msk.bf16.gmra.mrb[84].mxu1 %vm147_vm1, %v6495_v46 }
  0xd9   :  { %721 = vmatprep.mubr.bf16.mxu0 %v8545_v0  ;;  %892 = vmatprep.mubr.bf16.mxu1 %v8545_v0 }
  0xe0   :  { %5187 = vmatmul.mubr.msk.bf16.gmra.mrb[88].mxu0 %vm147_vm1, %v6509_v49  ;;  %5202 = vmatmul.mubr.msk.bf16.gmra.mrb[88].mxu1 %vm147_vm1, %v6509_v49 }
  0xe1   :  { %731 = vmatprep.mubr.bf16.mxu0 %v8545_v0  ;;  %902 = vmatprep.mubr.bf16.mxu1 %v8545_v0 }
  0xe8   :  { %5188 = vmatmul.mubr.msk.bf16.gmra.mrb[92].mxu0 %vm147_vm1, %v6523_v52  ;;  %5203 = vmatmul.mubr.msk.bf16.gmra.mrb[92].mxu1 %vm147_vm1, %v6523_v52 }
  0xe9   :  { %741 = vmatprep.mubr.bf16.mxu0 %v8545_v0  ;;  %912 = vmatprep.mubr.bf16.mxu1 %v8545_v0 }
  0xf0   :  { %5189 = vmatmul.mubr.msk.bf16.gmra.mrb[96].mxu0 %vm147_vm1, %v6543_v57  ;;  %5204 = vmatmul.mubr.msk.bf16.gmra.mrb[96].mxu1 %vm147_vm1, %v6543_v57 }
  0xf1   :  { %751 = vmatprep.mubr.bf16.mxu0 %v8545_v0  ;;  %922 = vmatprep.mubr.bf16.mxu1 %v8545_v0 }
  0xf8   :  { %5190 = vmatmul.mubr.msk.bf16.gmra.mrb[100].mxu0 %vm147_vm1, %v6559_v62  ;;  %5205 = vmatmul.mubr.msk.bf16.gmra.mrb[100].mxu1 %vm147_vm1, %v6559_v62 }
  0xf9   :  { %761 = vmatprep.mubr.bf16.mxu0 %v8545_v0  ;;  %932 = vmatprep.mubr.bf16.mxu1 %v8545_v0 }
 0x100   :  { %5191 = vmatmul.mubr.msk.bf16.gmra.mrb[104].mxu0 %vm147_vm1, %v6573_v2  ;;  %5206 = vmatmul.mubr.msk.bf16.gmra.mrb[104].mxu1 %vm147_vm1, %v6573_v2 }
 0x101   :  { %771 = vmatprep.mubr.bf16.mxu0 %v8545_v0  ;;  %942 = vmatprep.mubr.bf16.mxu1 %v8545_v0 }
 0x103   :  { %v6687_v10 = vpop.f32.mrb[0].mxu0  ;;  %v6689_v11 = vpop.f32.mrb[0].mxu1 }
 0x104   :  { %v6691_v12 = vpop.f32.mrb[1].mxu0  ;;  %v6693_v14 = vpop.f32.mrb[1].mxu1 }
 0x105   :  { %v6695_v15 = vpop.f32.mrb[2].mxu0  ;;  %v6697_v16 = vpop.f32.mrb[2].mxu1 }
 0x106   :  { %v6699_v17 = vpop.f32.mrb[3].mxu0  ;;  %v6701_v18 = vpop.f32.mrb[3].mxu1 }
 0x108   :  { %5192 = vmatmul.mubr.msk.bf16.gmra.mrb[108].mxu0 %vm147_vm1, %v6587_v5  ;;  %5207 = vmatmul.mubr.msk.bf16.gmra.mrb[108].mxu1 %vm147_vm1, %v6587_v5 }
 0x109   :  { %1033 = vmatprep.mubr.bf16.mxu0 %v8545_v0  ;;  %1206 = vmatprep.mubr.bf16.mxu1 %v8545_v0 }
 0x10b   :  { %v6709_v19 = vpop.f32.mrb[4].mxu0  ;;  %v6711_v20 = vpop.f32.mrb[4].mxu1 }
 0x10c   :  { %v6713_v22 = vpop.f32.mrb[5].mxu0  ;;  %v6715_v23 = vpop.f32.mrb[5].mxu1 }
 0x10d   :  { %v6717_v24 = vpop.f32.mrb[6].mxu0  ;;  %v6719_v25 = vpop.f32.mrb[6].mxu1 }
 0x10e   :  { %v6721_v26 = vpop.f32.mrb[7].mxu0  ;;  %v6723_v27 = vpop.f32.mrb[7].mxu1 }
 0x110   :  { %5217 = vmatmul.mubr.msk.bf16.vlgmr.msra.gmra.mrb[112].mxu0 %vm147_vm1, %v6363_v13  ;;  %5232 = vmatmul.mubr.msk.bf16.vlgmr.msra.gmra.mrb[112].mxu1 %vm147_vm1, %v6363_v13 }
 0x111   :  { %1043 = vmatprep.mubr.bf16.mxu0 %v8545_v0  ;;  %1216 = vmatprep.mubr.bf16.mxu1 %v8545_v0 }
 0x113   :  { %v6731_v28 = vpop.f32.mrb[8].mxu0  ;;  %v6733_v29 = vpop.f32.mrb[8].mxu1 }
 0x114   :  { %v6735_v31 = vpop.f32.mrb[9].mxu0  ;;  %v6737_v32 = vpop.f32.mrb[9].mxu1 }
 0x115   :  { %v6739_v33 = vpop.f32.mrb[10].mxu0  ;;  %v6741_v35 = vpop.f32.mrb[10].mxu1 }
 0x116   :  { %8553 = vst [vmem:[#allocation8_spill] sm:$0xff] %v6741_v35  ;;  %v6743_v36 = vpop.f32.mrb[11].mxu0  ;;  %v6745_v38 = vpop.f32.mrb[11].mxu1 }
 0x117   :  { %8554 = vst [vmem:[#allocation9_spill] sm:$0xff] %v6743_v36  ;;  %8555 = vst [vmem:[#allocation10_spill] sm:$0xff] %v6745_v38 }
 0x118   :  { %5218 = vmatmul.mubr.msk.bf16.gmra.mrb[116].mxu0 %vm147_vm1, %v6392_v21  ;;  %5233 = vmatmul.mubr.msk.bf16.gmra.mrb[116].mxu1 %vm147_vm1, %v6392_v21 }
 0x119   :  { %1053 = vmatprep.mubr.bf16.mxu0 %v8545_v0  ;;  %1226 = vmatprep.mubr.bf16.mxu1 %v8545_v0 }
 0x11b   :  { %v6753_v13 = vpop.f32.mrb[12].mxu0  ;;  %v6755_v39 = vpop.f32.mrb[12].mxu1 }
 0x11c   :  { %8556 = vst [vmem:[#allocation11_spill] sm:$0xff] %v6753_v13  ;;  %8557 = vst [vmem:[#allocation12_spill] sm:$0xff] %v6755_v39  ;;  %v6757_v41 = vpop.f32.mrb[13].mxu0  ;;  %v6759_v42 = vpop.f32.mrb[13].mxu1 }
 0x11d   :  { %8558 = vst [vmem:[#allocation13_spill] sm:$0xff] %v6757_v41  ;;  %8559 = vst [vmem:[#allocation14_spill] sm:$0xff] %v6759_v42  ;;  %v6761_v44 = vpop.f32.mrb[14].mxu0  ;;  %v6763_v45 = vpop.f32.mrb[14].mxu1 }
 0x11e   :  { %8560 = vst [vmem:[#allocation15_spill] sm:$0xff] %v6761_v44  ;;  %8561 = vst [vmem:[#allocation16_spill] sm:$0xff] %v6763_v45  ;;  %v6765_v47 = vpop.f32.mrb[15].mxu0  ;;  %v6767_v48 = vpop.f32.mrb[15].mxu1 }
 0x11f   :  { %8562 = vst [vmem:[#allocation17_spill] sm:$0xff] %v6765_v47  ;;  %8563 = vst [vmem:[#allocation18_spill] sm:$0xff] %v6767_v48 }
 0x120   :  { %5219 = vmatmul.mubr.msk.bf16.gmra.mrb[120].mxu0 %vm147_vm1, %v6422_v30  ;;  %5234 = vmatmul.mubr.msk.bf16.gmra.mrb[120].mxu1 %vm147_vm1, %v6422_v30 }
 0x121   :  { %1063 = vmatprep.mubr.bf16.mxu0 %v8545_v0  ;;  %1236 = vmatprep.mubr.bf16.mxu1 %v8545_v0 }
 0x123   :  { %v6775_v21 = vpop.f32.mrb[16].mxu0  ;;  %v6777_v50 = vpop.f32.mrb[16].mxu1 }
 0x124   :  { %8564 = vst [vmem:[#allocation19_spill] sm:$0xff] %v6775_v21  ;;  %8565 = vst [vmem:[#allocation20_spill] sm:$0xff] %v6777_v50  ;;  %v6779_v51 = vpop.f32.mrb[17].mxu0  ;;  %v6781_v53 = vpop.f32.mrb[17].mxu1 }
 0x125   :  { %8566 = vst [vmem:[#allocation21_spill] sm:$0xff] %v6779_v51  ;;  %8567 = vst [vmem:[#allocation22_spill] sm:$0xff] %v6781_v53  ;;  %v6783_v54 = vpop.f32.mrb[18].mxu0  ;;  %v6785_v55 = vpop.f32.mrb[18].mxu1 }
 0x126   :  { %8568 = vst [vmem:[#allocation23_spill] sm:$0xff] %v6783_v54  ;;  %8569 = vst [vmem:[#allocation24_spill] sm:$0xff] %v6785_v55  ;;  %v6787_v56 = vpop.f32.mrb[19].mxu0  ;;  %v6789_v58 = vpop.f32.mrb[19].mxu1 }
 0x127   :  { %8570 = vst [vmem:[#allocation25_spill] sm:$0xff] %v6787_v56  ;;  %8571 = vst [vmem:[#allocation26_spill] sm:$0xff] %v6789_v58 }
 0x128   :  { %5220 = vmatmul.mubr.msk.bf16.gmra.mrb[124].mxu0 %vm147_vm1, %v6439_v34  ;;  %5235 = vmatmul.mubr.msk.bf16.gmra.mrb[124].mxu1 %vm147_vm1, %v6439_v34 }
 0x129   :  { %1073 = vmatprep.mubr.bf16.mxu0 %v8545_v0  ;;  %1246 = vmatprep.mubr.bf16.mxu1 %v8545_v0 }
 0x12b   :  { %v6797_v30 = vpop.f32.mrb[20].mxu0  ;;  %v6799_v59 = vpop.f32.mrb[20].mxu1 }
 0x12c   :  { %8572 = vst [vmem:[#allocation27_spill] sm:$0xff] %v6797_v30  ;;  %8573 = vst [vmem:[#allocation28_spill] sm:$0xff] %v6799_v59  ;;  %v6801_v60 = vpop.f32.mrb[21].mxu0  ;;  %v6803_v61 = vpop.f32.mrb[21].mxu1 }
 0x12d   :  { %8574 = vst [vmem:[#allocation29_spill] sm:$0xff] %v6801_v60  ;;  %8575 = vst [vmem:[#allocation30_spill] sm:$0xff] %v6803_v61  ;;  %v6805_v63 = vpop.f32.mrb[22].mxu0  ;;  %v6807_v1 = vpop.f32.mrb[22].mxu1  ;;  %v5803_v60 = vld [vmem:[#allocation2 + $0x48] ss:$16 sps:$4 sm:$0xff]  }
 0x12e   :  { %8576 = vst [vmem:[#allocation31_spill] sm:$0xff] %v6805_v63  ;;  %8577 = vst [vmem:[#allocation32_spill] sm:$0xff] %v6807_v1  ;;  %v6809_v3 = vpop.f32.mrb[23].mxu0  ;;  %v6811_v4 = vpop.f32.mrb[23].mxu1  ;;  %v5793_v63 = vld [vmem:[#allocation2 + $0xc] ss:$16 sps:$4 sm:$0xff]  }
 0x12f   :  { %8578 = vst [vmem:[#allocation33_spill] sm:$0xff] %v6809_v3  ;;  %8579 = vst [vmem:[#allocation34_spill] sm:$0xff] %v6811_v4  ;;  %v5790_v4 = vld [vmem:[#allocation2 + $0x4] ss:$16 sps:$4 sm:$0xff]   ;;  %2288 = vmatprep.subr.bf16.mxu1 %v5793_v63 }
 0x130   :  { %5221 = vmatmul.mubr.msk.bf16.gmra.mrb[128].mxu0 %vm147_vm1, %v6453_v37  ;;  %5236 = vmatmul.mubr.msk.bf16.gmra.mrb[128].mxu1 %vm147_vm1, %v6453_v37 }
 0x131   :  { %1083 = vmatprep.mubr.bf16.mxu0 %v8545_v0  ;;  %1256 = vmatprep.mubr.bf16.mxu1 %v8545_v0  ;;  %v5791_v0 = vld [vmem:[#allocation2 + $0x8] ss:$16 sps:$4 sm:$0xff]  }
 0x132   :  { %2187 = vmatprep.subr.bf16.mxu0 %v5790_v4  ;;  %2289 = vmatpush1.bf16.msra.mxu1 %v5791_v0  ;;  %v5796_v4 = vld [vmem:[#allocation2 + $0x24] ss:$16 sps:$4 sm:$0xff]  }
 0x133   :  { %v6819_v34 = vpop.f32.mrb[24].mxu0  ;;  %v6821_v6 = vpop.f32.mrb[24].mxu1  ;;  %2188 = vmatpush1.bf16.msra.mxu0 %v5788_v9  ;;  %v5797_v9 = vld [vmem:[#allocation2 + $0x28] ss:$16 sps:$4 sm:$0xff]  }
 0x134   :  { %8580 = vst [vmem:[#allocation35_spill] sm:$0xff] %v6819_v34  ;;  %8581 = vst [vmem:[#allocation36_spill] sm:$0xff] %v6821_v6  ;;  %v6823_v7 = vpop.f32.mrb[25].mxu0  ;;  %v6825_v8 = vpop.f32.mrb[25].mxu1  ;;  %2189 = vmatprep.subr.bf16.mxu0 %v5796_v4 }
 0x135   :  { %8582 = vst [vmem:[#allocation37_spill] sm:$0xff] %v6823_v7  ;;  %8583 = vst [vmem:[#allocation38_spill] sm:$0xff] %v6825_v8  ;;  %v6827_v3 = vpop.f32.mrb[26].mxu0  ;;  %v6829_v1 = vpop.f32.mrb[26].mxu1  ;;  %v8588_v8 = vmov 0  }
 0x136   :  { %8584 = vst [vmem:[#allocation39_spill] sm:$0xff] %v6827_v3  ;;  %8585 = vst [vmem:[#allocation40_spill] sm:$0xff] %v6829_v1  ;;  %v6831_v37 = vpop.f32.mrb[27].mxu0  ;;  %v6833_v61 = vpop.f32.mrb[27].mxu1  ;;  %v5799_v7 = vld [vmem:[#allocation2 + $0x2c] ss:$16 sps:$4 sm:$0xff]  }
 0x137   :  { %8586 = vst [vmem:[#allocation41_spill] sm:$0xff] %v6831_v37  ;;  %8587 = vst [vmem:[#allocation42_spill] sm:$0xff] %v6833_v61  ;;  %v5794_v61 = vld [vmem:[#allocation2 + $0x20] ss:$16 sps:$4 sm:$0xff]   ;;  %2290 = vmatprep.subr.bf16.mxu1 %v5799_v7 }
 0x138   :  { %5222 = vmatmul.mubr.msk.bf16.gmra.mrb[132].mxu0 %vm147_vm1, %v6467_v40  ;;  %5237 = vmatmul.mubr.msk.bf16.gmra.mrb[132].mxu1 %vm147_vm1, %v6467_v40 }
 0x139   :  { %1093 = vmatprep.mubr.bf16.mxu0 %v8588_v8  ;;  %1266 = vmatprep.mubr.bf16.mxu1 %v8588_v8 }
 0x13a   :  { %2190 = vmatpush1.bf16.msra.mxu0 %v5794_v61  ;;  %2291 = vmatpush1.bf16.msra.mxu1 %v5797_v9 }
 0x13b   :  { %v6841_v1 = vpop.f32.mrb[28].mxu0  ;;  %v6843_v37 = vpop.f32.mrb[28].mxu1 }
 0x13c   :  { %8589 = vst [vmem:[#allocation43_spill] sm:$0xff] %v6841_v1  ;;  %8590 = vst [vmem:[#allocation44_spill] sm:$0xff] %v6843_v37  ;;  %v6845_v3 = vpop.f32.mrb[29].mxu0  ;;  %v6847_v63 = vpop.f32.mrb[29].mxu1  ;;  %v5802_v37 = vld [vmem:[#allocation2 + $0x44] ss:$16 sps:$4 sm:$0xff]  }
 0x13d   :  { %8591 = vst [vmem:[#allocation45_spill] sm:$0xff] %v6845_v3  ;;  %8592 = vst [vmem:[#allocation46_spill] sm:$0xff] %v6847_v63  ;;  %v6849_v6 = vpop.f32.mrb[30].mxu0  ;;  %v6851_v40 = vpop.f32.mrb[30].mxu1  ;;  %v5800_v1 = vld [vmem:[#allocation2 + $0x40] ss:$16 sps:$4 sm:$0xff]   ;;  %2191 = vmatprep.subr.bf16.mxu0 %v5802_v37 }
 0x13e   :  { %8593 = vst [vmem:[#allocation47_spill] sm:$0xff] %v6849_v6  ;;  %8594 = vst [vmem:[#allocation48_spill] sm:$0xff] %v6851_v40  ;;  %v6853_v34 = vpop.f32.mrb[31].mxu0  ;;  %v6855_v0 = vpop.f32.mrb[31].mxu1  ;;  %v5805_v3 = vld [vmem:[#allocation2 + $0x4c] ss:$16 sps:$4 sm:$0xff]   ;;  %2192 = vmatpush1.bf16.msra.mxu0 %v5800_v1 }
 0x13f   :  { %8595 = vst [vmem:[#allocation49_spill] sm:$0xff] %v6853_v34  ;;  %8596 = vst [vmem:[#allocation50_spill] sm:$0xff] %v6855_v0  ;;  %2292 = vmatprep.subr.bf16.mxu1 %v5805_v3  ;;  %v5808_v37 = vld [vmem:[#allocation2 + $0x64] ss:$16 sps:$4 sm:$0xff]   ;;  %v5806_v3 = vld [vmem:[#allocation2 + $0x60] ss:$16 sps:$4 sm:$0xff]  }
 0x140   :  { %5223 = vmatmul.mubr.msk.bf16.gmra.mrb[136].mxu0 %vm147_vm1, %v6481_v43  ;;  %5238 = vmatmul.mubr.msk.bf16.gmra.mrb[136].mxu1 %vm147_vm1, %v6481_v43  ;;  %v5809_v6 = vld [vmem:[#allocation2 + $0x68] ss:$16 sps:$4 sm:$0xff]  }
 0x141   :  { %1103 = vmatprep.mubr.bf16.mxu0 %v8588_v8  ;;  %1276 = vmatprep.mubr.bf16.mxu1 %v8588_v8 }
 0x142   :  { %2293 = vmatpush1.bf16.msra.mxu1 %v5803_v60  ;;  %2193 = vmatprep.subr.bf16.mxu0 %v5808_v37 }
 0x143   :  { %v6863_v4 = vpop.f32.mrb[32].mxu0  ;;  %v6865_v61 = vpop.f32.mrb[32].mxu1  ;;  %2194 = vmatpush1.bf16.msra.mxu0 %v5806_v3  ;;  %v5820_v3 = vld [vmem:[#allocation2 + $0xa4] ss:$16 sps:$4 sm:$0xff]  }
 0x144   :  { %8597 = vst [vmem:[#allocation51_spill] sm:$0xff] %v6863_v4  ;;  %8598 = vst [vmem:[#allocation52_spill] sm:$0xff] %v6865_v61  ;;  %v6867_v7 = vpop.f32.mrb[33].mxu0  ;;  %v6869_v9 = vpop.f32.mrb[33].mxu1  ;;  %v5811_v4 = vld [vmem:[#allocation2 + $0x6c] ss:$16 sps:$4 sm:$0xff]  }
 0x145   :  { %8599 = vst [vmem:[#allocation53_spill] sm:$0xff] %v6867_v7  ;;  %8600 = vst [vmem:[#allocation54_spill] sm:$0xff] %v6869_v9  ;;  %v6871_v0 = vpop.f32.mrb[34].mxu0  ;;  %v6873_v34 = vpop.f32.mrb[34].mxu1  ;;  %2294 = vmatprep.subr.bf16.mxu1 %v5811_v4  ;;  %v5812_v7 = vld [vmem:[#allocation2 + $0x80] ss:$16 sps:$4 sm:$0xff]  }
 0x146   :  { %8601 = vst [vmem:[#allocation55_spill] sm:$0xff] %v6871_v0  ;;  %8602 = vst [vmem:[#allocation56_spill] sm:$0xff] %v6873_v34  ;;  %v6875_v43 = vpop.f32.mrb[35].mxu0  ;;  %v6877_v40 = vpop.f32.mrb[35].mxu1  ;;  %2295 = vmatpush1.bf16.msra.mxu1 %v5809_v6  ;;  %v5814_v34 = vld [vmem:[#allocation2 + $0x84] ss:$16 sps:$4 sm:$0xff]  }
 0x147   :  { %8603 = vst [vmem:[#allocation57_spill] sm:$0xff] %v6875_v43  ;;  %8604 = vst [vmem:[#allocation58_spill] sm:$0xff] %v6877_v40  ;;  %v5817_v0 = vld [vmem:[#allocation2 + $0x8c] ss:$16 sps:$4 sm:$0xff]   ;;  %v5815_v61 = vld [vmem:[#allocation2 + $0x88] ss:$16 sps:$4 sm:$0xff]   ;;  %2195 = vmatprep.subr.bf16.mxu0 %v5814_v34 }
 0x148   :  { %5224 = vmatmul.mubr.msk.bf16.gmra.mrb[140].mxu0 %vm147_vm1, %v6495_v46  ;;  %5239 = vmatmul.mubr.msk.bf16.gmra.mrb[140].mxu1 %vm147_vm1, %v6495_v46  ;;  %v5818_v6 = vld [vmem:[#allocation2 + $0xa0] ss:$16 sps:$4 sm:$0xff]  }
 0x149   :  { %1113 = vmatprep.mubr.bf16.mxu0 %v8588_v8  ;;  %1286 = vmatprep.mubr.bf16.mxu1 %v8588_v8 }
 0x14a   :  { %2296 = vmatprep.subr.bf16.mxu1 %v5817_v0  ;;  %2196 = vmatpush1.bf16.msra.mxu0 %v5812_v7 }
 0x14b   :  { %v6885_v60 = vpop.f32.mrb[36].mxu0  ;;  %v6887_v1 = vpop.f32.mrb[36].mxu1  ;;  %2297 = vmatpush1.bf16.msra.mxu1 %v5815_v61  ;;  %2197 = vmatprep.subr.bf16.mxu0 %v5820_v3 }
 0x14c   :  { %8605 = vst [vmem:[#allocation59_spill] sm:$0xff] %v6885_v60  ;;  %8606 = vst [vmem:[#allocation60_spill] sm:$0xff] %v6887_v1  ;;  %v6889_v40 = vpop.f32.mrb[37].mxu0  ;;  %v6891_v43 = vpop.f32.mrb[37].mxu1  ;;  %v5827_v1 = vld [vmem:[#allocation2 + $0xc8] ss:$16 sps:$4 sm:$0xff]  }
 0x14d   :  { %8607 = vst [vmem:[#allocation61_spill] sm:$0xff] %v6889_v40  ;;  %8608 = vst [vmem:[#allocation62_spill] sm:$0xff] %v6891_v43  ;;  %v6893_v9 = vpop.f32.mrb[38].mxu0  ;;  %v6895_v46 = vpop.f32.mrb[38].mxu1  ;;  %v5821_v40 = vld [vmem:[#allocation2 + $0xa8] ss:$16 sps:$4 sm:$0xff]  }
 0x14e   :  { %8609 = vst [vmem:[#allocation63_spill] sm:$0xff] %v6893_v9  ;;  %8610 = vst [vmem:[#allocation64_spill] sm:$0xff] %v6895_v46  ;;  %v6897_v37 = vpop.f32.mrb[39].mxu0  ;;  %v6899_v4 = vpop.f32.mrb[39].mxu1  ;;  %v5823_v43 = vld [vmem:[#allocation2 + $0xac] ss:$16 sps:$4 sm:$0xff]   ;;  %2198 = vmatpush1.bf16.msra.mxu0 %v5818_v6 }
 0x14f   :  { %8611 = vst [vmem:[#allocation65_spill] sm:$0xff] %v6897_v37  ;;  %8612 = vst [vmem:[#allocation66_spill] sm:$0xff] %v6899_v4  ;;  %2298 = vmatprep.subr.bf16.mxu1 %v5823_v43  ;;  %v5826_v4 = vld [vmem:[#allocation2 + $0xc4] ss:$16 sps:$4 sm:$0xff]   ;;  %v5829_v37 = vld [vmem:[#allocation2 + $0xcc] ss:$16 sps:$4 sm:$0xff]  }
 0x150   :  { %5225 = vmatmul.mubr.msk.bf16.gmra.mrb[144].mxu0 %vm147_vm1, %v6509_v49  ;;  %5240 = vmatmul.mubr.msk.bf16.gmra.mrb[144].mxu1 %vm147_vm1, %v6509_v49  ;;  %v5824_v9 = vld [vmem:[#allocation2 + $0xc0] ss:$16 sps:$4 sm:$0xff]   ;;  %v5832_v6 = vld [vmem:[#allocation2 + $0xe4] ss:$16 sps:$4 sm:$0xff]  }
 0x151   :  { %1123 = vmatprep.mubr.bf16.mxu0 %v8588_v8  ;;  %1296 = vmatprep.mubr.bf16.mxu1 %v8588_v8 }
 0x152   :  { %2299 = vmatpush1.bf16.msra.mxu1 %v5821_v40  ;;  %2199 = vmatprep.subr.bf16.mxu0 %v5826_v4  ;;  %v5830_v40 = vld [vmem:[#allocation2 + $0xe0] ss:$16 sps:$4 sm:$0xff]  }
 0x153   :  { %v6907_v34 = vpop.f32.mrb[40].mxu0  ;;  %v6909_v0 = vpop.f32.mrb[40].mxu1  ;;  %2300 = vmatprep.subr.bf16.mxu1 %v5829_v37  ;;  %2200 = vmatpush1.bf16.msra.mxu0 %v5824_v9 }
 0x154   :  { %8613 = vst [vmem:[#allocation67_spill] sm:$0xff] %v6907_v34  ;;  %8614 = vst [vmem:[#allocation68_spill] sm:$0xff] %v6909_v0  ;;  %v6911_v61 = vpop.f32.mrb[41].mxu0  ;;  %v6913_v7 = vpop.f32.mrb[41].mxu1  ;;  %2201 = vmatprep.subr.bf16.mxu0 %v5832_v6  ;;  %v5839_v0 = vld [vmem:[#allocation2 + $0x108] ss:$16 sps:$4 sm:$0xff]  }
 0x155   :  { %8615 = vst [vmem:[#allocation69_spill] sm:$0xff] %v6911_v61  ;;  %8616 = vst [vmem:[#allocation70_spill] sm:$0xff] %v6913_v7  ;;  %v6915_v46 = vpop.f32.mrb[42].mxu0  ;;  %v6917_v49 = vpop.f32.mrb[42].mxu1  ;;  %v5833_v61 = vld [vmem:[#allocation2 + $0xe8] ss:$16 sps:$4 sm:$0xff]  }
 0x156   :  { %8617 = vst [vmem:[#allocation71_spill] sm:$0xff] %v6915_v46  ;;  %8618 = vst [vmem:[#allocation72_spill] sm:$0xff] %v6917_v49  ;;  %v6919_v3 = vpop.f32.mrb[43].mxu0  ;;  %v6921_v43 = vpop.f32.mrb[43].mxu1  ;;  %2301 = vmatpush1.bf16.msra.mxu1 %v5827_v1  ;;  %v5835_v7 = vld [vmem:[#allocation2 + $0xec] ss:$16 sps:$4 sm:$0xff]  }
 0x157   :  { %8619 = vst [vmem:[#allocation73_spill] sm:$0xff] %v6919_v3  ;;  %8620 = vst [vmem:[#allocation74_spill] sm:$0xff] %v6921_v43  ;;  %2302 = vmatprep.subr.bf16.mxu1 %v5835_v7  ;;  %2202 = vmatpush1.bf16.msra.mxu0 %v5830_v40  ;;  %v5838_v43 = vld [vmem:[#allocation2 + $0x104] ss:$16 sps:$4 sm:$0xff]   ;;  %v5841_v3 = vld [vmem:[#allocation2 + $0x10c] ss:$16 sps:$4 sm:$0xff]  }
 0x158   :  { %5226 = vmatmul.mubr.msk.bf16.gmra.mrb[148].mxu0 %vm147_vm1, %v6523_v52  ;;  %5241 = vmatmul.mubr.msk.bf16.gmra.mrb[148].mxu1 %vm147_vm1, %v6523_v52  ;;  %v5836_v46 = vld [vmem:[#allocation2 + $0x100] ss:$16 sps:$4 sm:$0xff]   ;;  %v5844_v40 = vld [vmem:[#allocation2 + $0x124] ss:$16 sps:$4 sm:$0xff]   ;;  %v5881_v34 = vld [vmem:[#allocation2 + $0x1e8] ss:$16 sps:$4 sm:$0xff]  }
 0x159   :  { %1133 = vmatprep.mubr.bf16.mxu0 %v8588_v8  ;;  %1306 = vmatprep.mubr.bf16.mxu1 %v8588_v8 }
 0x15a   :  { %2303 = vmatpush1.bf16.msra.mxu1 %v5833_v61  ;;  %2203 = vmatprep.subr.bf16.mxu0 %v5838_v43  ;;  %v5842_v61 = vld [vmem:[#allocation2 + $0x120] ss:$16 sps:$4 sm:$0xff]  }
 0x15b   :  { %v6929_v4 = vpop.f32.mrb[44].mxu0  ;;  %v6931_v37 = vpop.f32.mrb[44].mxu1  ;;  %2304 = vmatprep.subr.bf16.mxu1 %v5841_v3  ;;  %2204 = vmatpush1.bf16.msra.mxu0 %v5836_v46 }
 0x15c   :  { %8621 = vst [vmem:[#allocation75_spill] sm:$0xff] %v6929_v4  ;;  %8622 = vst [vmem:[#allocation76_spill] sm:$0xff] %v6931_v37  ;;  %v6933_v9 = vpop.f32.mrb[45].mxu0  ;;  %v6935_v1 = vpop.f32.mrb[45].mxu1  ;;  %2205 = vmatprep.subr.bf16.mxu0 %v5844_v40  ;;  %v5851_v37 = vld [vmem:[#allocation2 + $0x148] ss:$16 sps:$4 sm:$0xff]  }
 0x15d   :  { %8623 = vst [vmem:[#allocation77_spill] sm:$0xff] %v6933_v9  ;;  %8624 = vst [vmem:[#allocation78_spill] sm:$0xff] %v6935_v1  ;;  %v6937_v49 = vpop.f32.mrb[46].mxu0  ;;  %v6939_v52 = vpop.f32.mrb[46].mxu1  ;;  %v5845_v9 = vld [vmem:[#allocation2 + $0x128] ss:$16 sps:$4 sm:$0xff]  }
 0x15e   :  { %8625 = vst [vmem:[#allocation79_spill] sm:$0xff] %v6937_v49  ;;  %8626 = vst [vmem:[#allocation80_spill] sm:$0xff] %v6939_v52  ;;  %v6941_v6 = vpop.f32.mrb[47].mxu0  ;;  %v6943_v7 = vpop.f32.mrb[47].mxu1  ;;  %2305 = vmatpush1.bf16.msra.mxu1 %v5839_v0  ;;  %v5847_v1 = vld [vmem:[#allocation2 + $0x12c] ss:$16 sps:$4 sm:$0xff]  }
 0x15f   :  { %8627 = vst [vmem:[#allocation81_spill] sm:$0xff] %v6941_v6  ;;  %8628 = vst [vmem:[#allocation82_spill] sm:$0xff] %v6943_v7  ;;  %2306 = vmatprep.subr.bf16.mxu1 %v5847_v1  ;;  %2206 = vmatpush1.bf16.msra.mxu0 %v5842_v61  ;;  %v5850_v7 = vld [vmem:[#allocation2 + $0x144] ss:$16 sps:$4 sm:$0xff]   ;;  %v5853_v6 = vld [vmem:[#allocation2 + $0x14c] ss:$16 sps:$4 sm:$0xff]  }
 0x160   :  { %5227 = vmatmul.mubr.msk.bf16.gmra.mrb[152].mxu0 %vm147_vm1, %v6543_v57  ;;  %5242 = vmatmul.mubr.msk.bf16.gmra.mrb[152].mxu1 %vm147_vm1, %v6543_v57  ;;  %v5848_v49 = vld [vmem:[#allocation2 + $0x140] ss:$16 sps:$4 sm:$0xff]   ;;  %v5859_v61 = vld [vmem:[#allocation2 + $0x16c] ss:$16 sps:$4 sm:$0xff]  }
 0x161   :  { %1143 = vmatprep.mubr.bf16.mxu0 %v8588_v8  ;;  %1316 = vmatprep.mubr.bf16.mxu1 %v8588_v8  ;;  %v5878_v4 = vld [vmem:[#allocation2 + $0x1e0] ss:$16 sps:$4 sm:$0xff]  }
 0x162   :  { %2307 = vmatpush1.bf16.msra.mxu1 %v5845_v9  ;;  %2207 = vmatprep.subr.bf16.mxu0 %v5850_v7  ;;  %v5856_v9 = vld [vmem:[#allocation2 + $0x164] ss:$16 sps:$4 sm:$0xff]  }
 0x163   :  { %v6951_v43 = vpop.f32.mrb[48].mxu0  ;;  %v6953_v3 = vpop.f32.mrb[48].mxu1  ;;  %2308 = vmatprep.subr.bf16.mxu1 %v5853_v6  ;;  %2208 = vmatpush1.bf16.msra.mxu0 %v5848_v49 }
 0x164   :  { %8629 = vst [vmem:[#allocation83_spill] sm:$0xff] %v6951_v43  ;;  %8630 = vst [vmem:[#allocation84_spill] sm:$0xff] %v6953_v3  ;;  %v6955_v46 = vpop.f32.mrb[49].mxu0  ;;  %v6957_v0 = vpop.f32.mrb[49].mxu1  ;;  %2209 = vmatprep.subr.bf16.mxu0 %v5856_v9  ;;  %v5862_v9 = vld [vmem:[#allocation2 + $0x184] ss:$16 sps:$4 sm:$0xff]  }
 0x165   :  { %8631 = vst [vmem:[#allocation85_spill] sm:$0xff] %v6955_v46  ;;  %8632 = vst [vmem:[#allocation86_spill] sm:$0xff] %v6957_v0  ;;  %v6959_v52 = vpop.f32.mrb[50].mxu0  ;;  %v6961_v57 = vpop.f32.mrb[50].mxu1  ;;  %v5869_v46 = vld [vmem:[#allocation2 + $0x1a8] ss:$16 sps:$4 sm:$0xff]  }
 0x166   :  { %8633 = vst [vmem:[#allocation87_spill] sm:$0xff] %v6959_v52  ;;  %8634 = vst [vmem:[#allocation88_spill] sm:$0xff] %v6961_v57  ;;  %v6963_v40 = vpop.f32.mrb[51].mxu0  ;;  %v6965_v1 = vpop.f32.mrb[51].mxu1  ;;  %2309 = vmatpush1.bf16.msra.mxu1 %v5851_v37  ;;  %v5854_v57 = vld [vmem:[#allocation2 + $0x160] ss:$16 sps:$4 sm:$0xff]  }
 0x167   :  { %8635 = vst [vmem:[#allocation89_spill] sm:$0xff] %v6963_v40  ;;  %8636 = vst [vmem:[#allocation90_spill] sm:$0xff] %v6965_v1  ;;  %v5857_v40 = vld [vmem:[#allocation2 + $0x168] ss:$16 sps:$4 sm:$0xff]   ;;  %2310 = vmatprep.subr.bf16.mxu1 %v5859_v61  ;;  %2210 = vmatpush1.bf16.msra.mxu0 %v5854_v57  ;;  %v5865_v61 = vld [vmem:[#allocation2 + $0x18c] ss:$16 sps:$4 sm:$0xff]  }
 0x168   :  { %5228 = vmatmul.mubr.msk.bf16.gmra.mrb[156].mxu0 %vm147_vm1, %v6559_v62  ;;  %5243 = vmatmul.mubr.msk.bf16.gmra.mrb[156].mxu1 %vm147_vm1, %v6559_v62  ;;  %v5860_v57 = vld [vmem:[#allocation2 + $0x180] ss:$16 sps:$4 sm:$0xff]   ;;  %v5883_v43 = vld [vmem:[#allocation2 + $0x1ec] ss:$16 sps:$4 sm:$0xff]  }
 0x169   :  { %1153 = vmatprep.mubr.bf16.mxu0 %v8588_v8  ;;  %1326 = vmatprep.mubr.bf16.mxu1 %v8588_v8 }
 0x16a   :  { %2311 = vmatpush1.bf16.msra.mxu1 %v5857_v40  ;;  %v5863_v40 = vld [vmem:[#allocation2 + $0x188] ss:$16 sps:$4 sm:$0xff]   ;;  %2211 = vmatprep.subr.bf16.mxu0 %v5862_v9  ;;  %v5874_v9 = vld [vmem:[#allocation2 + $0x1c4] ss:$16 sps:$4 sm:$0xff]  }
 0x16b   :  { %v6973_v7 = vpop.f32.mrb[52].mxu0  ;;  %v6975_v49 = vpop.f32.mrb[52].mxu1  ;;  %2312 = vmatprep.subr.bf16.mxu1 %v5865_v61  ;;  %2212 = vmatpush1.bf16.msra.mxu0 %v5860_v57  ;;  %v5877_v61 = vld [vmem:[#allocation2 + $0x1cc] ss:$16 sps:$4 sm:$0xff]  }
 0x16c   :  { %8637 = vst [vmem:[#allocation91_spill] sm:$0xff] %v6973_v7  ;;  %8638 = vst [vmem:[#allocation92_spill] sm:$0xff] %v6975_v49  ;;  %v6977_v37 = vpop.f32.mrb[53].mxu0  ;;  %v6979_v6 = vpop.f32.mrb[53].mxu1  ;;  %v5866_v7 = vld [vmem:[#allocation2 + $0x1a0] ss:$16 sps:$4 sm:$0xff]  }
 0x16d   :  { %8639 = vst [vmem:[#allocation93_spill] sm:$0xff] %v6977_v37  ;;  %8640 = vst [vmem:[#allocation94_spill] sm:$0xff] %v6979_v6  ;;  %v371_v62 = vpop.f32.mrb[54].mxu0  ;;  %v542_v1 = vpop.f32.mrb[54].mxu1  ;;  %v5868_v6 = vld [vmem:[#allocation2 + $0x1a4] ss:$16 sps:$4 sm:$0xff]  }
 0x16e   :  { %v372_v52 = vpop.f32.mrb[55].mxu0  ;;  %v543_v0 = vpop.f32.mrb[55].mxu1  ;;  %2313 = vmatpush1.bf16.msra.mxu1 %v5863_v40  ;;  %v5871_v37 = vld [vmem:[#allocation2 + $0x1ac] ss:$16 sps:$4 sm:$0xff]   ;;  %2213 = vmatprep.subr.bf16.mxu0 %v5868_v6 }
 0x16f   :  { %2314 = vmatprep.subr.bf16.mxu1 %v5871_v37  ;;  %2214 = vmatpush1.bf16.msra.mxu0 %v5866_v7 }
 0x170   :  { %5229 = vmatmul.mubr.msk.bf16.gmra.mrb[160].mxu0 %vm147_vm1, %v6573_v2  ;;  %5244 = vmatmul.mubr.msk.bf16.gmra.mrb[160].mxu1 %vm147_vm1, %v6573_v2 }
 0x171   :  { %1163 = vmatprep.mubr.bf16.mxu0 %v8588_v8  ;;  %1336 = vmatprep.mubr.bf16.mxu1 %v8588_v8 }
 0x172   :  { %2315 = vmatpush1.bf16.msra.mxu1 %v5869_v46  ;;  %2215 = vmatprep.subr.bf16.mxu0 %v5874_v9 }
 0x173   :  { %v645_v62 = vpop.f32.mrb[56].mxu0  ;;  %v816_v1 = vpop.f32.mrb[56].mxu1  ;;  %2316 = vmatprep.subr.bf16.mxu1 %v5877_v61 }
 0x174   :  { %v646_v52 = vpop.f32.mrb[57].mxu0  ;;  %v817_v0 = vpop.f32.mrb[57].mxu1  ;;  %v5872_v62 = vld [vmem:[#allocation2 + $0x1c0] ss:$16 sps:$4 sm:$0xff]   ;;  %v5875_v1 = vld [vmem:[#allocation2 + $0x1c8] ss:$16 sps:$4 sm:$0xff]  }
 0x175   :  { %v6987_v49 = vpop.f32.mrb[58].mxu0  ;;  %v6989_v2 = vpop.f32.mrb[58].mxu1  ;;  %2216 = vmatpush1.bf16.msra.mxu0 %v5872_v62  ;;  %v5880_v0 = vld [vmem:[#allocation2 + $0x1e4] ss:$16 sps:$4 sm:$0xff]  }
 0x176   :  { %v6991_v3 = vpop.f32.mrb[59].mxu0  ;;  %v6993_v8 = vpop.f32.mrb[59].mxu1  ;;  %2317 = vmatpush1.bf16.msra.mxu1 %v5875_v1  ;;  %2217 = vmatprep.subr.bf16.mxu0 %v5880_v0 }
 0x177   :  { %2318 = vmatprep.subr.bf16.mxu1 %v5883_v43 }
 0x178   :  { %5230 = vmatmul.mubr.msk.bf16.gmra.mrb[164].mxu0 %vm147_vm1, %v6587_v5  ;;  %5245 = vmatmul.mubr.msk.bf16.gmra.mrb[164].mxu1 %vm147_vm1, %v6587_v5 }
 0x179   :  { %2218 = vmatpush1.bf16.msra.mxu0 %v5878_v4 }
 0x17a   :  { %2319 = vmatpush1.bf16.msra.mxu1 %v5881_v34 }
 0x17b   :  { %v6999_v57 = vpop.f32.mrb[60].mxu0  ;;  %v7001_v40 = vpop.f32.mrb[60].mxu1 }
 0x17c   :  { %v7003_v52 = vpop.f32.mrb[61].mxu0  ;;  %v7005_v6 = vpop.f32.mrb[61].mxu1 }
 0x17d   :  { %v7007_v46 = vpop.f32.mrb[62].mxu0  ;;  %v7009_v7 = vpop.f32.mrb[62].mxu1 }
 0x17e   :  { %v7011_v5 = vpop.f32.mrb[63].mxu0  ;;  %v7013_v37 = vpop.f32.mrb[63].mxu1 }
 0x183   :  { %v7015_v9 = vpop.f32.mrb[64].mxu0  ;;  %v7017_v61 = vpop.f32.mrb[64].mxu1 }
 0x184   :  { %v7019_v60 = vpop.f32.mrb[65].mxu0  ;;  %v7021_v62 = vpop.f32.mrb[65].mxu1 }
 0x185   :  { %v7023_v1 = vpop.f32.mrb[66].mxu0  ;;  %v7025_v63 = vpop.f32.mrb[66].mxu1 }
 0x186   :  { %v7027_v59 = vpop.f32.mrb[67].mxu0  ;;  %v7029_v30 = vpop.f32.mrb[67].mxu1 }
 0x18b   :  { %v7031_v0 = vpop.f32.mrb[68].mxu0  ;;  %v7033_v4 = vpop.f32.mrb[68].mxu1 }
 0x18c   :  { %v7035_v34 = vpop.f32.mrb[69].mxu0  ;;  %v7037_v43 = vpop.f32.mrb[69].mxu1 }
 0x18d   :  { %v7039_v58 = vpop.f32.mrb[70].mxu0  ;;  %v7041_v56 = vpop.f32.mrb[70].mxu1 }
 0x18e   :  { %8641 = vst [vmem:[#allocation95_spill] sm:$0xff] %v7039_v58  ;;  %8642 = vst [vmem:[#allocation96_spill] sm:$0xff] %v7041_v56  ;;  %v7043_v55 = vpop.f32.mrb[71].mxu0  ;;  %v7045_v54 = vpop.f32.mrb[71].mxu1 }
 0x18f   :  { %8643 = vst [vmem:[#allocation97_spill] sm:$0xff] %v7043_v55  ;;  %8644 = vst [vmem:[#allocation98_spill] sm:$0xff] %v7045_v54 }
 0x193   :  { %v7047_v53 = vpop.f32.mrb[72].mxu0  ;;  %v7049_v51 = vpop.f32.mrb[72].mxu1 }
 0x194   :  { %8645 = vst [vmem:[#allocation99_spill] sm:$0xff] %v7047_v53  ;;  %8646 = vst [vmem:[#allocation100_spill] sm:$0xff] %v7049_v51  ;;  %v7051_v50 = vpop.f32.mrb[73].mxu0  ;;  %v7053_v21 = vpop.f32.mrb[73].mxu1 }
 0x195   :  { %8647 = vst [vmem:[#allocation101_spill] sm:$0xff] %v7051_v50  ;;  %8648 = vst [vmem:[#allocation102_spill] sm:$0xff] %v7053_v21  ;;  %v7055_v48 = vpop.f32.mrb[74].mxu0  ;;  %v7057_v47 = vpop.f32.mrb[74].mxu1 }
 0x196   :  { %8649 = vst [vmem:[#allocation103_spill] sm:$0xff] %v7055_v48  ;;  %8650 = vst [vmem:[#allocation104_spill] sm:$0xff] %v7057_v47  ;;  %v7059_v45 = vpop.f32.mrb[75].mxu0  ;;  %v7061_v44 = vpop.f32.mrb[75].mxu1 }
 0x197   :  { %8651 = vst [vmem:[#allocation105_spill] sm:$0xff] %v7059_v45  ;;  %8652 = vst [vmem:[#allocation106_spill] sm:$0xff] %v7061_v44 }
 0x19b   :  { %v7063_v42 = vpop.f32.mrb[76].mxu0  ;;  %v7065_v41 = vpop.f32.mrb[76].mxu1 }
 0x19c   :  { %8653 = vst [vmem:[#allocation107_spill] sm:$0xff] %v7063_v42  ;;  %8654 = vst [vmem:[#allocation108_spill] sm:$0xff] %v7065_v41  ;;  %v7067_v39 = vpop.f32.mrb[77].mxu0  ;;  %v7069_v53 = vpop.f32.mrb[77].mxu1 }
 0x19d   :  { %8655 = vst [vmem:[#allocation109_spill] sm:$0xff] %v7067_v39  ;;  %8656 = vst [vmem:[#allocation110_spill] sm:$0xff] %v7069_v53  ;;  %v7071_v51 = vpop.f32.mrb[78].mxu0  ;;  %v7073_v50 = vpop.f32.mrb[78].mxu1 }
 0x19e   :  { %8657 = vst [vmem:[#allocation111_spill] sm:$0xff] %v7071_v51  ;;  %8658 = vst [vmem:[#allocation112_spill] sm:$0xff] %v7073_v50  ;;  %v7075_v21 = vpop.f32.mrb[79].mxu0  ;;  %v7077_v48 = vpop.f32.mrb[79].mxu1 }
 0x19f   :  { %8659 = vst [vmem:[#allocation113_spill] sm:$0xff] %v7075_v21  ;;  %8660 = vst [vmem:[#allocation114_spill] sm:$0xff] %v7077_v48 }
 0x1a3   :  { %v7079_v47 = vpop.f32.mrb[80].mxu0  ;;  %v7081_v45 = vpop.f32.mrb[80].mxu1 }
 0x1a4   :  { %8661 = vst [vmem:[#allocation115_spill] sm:$0xff] %v7079_v47  ;;  %8662 = vst [vmem:[#allocation116_spill] sm:$0xff] %v7081_v45  ;;  %v7083_v44 = vpop.f32.mrb[81].mxu0  ;;  %v7085_v42 = vpop.f32.mrb[81].mxu1 }
 0x1a5   :  { %8663 = vst [vmem:[#allocation117_spill] sm:$0xff] %v7083_v44  ;;  %8664 = vst [vmem:[#allocation118_spill] sm:$0xff] %v7085_v42  ;;  %v7087_v41 = vpop.f32.mrb[82].mxu0  ;;  %v7089_v39 = vpop.f32.mrb[82].mxu1 }
 0x1a6   :  { %8665 = vst [vmem:[#allocation119_spill] sm:$0xff] %v7087_v41  ;;  %8666 = vst [vmem:[#allocation120_spill] sm:$0xff] %v7089_v39  ;;  %v7091_v53 = vpop.f32.mrb[83].mxu0  ;;  %v7093_v51 = vpop.f32.mrb[83].mxu1  ;;  %v5886_v39 = vld [vmem:[#allocation2 + $0x404] ss:$16 sps:$4 sm:$0xff]  }
 0x1a7   :  { %8667 = vst [vmem:[#allocation121_spill] sm:$0xff] %v7091_v53  ;;  %8668 = vst [vmem:[#allocation122_spill] sm:$0xff] %v7093_v51  ;;  %v5889_v53 = vld [vmem:[#allocation2 + $0x40c] ss:$16 sps:$4 sm:$0xff]   ;;  %2839 = vmatprep.subr.bf16.mxu0 %v5886_v39 }
 0x1a8   :  { %2940 = vmatprep.subr.bf16.mxu1 %v5889_v53 }
 0x1ab   :  { %v7095_v50 = vpop.f32.mrb[84].mxu0  ;;  %v7097_v21 = vpop.f32.mrb[84].mxu1 }
 0x1ac   :  { %8669 = vst [vmem:[#allocation123_spill] sm:$0xff] %v7095_v50  ;;  %8670 = vst [vmem:[#allocation124_spill] sm:$0xff] %v7097_v21  ;;  %v7099_v48 = vpop.f32.mrb[85].mxu0  ;;  %v7101_v47 = vpop.f32.mrb[85].mxu1 }
 0x1ad   :  { %8671 = vst [vmem:[#allocation125_spill] sm:$0xff] %v7099_v48  ;;  %8672 = vst [vmem:[#allocation126_spill] sm:$0xff] %v7101_v47  ;;  %v7103_v45 = vpop.f32.mrb[86].mxu0  ;;  %v7105_v44 = vpop.f32.mrb[86].mxu1 }
 0x1ae   :  { %8673 = vst [vmem:[#allocation127_spill] sm:$0xff] %v7103_v45  ;;  %8674 = vst [vmem:[#allocation128_spill] sm:$0xff] %v7105_v44  ;;  %v7107_v42 = vpop.f32.mrb[87].mxu0  ;;  %v7109_v41 = vpop.f32.mrb[87].mxu1 }
 0x1af   :  { %8675 = vst [vmem:[#allocation129_spill] sm:$0xff] %v7107_v42  ;;  %8676 = vst [vmem:[#allocation130_spill] sm:$0xff] %v7109_v41 }
 0x1b3   :  { %v7111_v51 = vpop.f32.mrb[88].mxu0  ;;  %v7113_v50 = vpop.f32.mrb[88].mxu1 }
 0x1b4   :  { %8677 = vst [vmem:[#allocation131_spill] sm:$0xff] %v7111_v51  ;;  %8678 = vst [vmem:[#allocation132_spill] sm:$0xff] %v7113_v50  ;;  %v7115_v21 = vpop.f32.mrb[89].mxu0  ;;  %v7117_v48 = vpop.f32.mrb[89].mxu1 }
 0x1b5   :  { %8679 = vst [vmem:[#allocation133_spill] sm:$0xff] %v7115_v21  ;;  %8680 = vst [vmem:[#allocation134_spill] sm:$0xff] %v7117_v48  ;;  %v7119_v47 = vpop.f32.mrb[90].mxu0  ;;  %v7121_v45 = vpop.f32.mrb[90].mxu1 }
 0x1b6   :  { %8681 = vst [vmem:[#allocation135_spill] sm:$0xff] %v7119_v47  ;;  %8682 = vst [vmem:[#allocation136_spill] sm:$0xff] %v7121_v45  ;;  %v7123_v44 = vpop.f32.mrb[91].mxu0  ;;  %v7125_v42 = vpop.f32.mrb[91].mxu1 }
 0x1b7   :  { %8683 = vst [vmem:[#allocation137_spill] sm:$0xff] %v7123_v44  ;;  %8684 = vst [vmem:[#allocation138_spill] sm:$0xff] %v7125_v42 }
 0x1bb   :  { %v7127_v41 = vpop.f32.mrb[92].mxu0  ;;  %v7129_v39 = vpop.f32.mrb[92].mxu1 }
 0x1bc   :  { %8685 = vst [vmem:[#allocation139_spill] sm:$0xff] %v7127_v41  ;;  %8686 = vst [vmem:[#allocation140_spill] sm:$0xff] %v7129_v39  ;;  %v7131_v53 = vpop.f32.mrb[93].mxu0  ;;  %v7133_v51 = vpop.f32.mrb[93].mxu1 }
 0x1bd   :  { %8687 = vst [vmem:[#allocation141_spill] sm:$0xff] %v7131_v53  ;;  %8688 = vst [vmem:[#allocation142_spill] sm:$0xff] %v7133_v51  ;;  %v7135_v50 = vpop.f32.mrb[94].mxu0  ;;  %v7137_v21 = vpop.f32.mrb[94].mxu1 }
 0x1be   :  { %8689 = vst [vmem:[#allocation143_spill] sm:$0xff] %v7135_v50  ;;  %8690 = vst [vmem:[#allocation144_spill] sm:$0xff] %v7137_v21  ;;  %v7139_v48 = vpop.f32.mrb[95].mxu0  ;;  %v7141_v47 = vpop.f32.mrb[95].mxu1 }
 0x1bf   :  { %8691 = vst [vmem:[#allocation145_spill] sm:$0xff] %v7139_v48  ;;  %8692 = vst [vmem:[#allocation146_spill] sm:$0xff] %v7141_v47 }
 0x1c3   :  { %v7143_v45 = vpop.f32.mrb[96].mxu0  ;;  %v7145_v44 = vpop.f32.mrb[96].mxu1 }
 0x1c4   :  { %8693 = vst [vmem:[#allocation147_spill] sm:$0xff] %v7143_v45  ;;  %8694 = vst [vmem:[#allocation148_spill] sm:$0xff] %v7145_v44  ;;  %v7147_v42 = vpop.f32.mrb[97].mxu0  ;;  %v7149_v41 = vpop.f32.mrb[97].mxu1 }
 0x1c5   :  { %8695 = vst [vmem:[#allocation149_spill] sm:$0xff] %v7147_v42  ;;  %8696 = vst [vmem:[#allocation150_spill] sm:$0xff] %v7149_v41  ;;  %v7151_v39 = vpop.f32.mrb[98].mxu0  ;;  %v7153_v53 = vpop.f32.mrb[98].mxu1 }
 0x1c6   :  { %8697 = vst [vmem:[#allocation151_spill] sm:$0xff] %v7151_v39  ;;  %8698 = vst [vmem:[#allocation152_spill] sm:$0xff] %v7153_v53  ;;  %v7155_v51 = vpop.f32.mrb[99].mxu0  ;;  %v7157_v50 = vpop.f32.mrb[99].mxu1 }
 0x1c7   :  { %8699 = vst [vmem:[#allocation153_spill] sm:$0xff] %v7155_v51  ;;  %8700 = vst [vmem:[#allocation154_spill] sm:$0xff] %v7157_v50 }
 0x1cb   :  { %v7159_v21 = vpop.f32.mrb[100].mxu0  ;;  %v7161_v48 = vpop.f32.mrb[100].mxu1 }
 0x1cc   :  { %8701 = vst [vmem:[#allocation155_spill] sm:$0xff] %v7159_v21  ;;  %8702 = vst [vmem:[#allocation156_spill] sm:$0xff] %v7161_v48  ;;  %v7163_v47 = vpop.f32.mrb[101].mxu0  ;;  %v7165_v45 = vpop.f32.mrb[101].mxu1 }
 0x1cd   :  { %8703 = vst [vmem:[#allocation157_spill] sm:$0xff] %v7163_v47  ;;  %8704 = vst [vmem:[#allocation158_spill] sm:$0xff] %v7165_v45  ;;  %v7167_v44 = vpop.f32.mrb[102].mxu0  ;;  %v7169_v42 = vpop.f32.mrb[102].mxu1 }
 0x1ce   :  { %8705 = vst [vmem:[#allocation159_spill] sm:$0xff] %v7167_v44  ;;  %8706 = vst [vmem:[#allocation160_spill] sm:$0xff] %v7169_v42  ;;  %v7171_v41 = vpop.f32.mrb[103].mxu0  ;;  %v7173_v39 = vpop.f32.mrb[103].mxu1  ;;  %v1461_v42 = vlaneseq }
 0x1cf   :  { %8707 = vst [vmem:[#allocation161_spill] sm:$0xff] %v7171_v41  ;;  %8708 = vst [vmem:[#allocation162_spill] sm:$0xff] %v7173_v39 }
 0x1d0   :  { %v7191_v41 = vshrl.u32 %v1461_v42, 7 }
 0x1d2   :  { %8717 = vst [vmem:[#allocation171_spill] sm:$0xff] %v7191_v41  ;;  %v8548_v42 = vsub.s32 2, %v7191_v41 }
 0x1d3   :  { %v7175_v53 = vpop.f32.mrb[104].mxu0  ;;  %v7177_v51 = vpop.f32.mrb[104].mxu1 }
 0x1d4   :  { %8709 = vst [vmem:[#allocation163_spill] sm:$0xff] %v7175_v53  ;;  %8710 = vst [vmem:[#allocation164_spill] sm:$0xff] %v7177_v51  ;;  %v7179_v50 = vpop.f32.mrb[105].mxu0  ;;  %v7181_v21 = vpop.f32.mrb[105].mxu1 }
 0x1d5   :  { %8711 = vst [vmem:[#allocation165_spill] sm:$0xff] %v7179_v50  ;;  %8712 = vst [vmem:[#allocation166_spill] sm:$0xff] %v7181_v21  ;;  %v7183_v48 = vpop.f32.mrb[106].mxu0  ;;  %v7185_v47 = vpop.f32.mrb[106].mxu1 }
 0x1d6   :  { %8713 = vst [vmem:[#allocation167_spill] sm:$0xff] %v7183_v48  ;;  %8714 = vst [vmem:[#allocation168_spill] sm:$0xff] %v7185_v47  ;;  %v7187_v45 = vpop.f32.mrb[107].mxu0  ;;  %v7189_v44 = vpop.f32.mrb[107].mxu1 }
 0x1d7   :  { %8715 = vst [vmem:[#allocation169_spill] sm:$0xff] %v7187_v45  ;;  %8716 = vst [vmem:[#allocation170_spill] sm:$0xff] %v7189_v44  ;;  %v8547_v44 = vsub.s32 0, %v7191_v41 }
 0x1db   :  { %v7193_v39 = vpop.f32.mrb[108].mxu0  ;;  %v7195_v53 = vpop.f32.mrb[108].mxu1 }
 0x1dc   :  { %8718 = vst [vmem:[#allocation172_spill] sm:$0xff] %v7193_v39  ;;  %8719 = vst [vmem:[#allocation173_spill] sm:$0xff] %v7195_v53  ;;  %v7197_v51 = vpop.f32.mrb[109].mxu0  ;;  %v7199_v50 = vpop.f32.mrb[109].mxu1  ;;  %v1459_v53 = vld [vmem:[%s8537_s2] sm:$0xf] }
 0x1dd   :  { %8720 = vst [vmem:[#allocation174_spill] sm:$0xff] %v7197_v51  ;;  %8721 = vst [vmem:[#allocation175_spill] sm:$0xff] %v7199_v50  ;;  %v7201_v21 = vpop.f32.mrb[110].mxu0  ;;  %v7203_v48 = vpop.f32.mrb[110].mxu1  ;;  %v8549_v51 = vsub.s32 1, %v7191_v41  ;;  %v8552_v50 = vsub.s32 3, %v7191_v41 }
 0x1de   :  { %8722 = vst [vmem:[#allocation176_spill] sm:$0xff] %v7201_v21  ;;  %8723 = vst [vmem:[#allocation177_spill] sm:$0xff] %v7203_v48  ;;  %v7205_v47 = vpop.f32.mrb[111].mxu0  ;;  %v7207_v45 = vpop.f32.mrb[111].mxu1  ;;  %v7218_v21 = vrot.slane %v1459_v53, %v8547_v44 }
 0x1df   :  { %8724 = vst [vmem:[#allocation178_spill] sm:$0xff] %v7205_v47  ;;  %8725 = vst [vmem:[#allocation179_spill] sm:$0xff] %v7207_v45  ;;  %v7222_v47 = vrot.slane %v1459_v53, %v8548_v42  ;;  %v7226_v39 = vrot.slane %v1459_v53, %v8549_v51  ;;  %v7230_v54 = vrot.slane %v1459_v53, %v8552_v50 }
 0x1e3   :  { %v1035_v45 = vpop.f32.mrb[112].mxu0  ;;  %v1208_v48 = vpop.f32.mrb[112].mxu1 }
 0x1e4   :  { %v1347_v13 = vadd.f32 %v1035_v45, %v6987_v49  ;;  %v1349_v55 = vadd.f32 %v1208_v48, %v6989_v2  ;;  %v1037_v44 = vpop.f32.mrb[113].mxu0  ;;  %v1210_v56 = vpop.f32.mrb[113].mxu1 }
 0x1e5   :  { %v1348_v38 = vadd.f32 %v1037_v44, %v6991_v3  ;;  %v1350_v42 = vadd.f32 %v1210_v56, %v6993_v8  ;;  %v1039_v58 = vpop.f32.mrb[114].mxu0  ;;  %v1212_v36 = vpop.f32.mrb[114].mxu1 }
 0x1e6   :  { %v1481_v35 = vadd.f32 %v7218_v21, %v1347_v13  ;;  %v1483_v51 = vadd.f32 %v7222_v47, %v1349_v55  ;;  %v1040_v41 = vadd.f32 %v1039_v58, %v6687_v10  ;;  %v1213_v53 = vadd.f32 %v1212_v36, %v6689_v11  ;;  %v1041_v50 = vpop.f32.mrb[115].mxu0  ;;  %v1214_v45 = vpop.f32.mrb[115].mxu1 }
 0x1e7   :  { %v1482_v48 = vadd.f32 %v7226_v39, %v1348_v38  ;;  %v1484_v49 = vadd.f32 %v7230_v54, %v1350_v42  ;;  %v1042_v44 = vadd.f32 %v1041_v50, %v6691_v12  ;;  %v1215_v56 = vadd.f32 %v1214_v45, %v6693_v14 }
 0x1e8   :  { %v1593_v3 = vmax.f32 %v1481_v35, 0.0  ;;  %v1595_v2 = vmax.f32 %v1483_v51, 0.0  ;;  %v1351_v13 = vadd.f32 %v1040_v41, %v6999_v57  ;;  %v1353_v55 = vadd.f32 %v1213_v53, %v7001_v40 }
 0x1e9   :  { %v1594_v8 = vmax.f32 %v1482_v48, 0.0  ;;  %v1596_v10 = vmax.f32 %v1484_v49, 0.0  ;;  %v1352_v11 = vadd.f32 %v1042_v44, %v7003_v52  ;;  %v1354_v36 = vadd.f32 %v1215_v56, %v7005_v6 }
 0x1ea   :  { %v7248_v58 = vmax.f32 %v1593_v3, %v1595_v2  ;;  %v1485_v38 = vadd.f32 %v7218_v21, %v1351_v13  ;;  %v1487_v12 = vadd.f32 %v7222_v47, %v1353_v55 }
 0x1eb   :  { %v7252_v50 = vmax.f32 %v1594_v8, %v1596_v10  ;;  %v1486_v14 = vadd.f32 %v7226_v39, %v1352_v11  ;;  %v1488_v35 = vadd.f32 %v7230_v54, %v1354_v36  ;;  %v1045_v41 = vpop.f32.mrb[116].mxu0  ;;  %v1218_v51 = vpop.f32.mrb[116].mxu1 }
 0x1ec   :  { %v1597_v57 = vmax.f32 %v1485_v38, 0.0  ;;  %v1599_v40 = vmax.f32 %v1487_v12, 0.0  ;;  %v1046_v52 = vadd.f32 %v1045_v41, %v6695_v15  ;;  %v1219_v6 = vadd.f32 %v1218_v51, %v6697_v16  ;;  %v1047_v42 = vpop.f32.mrb[117].mxu0  ;;  %v1220_v53 = vpop.f32.mrb[117].mxu1 }
 0x1ed   :  { %v1598_v45 = vmax.f32 %v1486_v14, 0.0  ;;  %v1600_v48 = vmax.f32 %v1488_v35, 0.0  ;;  %v1048_v49 = vadd.f32 %v1047_v42, %v6699_v17  ;;  %v1221_v44 = vadd.f32 %v1220_v53, %v6701_v18  ;;  %v1049_v56 = vpop.f32.mrb[118].mxu0  ;;  %v1222_v3 = vpop.f32.mrb[118].mxu1 }
 0x1ee   :  { %v7260_v2 = vmax.f32 %v1597_v57, %v1599_v40  ;;  %v1355_v13 = vadd.f32 %v1046_v52, %v7007_v46  ;;  %v1357_v55 = vadd.f32 %v1219_v6, %v7009_v7  ;;  %v1050_v15 = vadd.f32 %v1049_v56, %v6709_v19  ;;  %v1051_v8 = vpop.f32.mrb[119].mxu0  ;;  %v1224_v16 = vpop.f32.mrb[119].mxu1 }
 0x1ef   :  { %v7265_v10 = vmax.f32 %v1598_v45, %v1600_v48  ;;  %v1356_v11 = vadd.f32 %v1048_v49, %v7011_v5  ;;  %v1358_v17 = vadd.f32 %v1221_v44, %v7013_v37  ;;  %v1223_v18 = vadd.f32 %v1222_v3, %v6711_v20 }
 0x1f0   :  { %v1761_v36 = vmax.f32 %v7248_v58, %v7260_v2  ;;  %v1489_v38 = vadd.f32 %v7218_v21, %v1355_v13  ;;  %v1491_v46 = vadd.f32 %v7222_v47, %v1357_v55  ;;  %v1359_v7 = vadd.f32 %v1050_v15, %v7015_v9 }
 0x1f1   :  { %v1762_v19 = vmax.f32 %v7252_v50, %v7265_v10  ;;  %v1490_v12 = vadd.f32 %v7226_v39, %v1356_v11  ;;  %v1492_v5 = vadd.f32 %v7230_v54, %v1358_v17  ;;  %v1361_v37 = vadd.f32 %v1223_v18, %v7017_v61  ;;  %v8730_v10 = vld [vmem:[#allocation96_spill] sm:$0xff] }
 0x1f2   :  { %v1601_v14 = vmax.f32 %v1489_v38, 0.0  ;;  %v1603_v20 = vmax.f32 %v1491_v46, 0.0  ;;  %v1493_v35 = vadd.f32 %v7218_v21, %v1359_v7  ;;  %v1052_v58 = vadd.f32 %v1051_v8, %v6713_v22 }
 0x1f3   :  { %v1602_v41 = vmax.f32 %v1490_v12, 0.0  ;;  %v1604_v51 = vmax.f32 %v1492_v5, 0.0  ;;  %v1495_v57 = vadd.f32 %v7222_v47, %v1361_v37  ;;  %v1225_v9 = vadd.f32 %v1224_v16, %v6715_v23  ;;  %v1055_v40 = vpop.f32.mrb[120].mxu0  ;;  %v1228_v52 = vpop.f32.mrb[120].mxu1 }
 0x1f4   :  { %v1709_v6 = vmax.f32 %v1601_v14, %v1603_v20  ;;  %v1605_v42 = vmax.f32 %v1493_v35, 0.0  ;;  %v1360_v53 = vadd.f32 %v1052_v58, %v7019_v60  ;;  %v1056_v61 = vadd.f32 %v1055_v40, %v6717_v24  ;;  %v1057_v45 = vpop.f32.mrb[121].mxu0  ;;  %v1230_v48 = vpop.f32.mrb[121].mxu1 }
 0x1f5   :  { %v1710_v49 = vmax.f32 %v1602_v41, %v1604_v51  ;;  %v1607_v44 = vmax.f32 %v1495_v57, 0.0  ;;  %v1362_v22 = vadd.f32 %v1225_v9, %v7021_v62  ;;  %v1229_v56 = vadd.f32 %v1228_v52, %v6719_v25  ;;  %v1059_v3 = vpop.f32.mrb[122].mxu0  ;;  %v1232_v2 = vpop.f32.mrb[122].mxu1 }
 0x1f6   :  { %v1494_v23 = vadd.f32 %v7226_v39, %v1360_v53  ;;  %v1363_v13 = vadd.f32 %v1056_v61, %v7023_v1  ;;  %v1058_v55 = vadd.f32 %v1057_v45, %v6721_v26  ;;  %v1231_v60 = vadd.f32 %v1230_v48, %v6723_v27  ;;  %v1061_v15 = vpop.f32.mrb[123].mxu0  ;;  %v1234_v24 = vpop.f32.mrb[123].mxu1 }
 0x1f7   :  { %v1711_v8 = vmax.f32 %v1605_v42, %v1607_v44  ;;  %v1496_v16 = vadd.f32 %v7230_v54, %v1362_v22  ;;  %v1365_v11 = vadd.f32 %v1229_v56, %v7025_v63  ;;  %v1060_v62 = vadd.f32 %v1059_v3, %v6731_v28  ;;  %v8727_v22 = vld [vmem:[#allocation9_spill] sm:$0xff]  ;;  %v5884_v3 = vld [vmem:[#allocation2 + $0x400] ss:$16 sps:$4 sm:$0xff]  }
 0x1f8   :  { %v1606_v25 = vmax.f32 %v1494_v23, 0.0  ;;  %v1497_v17 = vadd.f32 %v7218_v21, %v1363_v13  ;;  %v1364_v18 = vadd.f32 %v1058_v55, %v7027_v59  ;;  %v1366_v1 = vadd.f32 %v1231_v60, %v7029_v30  ;;  %v5887_v60 = vld [vmem:[#allocation2 + $0x408] ss:$16 sps:$4 sm:$0xff]  }
 0x1f9   :  { %v1763_v38 = vmax.f32 %v1709_v6, %v1711_v8  ;;  %v1608_v26 = vmax.f32 %v1496_v16, 0.0  ;;  %v1499_v27 = vadd.f32 %v7222_v47, %v1365_v11  ;;  %v1367_v46 = vadd.f32 %v1060_v62, %v7031_v0  ;;  %v8732_v8 = vld [vmem:[#allocation11_spill] sm:$0xff] }
 0x1fa   :  { %v1609_v7 = vmax.f32 %v1497_v17, 0.0  ;;  %v1498_v12 = vadd.f32 %v7226_v39, %v1364_v18  ;;  %v1500_v63 = vadd.f32 %v7230_v54, %v1366_v1  ;;  %v1233_v28 = vadd.f32 %v1232_v2, %v6733_v29  ;;  %v5895_v11 = vld [vmem:[#allocation2 + $0x42c] ss:$16 sps:$4 sm:$0xff]   ;;  %v8733_v18 = vld [vmem:[#allocation98_spill] sm:$0xff] }
 0x1fb   :  { %v7303_v5 = vpack.c.bf16 %v1763_v38, %v1761_v36  ;;  %v1712_v37 = vmax.f32 %v1606_v25, %v1608_v26  ;;  %v1611_v14 = vmax.f32 %v1499_v27, 0.0  ;;  %v1501_v59 = vadd.f32 %v7218_v21, %v1367_v46  ;;  %v1065_v30 = vpop.f32.mrb[124].mxu0  ;;  %v1238_v20 = vpop.f32.mrb[124].mxu1  ;;  %v8734_v46 = vld [vmem:[#allocation99_spill] sm:$0xff] }
 0x1fc   :  { %v1610_v35 = vmax.f32 %v1498_v12, 0.0  ;;  %v1612_v58 = vmax.f32 %v1500_v63, 0.0  ;;  %v1369_v41 = vadd.f32 %v1233_v28, %v7033_v4  ;;  %v1062_v0 = vadd.f32 %v1061_v15, %v6735_v31  ;;  %v1067_v51 = vpop.f32.mrb[125].mxu0  ;;  %v1240_v57 = vpop.f32.mrb[125].mxu1  ;;  %v5892_v15 = vld [vmem:[#allocation2 + $0x424] ss:$16 sps:$4 sm:$0xff]  }
 0x1fd   :  { %v1764_v9 = vmax.f32 %v1710_v49, %v1712_v37  ;;  %v7308_v40 = vmax.f32 %v1609_v7, %v1611_v14  ;;  %v1613_v29 = vmax.f32 %v1501_v59, 0.0  ;;  %v1235_v36 = vadd.f32 %v1234_v24, %v6737_v32  ;;  %v1069_v52 = vpop.f32.mrb[126].mxu0  ;;  %v1242_v6 = vpop.f32.mrb[126].mxu1  ;;  %v8726_v32 = vld [vmem:[#allocation8_spill] sm:$0xff]  ;;  %v8731_v24 = vld [vmem:[#allocation97_spill] sm:$0xff] }
 0x1fe   :  { %v7311_v42 = vmax.f32 %v1610_v35, %v1612_v58  ;;  %v1503_v53 = vadd.f32 %v7222_v47, %v1369_v41  ;;  %v1368_v61 = vadd.f32 %v1062_v0, %v7035_v34  ;;  %v1066_v4 = vadd.f32 %v1065_v30, %v6739_v33  ;;  %v1071_v45 = vpop.f32.mrb[127].mxu0  ;;  %v1244_v31 = vpop.f32.mrb[127].mxu1  ;;  %v8728_v34 = vld [vmem:[#allocation95_spill] sm:$0xff]  ;;  %v8729_v33 = vld [vmem:[#allocation10_spill] sm:$0xff]  ;;  %v8735_v30 = vld [vmem:[#allocation12_spill] sm:$0xff] }
 0x1ff   :  { %v7319_v48 = vpack.c.bf16 %v1764_v9, %v1762_v19  ;;  %v1370_v49 = vadd.f32 %v1235_v36, %v7037_v43  ;;  %v1239_v44 = vadd.f32 %v1238_v20, %v8726_v32  ;;  %v1068_v56 = vadd.f32 %v1067_v51, %v8727_v22  ;;  %v5890_v28 = vld [vmem:[#allocation2 + $0x420] ss:$16 sps:$4 sm:$0xff]   ;;  %v5893_v41 = vld [vmem:[#allocation2 + $0x428] ss:$16 sps:$4 sm:$0xff]  }
 0x200   :  { %v1615_v2 = vmax.f32 %v1503_v53, 0.0  ;;  %v1502_v23 = vadd.f32 %v7226_v39, %v1368_v61  ;;  %v1371_v13 = vadd.f32 %v1066_v4, %v8728_v34  ;;  %v1241_v55 = vadd.f32 %v1240_v57, %v8729_v33  ;;  %v8736_v61 = vld [vmem:[#allocation100_spill] sm:$0xff]  ;;  %v8738_v32 = vld [vmem:[#allocation14_spill] sm:$0xff] }
 0x201   :  { %v1504_v50 = vadd.f32 %v7230_v54, %v1370_v49  ;;  %v1373_v19 = vadd.f32 %v1239_v44, %v8730_v10  ;;  %v1372_v43 = vadd.f32 %v1068_v56, %v8731_v24  ;;  %v1070_v16 = vadd.f32 %v1069_v52, %v8732_v8  ;;  %2219 = vmatprep.mubr.bf16.mxu0 %v7319_v48  ;;  %v5898_v52 = vld [vmem:[#allocation2 + $0x444] ss:$16 sps:$4 sm:$0xff]  }
 0x202   :  { %v7332_v62 = vmax.f32 %v1613_v29, %v1615_v2  ;;  %v1614_v25 = vmax.f32 %v1502_v23, 0.0  ;;  %v1505_v17 = vadd.f32 %v7218_v21, %v1371_v13  ;;  %v1374_v1 = vadd.f32 %v1241_v55, %v8733_v18  ;;  %2320 = vmatprep.mubr.bf16.mxu1 %v7319_v48  ;;  %2220 = vmatmul.mubr.bf16.vlgmr.msra.gmra.mrb[168].mxu0 %v7303_v5  ;;  %v8739_v13 = vld [vmem:[#allocation15_spill] sm:$0xff]  ;;  %v5896_v55 = vld [vmem:[#allocation2 + $0x440] ss:$16 sps:$4 sm:$0xff]   ;;  %v5904_v24 = vld [vmem:[#allocation2 + $0x464] ss:$16 sps:$4 sm:$0xff]  }
 0x203   :  { %v1616_v38 = vmax.f32 %v1504_v50, 0.0  ;;  %v1507_v26 = vadd.f32 %v7222_v47, %v1373_v19  ;;  %v1506_v27 = vadd.f32 %v7226_v39, %v1372_v43  ;;  %v1375_v7 = vadd.f32 %v1070_v16, %v8734_v46  ;;  %2321 = vmatmul.mubr.bf16.vlgmr.msra.gmra.mrb[168].mxu1 %v7303_v5  ;;  %v1075_v12 = vpop.f32.mrb[128].mxu0  ;;  %v1248_v63 = vpop.f32.mrb[128].mxu1  ;;  %2840 = vmatpush1.bf16.msra.mxu0 %v5884_v3  ;;  %v5901_v3 = vld [vmem:[#allocation2 + $0x44c] ss:$16 sps:$4 sm:$0xff]   ;;  %v8743_v16 = vld [vmem:[#allocation16_spill] sm:$0xff] }
 0x204   :  { %v1765_v37 = vmax.f32 %v7308_v40, %v7332_v62  ;;  %v1617_v14 = vmax.f32 %v1505_v17, 0.0  ;;  %v1508_v59 = vadd.f32 %v7230_v54, %v1374_v1  ;;  %v1243_v20 = vadd.f32 %v1242_v6, %v8735_v30  ;;  %v1077_v35 = vpop.f32.mrb[129].mxu0  ;;  %v1250_v58 = vpop.f32.mrb[129].mxu1  ;;  %2941 = vmatpush1.bf16.msra.mxu1 %v5887_v60  ;;  %2841 = vmatprep.subr.bf16.mxu0 %v5892_v15  ;;  %v8737_v6 = vld [vmem:[#allocation13_spill] sm:$0xff]  ;;  %v8742_v43 = vld [vmem:[#allocation103_spill] sm:$0xff]  ;;  %v8745_v18 = vld [vmem:[#allocation18_spill] sm:$0xff] }
 0x205   :  { %v7346_v0 = vmax.f32 %v1614_v25, %v1616_v38  ;;  %v1619_v51 = vmax.f32 %v1507_v26, 0.0  ;;  %v1618_v57 = vmax.f32 %v1506_v27, 0.0  ;;  %v1509_v9 = vadd.f32 %v7218_v21, %v1375_v7  ;;  %v1079_v29 = vpop.f32.mrb[130].mxu0  ;;  %v7349_v36 = vpop.f32.mrb[130].mxu1  ;;  %2942 = vmatprep.subr.bf16.mxu1 %v5895_v11  ;;  %v5899_v19 = vld [vmem:[#allocation2 + $0x448] ss:$16 sps:$4 sm:$0xff]  }
 0x206   :  { %v1620_v53 = vmax.f32 %v1508_v59, 0.0  ;;  %v1377_v4 = vadd.f32 %v1243_v20, %v8736_v61  ;;  %v1072_v49 = vadd.f32 %v1071_v45, %v8737_v6  ;;  %v1245_v44 = vadd.f32 %v1244_v31, %v8738_v32  ;;  %v1081_v22 = vpop.f32.mrb[131].mxu0  ;;  %v7354_v56 = vpop.f32.mrb[131].mxu1  ;;  %v8740_v45 = vld [vmem:[#allocation101_spill] sm:$0xff]  ;;  %v8741_v31 = vld [vmem:[#allocation102_spill] sm:$0xff]  ;;  %v8746_v7 = vld [vmem:[#allocation19_spill] sm:$0xff] }
 0x207   :  { %v1766_v2 = vmax.f32 %v7311_v42, %v7346_v0  ;;  %v1717_v23 = vmax.f32 %v1617_v14, %v1619_v51  ;;  %v1621_v34 = vmax.f32 %v1509_v9, 0.0  ;;  %v1076_v33 = vadd.f32 %v1075_v12, %v8739_v13  ;;  %2842 = vmatpush1.bf16.msra.mxu0 %v5890_v28  ;;  %v8744_v25 = vld [vmem:[#allocation17_spill] sm:$0xff]  ;;  %v8747_v14 = vld [vmem:[#allocation104_spill] sm:$0xff]  ;;  %v8749_v20 = vld [vmem:[#allocation106_spill] sm:$0xff] }
 0x208   :  { %v7359_v60 = vmax.f32 %v1618_v57, %v1620_v53  ;;  %v1511_v15 = vadd.f32 %v7222_v47, %v1377_v4  ;;  %v1376_v50 = vadd.f32 %v1072_v49, %v8740_v45  ;;  %v1378_v10 = vadd.f32 %v1245_v44, %v8741_v31  ;;  %2943 = vmatpush1.bf16.msra.mxu1 %v5893_v41  ;;  %v5907_v38 = vld [vmem:[#allocation2 + $0x46c] ss:$16 sps:$4 sm:$0xff]   ;;  %v5902_v51 = vld [vmem:[#allocation2 + $0x460] ss:$16 sps:$4 sm:$0xff]   ;;  %v5905_v57 = vld [vmem:[#allocation2 + $0x468] ss:$16 sps:$4 sm:$0xff]  }
 0x209   :  { %v1379_v8 = vadd.f32 %v1076_v33, %v8742_v43  ;;  %v1249_v11 = vadd.f32 %v1248_v63, %v8743_v16  ;;  %v1078_v17 = vadd.f32 %v1077_v35, %v8744_v25  ;;  %v1251_v1 = vadd.f32 %v1250_v58, %v8745_v18  ;;  %2843 = vmatprep.subr.bf16.mxu0 %v5898_v52  ;;  %v8748_v30 = vld [vmem:[#allocation105_spill] sm:$0xff]  ;;  %v8750_v61 = vld [vmem:[#allocation107_spill] sm:$0xff]  ;;  %v5910_v49 = vld [vmem:[#allocation2 + $0x484] ss:$16 sps:$4 sm:$0xff]  }
 0x20a   :  { %v1623_v26 = vmax.f32 %v1511_v15, 0.0  ;;  %v1510_v27 = vadd.f32 %v7226_v39, %v1376_v50  ;;  %v1512_v46 = vadd.f32 %v7230_v54, %v1378_v10  ;;  %v1080_v12 = vadd.f32 %v1079_v29, %v8746_v7  ;;  %2944 = vmatprep.subr.bf16.mxu1 %v5901_v3  ;;  %v8751_v31 = vld [vmem:[#allocation20_spill] sm:$0xff]  ;;  %v8755_v7 = vld [vmem:[#allocation22_spill] sm:$0xff]  ;;  %v5919_v0 = vld [vmem:[#allocation2 + $0x4ac] ss:$16 sps:$4 sm:$0xff]  }
 0x20b   :  { %v1513_v28 = vadd.f32 %v7218_v21, %v1379_v8  ;;  %v1381_v59 = vadd.f32 %v1249_v11, %v8747_v14  ;;  %v1380_v63 = vadd.f32 %v1078_v17, %v8748_v30  ;;  %v1382_v35 = vadd.f32 %v1251_v1, %v8749_v20  ;;  %v1085_v41 = vpop.f32.mrb[132].mxu0  ;;  %v1258_v58 = vpop.f32.mrb[132].mxu1  ;;  %2844 = vmatpush1.bf16.msra.mxu0 %v5896_v55  ;;  %v8752_v11 = vld [vmem:[#allocation21_spill] sm:$0xff]  ;;  %v5908_v17 = vld [vmem:[#allocation2 + $0x480] ss:$16 sps:$4 sm:$0xff]  }
 0x20c   :  { %v1719_v9 = vmax.f32 %v1621_v34, %v1623_v26  ;;  %v1622_v52 = vmax.f32 %v1510_v27, 0.0  ;;  %v1624_v53 = vmax.f32 %v1512_v46, 0.0  ;;  %v1383_v4 = vadd.f32 %v1080_v12, %v8750_v61  ;;  %v1087_v29 = vpop.f32.mrb[133].mxu0  ;;  %v1260_v6 = vpop.f32.mrb[133].mxu1  ;;  %2945 = vmatpush1.bf16.msra.mxu1 %v5899_v19  ;;  %2845 = vmatprep.subr.bf16.mxu0 %v5904_v24  ;;  %v5913_v34 = vld [vmem:[#allocation2 + $0x48c] ss:$16 sps:$4 sm:$0xff]  }
 0x20d   :  { %v1625_v32 = vmax.f32 %v1513_v28, 0.0  ;;  %v1515_v44 = vadd.f32 %v7222_v47, %v1381_v59  ;;  %v1514_v3 = vadd.f32 %v7226_v39, %v1380_v63  ;;  %v1516_v13 = vadd.f32 %v7230_v54, %v1382_v35  ;;  %v1089_v33 = vpop.f32.mrb[134].mxu0  ;;  %v7379_v55 = vpop.f32.mrb[134].mxu1  ;;  %2946 = vmatprep.subr.bf16.mxu1 %v5907_v38  ;;  %v8754_v46 = vld [vmem:[#allocation109_spill] sm:$0xff]  ;;  %v8757_v28 = vld [vmem:[#allocation24_spill] sm:$0xff]  ;;  %v8758_v63 = vld [vmem:[#allocation110_spill] sm:$0xff] }
 0x20e   :  { %v1767_v15 = vmax.f32 %v1717_v23, %v1719_v9  ;;  %v1720_v45 = vmax.f32 %v1622_v52, %v1624_v53  ;;  %v1517_v50 = vadd.f32 %v7218_v21, %v1383_v4  ;;  %v1253_v10 = vadd.f32 %v7349_v36, %v8751_v31  ;;  %v7384_v19 = vpop.f32.mrb[135].mxu0  ;;  %v7386_v24 = vpop.f32.mrb[135].mxu1  ;;  %v8753_v36 = vld [vmem:[#allocation108_spill] sm:$0xff]  ;;  %v5911_v59 = vld [vmem:[#allocation2 + $0x488] ss:$16 sps:$4 sm:$0xff]  }
 0x20f   :  { %v1627_v43 = vmax.f32 %v1515_v44, 0.0  ;;  %v1626_v8 = vmax.f32 %v1514_v3, 0.0  ;;  %v1628_v16 = vmax.f32 %v1516_v13, 0.0  ;;  %v1082_v25 = vadd.f32 %v1081_v22, %v8752_v11  ;;  %2846 = vmatpush1.bf16.msra.mxu0 %v5902_v51  ;;  %v8759_v35 = vld [vmem:[#allocation25_spill] sm:$0xff]  ;;  %v5916_v42 = vld [vmem:[#allocation2 + $0x4a4] ss:$16 sps:$4 sm:$0xff]  }
 0x210   :  { %v7392_v23 = vpack.c.bf16 %v1767_v15, %v1765_v37  ;;  %v1768_v18 = vmax.f32 %v7359_v60, %v1720_v45  ;;  %v1629_v1 = vmax.f32 %v1517_v50, 0.0  ;;  %v1385_v38 = vadd.f32 %v1253_v10, %v8753_v36  ;;  %2947 = vmatpush1.bf16.msra.mxu1 %v5905_v57  ;;  %2847 = vmatprep.subr.bf16.mxu0 %v5910_v49  ;;  %v8756_v37 = vld [vmem:[#allocation23_spill] sm:$0xff]  ;;  %v8762_v61 = vld [vmem:[#allocation112_spill] sm:$0xff]  ;;  %v8764_v13 = vld [vmem:[#allocation113_spill] sm:$0xff] }
 0x211   :  { %v7396_v26 = vmax.f32 %v1625_v32, %v1627_v43  ;;  %v7398_v27 = vmax.f32 %v1626_v8, %v1628_v16  ;;  %v1384_v22 = vadd.f32 %v1082_v25, %v8754_v46  ;;  %v1255_v12 = vadd.f32 %v7354_v56, %v8755_v7  ;;  %2948 = vmatprep.subr.bf16.mxu1 %v5913_v34  ;;  %v8760_v56 = vld [vmem:[#allocation26_spill] sm:$0xff]  ;;  %v8761_v53 = vld [vmem:[#allocation111_spill] sm:$0xff] }
 0x212   :  { %v7406_v40 = vpack.c.bf16 %v1768_v18, %v1766_v2  ;;  %v1519_v62 = vadd.f32 %v7222_v47, %v1385_v38  ;;  %v1086_v60 = vadd.f32 %v1085_v41, %v8756_v37  ;;  %v1259_v14 = vadd.f32 %v1258_v58, %v8757_v28  ;;  %v8763_v4 = vld [vmem:[#allocation27_spill] sm:$0xff]  ;;  %v8765_v15 = vld [vmem:[#allocation114_spill] sm:$0xff] }
 0x213   :  { %v1518_v30 = vadd.f32 %v7226_v39, %v1384_v22  ;;  %v1386_v20 = vadd.f32 %v1255_v12, %v8758_v63  ;;  %v1088_v51 = vadd.f32 %v1087_v29, %v8759_v35  ;;  %v1261_v57 = vadd.f32 %v1260_v6, %v8760_v56  ;;  %v1095_v9 = vpop.f32.mrb[136].mxu0  ;;  %v7415_v52 = vpop.f32.mrb[136].mxu1  ;;  %2848 = vmatpush1.bf16.msra.mxu0 %v5908_v17  ;;  %v5914_v6 = vld [vmem:[#allocation2 + $0x4a0] ss:$16 sps:$4 sm:$0xff]   ;;  %v5922_v31 = vld [vmem:[#allocation2 + $0x4c4] ss:$16 sps:$4 sm:$0xff]  }
 0x214   :  { %v1631_v2 = vmax.f32 %v1519_v62, 0.0  ;;  %v1387_v41 = vadd.f32 %v1086_v60, %v8761_v53  ;;  %v1389_v58 = vadd.f32 %v1259_v14, %v8762_v61  ;;  %v1090_v49 = vadd.f32 %v1089_v33, %v8763_v4  ;;  %2229 = vmatprep.mubr.bf16.mxu0 %v7406_v40  ;;  %2330 = vmatprep.mubr.bf16.mxu1 %v7406_v40  ;;  %v1097_v29 = vpop.f32.mrb[137].mxu0  ;;  %v1270_v32 = vpop.f32.mrb[137].mxu1  ;;  %v8766_v16 = vld [vmem:[#allocation115_spill] sm:$0xff]  ;;  %v8767_v22 = vld [vmem:[#allocation28_spill] sm:$0xff]  ;;  %v8769_v56 = vld [vmem:[#allocation29_spill] sm:$0xff] }
 0x215   :  { %v1630_v44 = vmax.f32 %v1518_v30, 0.0  ;;  %v1520_v3 = vadd.f32 %v7230_v54, %v1386_v20  ;;  %v1388_v34 = vadd.f32 %v1088_v51, %v8764_v13  ;;  %v1390_v45 = vadd.f32 %v1261_v57, %v8765_v15  ;;  %2230 = vmatmul.mubr.bf16.gmra.mrb[172].mxu0 %v7392_v23  ;;  %2331 = vmatmul.mubr.bf16.gmra.mrb[172].mxu1 %v7392_v23  ;;  %v1099_v50 = vpop.f32.mrb[138].mxu0  ;;  %v7427_v33 = vpop.f32.mrb[138].mxu1  ;;  %v5917_v18 = vld [vmem:[#allocation2 + $0x4a8] ss:$16 sps:$4 sm:$0xff]   ;;  %v8768_v63 = vld [vmem:[#allocation116_spill] sm:$0xff] }
 0x216   :  { %v7429_v10 = vmax.f32 %v1629_v1, %v1631_v2  ;;  %v1521_v43 = vadd.f32 %v7218_v21, %v1387_v41  ;;  %v1523_v8 = vadd.f32 %v7222_v47, %v1389_v58  ;;  %v1391_v11 = vadd.f32 %v1090_v49, %v8766_v16  ;;  %v7434_v25 = vpop.f32.mrb[139].mxu0  ;;  %v7436_v17 = vpop.f32.mrb[139].mxu1  ;;  %2949 = vmatpush1.bf16.msra.mxu1 %v5911_v59  ;;  %v5925_v7 = vld [vmem:[#allocation2 + $0x4cc] ss:$16 sps:$4 sm:$0xff]   ;;  %v5920_v28 = vld [vmem:[#allocation2 + $0x4c0] ss:$16 sps:$4 sm:$0xff]  }
 0x217   :  { %v1632_v36 = vmax.f32 %v1520_v3, 0.0  ;;  %v1522_v38 = vadd.f32 %v7226_v39, %v1388_v34  ;;  %v1524_v46 = vadd.f32 %v7230_v54, %v1390_v45  ;;  %v1263_v1 = vadd.f32 %v7379_v55, %v8767_v22  ;;  %2849 = vmatprep.subr.bf16.mxu0 %v5916_v42  ;;  %2950 = vmatprep.subr.bf16.mxu1 %v5919_v0  ;;  %v5928_v55 = vld [vmem:[#allocation2 + $0x4e4] ss:$16 sps:$4 sm:$0xff]   ;;  %v5923_v2 = vld [vmem:[#allocation2 + $0x4c8] ss:$16 sps:$4 sm:$0xff]  }
 0x218   :  { %v1769_v12 = vmax.f32 %v7396_v26, %v7429_v10  ;;  %v1633_v62 = vmax.f32 %v1521_v43, 0.0  ;;  %v1635_v37 = vmax.f32 %v1523_v8, 0.0  ;;  %v1525_v60 = vadd.f32 %v7218_v21, %v1391_v11  ;;  %2850 = vmatpush1.bf16.msra.mxu0 %v5914_v6  ;;  %v8770_v42 = vld [vmem:[#allocation30_spill] sm:$0xff]  ;;  %v8771_v58 = vld [vmem:[#allocation31_spill] sm:$0xff]  ;;  %v8774_v34 = vld [vmem:[#allocation32_spill] sm:$0xff] }
 0x219   :  { %v7445_v14 = vmax.f32 %v1630_v44, %v1632_v36  ;;  %v1634_v59 = vmax.f32 %v1522_v38, 0.0  ;;  %v1636_v30 = vmax.f32 %v1524_v46, 0.0  ;;  %v1393_v20 = vadd.f32 %v1263_v1, %v8768_v63  ;;  %2851 = vmatprep.subr.bf16.mxu0 %v5922_v31  ;;  %v8772_v44 = vld [vmem:[#allocation117_spill] sm:$0xff]  ;;  %v8776_v11 = vld [vmem:[#allocation119_spill] sm:$0xff]  ;;  %v8777_v36 = vld [vmem:[#allocation34_spill] sm:$0xff] }
 0x21a   :  { %v7448_v35 = vmax.f32 %v1633_v62, %v1635_v37  ;;  %v1637_v51 = vmax.f32 %v1525_v60, 0.0  ;;  %v1092_v57 = vadd.f32 %v7384_v19, %v8769_v56  ;;  %v1265_v0 = vadd.f32 %v7386_v24, %v8770_v42  ;;  %2951 = vmatpush1.bf16.msra.mxu1 %v5917_v18  ;;  %v5931_v19 = vld [vmem:[#allocation2 + $0x4ec] ss:$16 sps:$4 sm:$0xff]   ;;  %v8773_v24 = vld [vmem:[#allocation118_spill] sm:$0xff]  ;;  %v8779_v37 = vld [vmem:[#allocation120_spill] sm:$0xff] }
 0x21b   :  { %v1770_v53 = vmax.f32 %v7398_v27, %v7445_v14  ;;  %v7456_v41 = vmax.f32 %v1634_v59, %v1636_v30  ;;  %v1527_v61 = vadd.f32 %v7222_v47, %v1393_v20  ;;  %v1096_v4 = vadd.f32 %v1095_v9, %v8771_v58  ;;  %v7460_v49 = vpop.f32.mrb[140].mxu0  ;;  %v7462_v6 = vpop.f32.mrb[140].mxu1  ;;  %2952 = vmatprep.subr.bf16.mxu1 %v5925_v7  ;;  %v8775_v45 = vld [vmem:[#allocation33_spill] sm:$0xff]  ;;  %v5926_v9 = vld [vmem:[#allocation2 + $0x4e0] ss:$16 sps:$4 sm:$0xff]   ;;  %v8778_v46 = vld [vmem:[#allocation35_spill] sm:$0xff] }
 0x21c   :  { %v1392_v3 = vadd.f32 %v1092_v57, %v8772_v44  ;;  %v1394_v13 = vadd.f32 %v1265_v0, %v8773_v24  ;;  %v1269_v15 = vadd.f32 %v7415_v52, %v8774_v34  ;;  %v1098_v31 = vadd.f32 %v1097_v29, %v8775_v45  ;;  %v7469_v43 = vpop.f32.mrb[141].mxu0  ;;  %v7471_v8 = vpop.f32.mrb[141].mxu1  ;;  %2852 = vmatpush1.bf16.msra.mxu0 %v5920_v28  ;;  %v5934_v52 = vld [vmem:[#allocation2 + $0x504] ss:$16 sps:$4 sm:$0xff]   ;;  %v8780_v28 = vld [vmem:[#allocation121_spill] sm:$0xff]  ;;  %v8782_v57 = vld [vmem:[#allocation123_spill] sm:$0xff] }
 0x21d   :  { %v1639_v16 = vmax.f32 %v1527_v61, 0.0  ;;  %v1395_v18 = vadd.f32 %v1096_v4, %v8776_v11  ;;  %v1271_v38 = vadd.f32 %v1270_v32, %v8777_v36  ;;  %v1100_v22 = vadd.f32 %v1099_v50, %v8778_v46  ;;  %v7476_v1 = vpop.f32.mrb[142].mxu0  ;;  %v7478_v7 = vpop.f32.mrb[142].mxu1  ;;  %2853 = vmatprep.subr.bf16.mxu0 %v5928_v55  ;;  %v5929_v32 = vld [vmem:[#allocation2 + $0x4e8] ss:$16 sps:$4 sm:$0xff]   ;;  %v8781_v56 = vld [vmem:[#allocation122_spill] sm:$0xff] }
 0x21e   :  { %v1526_v29 = vadd.f32 %v7226_v39, %v1392_v3  ;;  %v1528_v62 = vadd.f32 %v7230_v54, %v1394_v13  ;;  %v1397_v60 = vadd.f32 %v1269_v15, %v8779_v37  ;;  %v1396_v59 = vadd.f32 %v1098_v31, %v8780_v28  ;;  %v7484_v30 = vpop.f32.mrb[143].mxu0  ;;  %v7486_v63 = vpop.f32.mrb[143].mxu1  ;;  %2953 = vmatpush1.bf16.msra.mxu1 %v5923_v2  ;;  %v5937_v0 = vld [vmem:[#allocation2 + $0x50c] ss:$16 sps:$4 sm:$0xff]   ;;  %v5932_v3 = vld [vmem:[#allocation2 + $0x500] ss:$16 sps:$4 sm:$0xff]  }
 0x21f   :  { %v1727_v50 = vmax.f32 %v1637_v51, %v1639_v16  ;;  %v1529_v20 = vadd.f32 %v7218_v21, %v1395_v18  ;;  %v1398_v55 = vadd.f32 %v1271_v38, %v8781_v56  ;;  %v1399_v42 = vadd.f32 %v1100_v22, %v8782_v57  ;;  %2954 = vmatprep.subr.bf16.mxu1 %v5931_v19  ;;  %v5940_v34 = vld [vmem:[#allocation2 + $0x524] ss:$16 sps:$4 sm:$0xff]   ;;  %v5935_v11 = vld [vmem:[#allocation2 + $0x508] ss:$16 sps:$4 sm:$0xff]  }
 0x220   :  { %v1638_v61 = vmax.f32 %v1526_v29, 0.0  ;;  %v1640_v58 = vmax.f32 %v1528_v62, 0.0  ;;  %v1531_v4 = vadd.f32 %v7222_v47, %v1397_v60  ;;  %v1530_v44 = vadd.f32 %v7226_v39, %v1396_v59  ;;  %2854 = vmatpush1.bf16.msra.mxu0 %v5926_v9  ;;  %v8783_v31 = vld [vmem:[#allocation36_spill] sm:$0xff]  ;;  %v8784_v36 = vld [vmem:[#allocation37_spill] sm:$0xff]  ;;  %v8786_v26 = vld [vmem:[#allocation38_spill] sm:$0xff] }
 0x221   :  { %v1771_v2 = vmax.f32 %v7448_v35, %v1727_v50  ;;  %v1641_v24 = vmax.f32 %v1529_v20, 0.0  ;;  %v1532_v51 = vadd.f32 %v7230_v54, %v1398_v55  ;;  %v1533_v13 = vadd.f32 %v7218_v21, %v1399_v42  ;;  %2855 = vmatprep.subr.bf16.mxu0 %v5934_v52  ;;  %v5943_v52 = vld [vmem:[#allocation2 + $0x52c] ss:$16 sps:$4 sm:$0xff]   ;;  %v8785_v62 = vld [vmem:[#allocation124_spill] sm:$0xff]  ;;  %v8790_v42 = vld [vmem:[#allocation126_spill] sm:$0xff] }
 0x222   :  { %v1728_v15 = vmax.f32 %v1638_v61, %v1640_v58  ;;  %v1643_v19 = vmax.f32 %v1531_v4, 0.0  ;;  %v1642_v45 = vmax.f32 %v1530_v44, 0.0  ;;  %v1273_v16 = vadd.f32 %v7427_v33, %v8783_v31  ;;  %2955 = vmatpush1.bf16.msra.mxu1 %v5929_v32  ;;  %v8787_v28 = vld [vmem:[#allocation125_spill] sm:$0xff]  ;;  %v8788_v32 = vld [vmem:[#allocation39_spill] sm:$0xff]  ;;  %v5938_v4 = vld [vmem:[#allocation2 + $0x520] ss:$16 sps:$4 sm:$0xff]  }
 0x223   :  { %v7501_v9 = vpack.c.bf16 %v1771_v2, %v1769_v12  ;;  %v1644_v35 = vmax.f32 %v1532_v51, 0.0  ;;  %v1645_v18 = vmax.f32 %v1533_v13, 0.0  ;;  %v1102_v38 = vadd.f32 %v7434_v25, %v8784_v36  ;;  %v7505_v46 = vpop.f32.mrb[144].mxu0  ;;  %v7507_v22 = vpop.f32.mrb[144].mxu1  ;;  %2956 = vmatprep.subr.bf16.mxu1 %v5937_v0  ;;  %v8791_v61 = vld [vmem:[#allocation41_spill] sm:$0xff]  ;;  %v8792_v2 = vld [vmem:[#allocation127_spill] sm:$0xff] }
 0x224   :  { %v1772_v33 = vmax.f32 %v7456_v41, %v1728_v15  ;;  %v7510_v29 = vmax.f32 %v1641_v24, %v1643_v19  ;;  %v1401_v37 = vadd.f32 %v1273_v16, %v8785_v62  ;;  %v1275_v10 = vadd.f32 %v7436_v17, %v8786_v26  ;;  %v7515_v12 = vpop.f32.mrb[145].mxu0  ;;  %v7517_v60 = vpop.f32.mrb[145].mxu1  ;;  %2856 = vmatpush1.bf16.msra.mxu0 %v5932_v3  ;;  %v8789_v41 = vld [vmem:[#allocation40_spill] sm:$0xff]  ;;  %v5941_v44 = vld [vmem:[#allocation2 + $0x528] ss:$16 sps:$4 sm:$0xff]   ;;  %v8794_v24 = vld [vmem:[#allocation42_spill] sm:$0xff] }
 0x225   :  { %v7519_v25 = vmax.f32 %v1642_v45, %v1644_v35  ;;  %v1400_v59 = vadd.f32 %v1102_v38, %v8787_v28  ;;  %v1106_v50 = vadd.f32 %v7460_v49, %v8788_v32  ;;  %v1279_v20 = vadd.f32 %v7462_v6, %v8789_v41  ;;  %v7526_v56 = vpop.f32.mrb[146].mxu0  ;;  %v7528_v55 = vpop.f32.mrb[146].mxu1  ;;  %2857 = vmatprep.subr.bf16.mxu0 %v5940_v34  ;;  %v8793_v14 = vld [vmem:[#allocation128_spill] sm:$0xff]  ;;  %v5949_v34 = vld [vmem:[#allocation2 + $0x54c] ss:$16 sps:$4 sm:$0xff]   ;;  %v8797_v36 = vld [vmem:[#allocation130_spill] sm:$0xff] }
 0x226   :  { %v7533_v17 = vpack.c.bf16 %v1772_v33, %v1770_v53  ;;  %v1535_v57 = vadd.f32 %v7222_v47, %v1401_v37  ;;  %v1402_v0 = vadd.f32 %v1275_v10, %v8790_v42  ;;  %v1108_v49 = vadd.f32 %v7469_v43, %v8791_v61  ;;  %v7539_v58 = vpop.f32.mrb[147].mxu0  ;;  %v7541_v6 = vpop.f32.mrb[147].mxu1  ;;  %2957 = vmatpush1.bf16.msra.mxu1 %v5935_v11  ;;  %v5946_v13 = vld [vmem:[#allocation2 + $0x544] ss:$16 sps:$4 sm:$0xff]   ;;  %v8795_v19 = vld [vmem:[#allocation129_spill] sm:$0xff]  ;;  %v8796_v31 = vld [vmem:[#allocation43_spill] sm:$0xff] }
 0x227   :  { %v1534_v3 = vadd.f32 %v7226_v39, %v1400_v59  ;;  %v1403_v27 = vadd.f32 %v1106_v50, %v8792_v2  ;;  %v1405_v53 = vadd.f32 %v1279_v20, %v8793_v14  ;;  %v1281_v51 = vadd.f32 %v7471_v8, %v8794_v24  ;;  %2958 = vmatprep.subr.bf16.mxu1 %v5943_v52  ;;  %v8798_v62 = vld [vmem:[#allocation131_spill] sm:$0xff]  ;;  %v5944_v26 = vld [vmem:[#allocation2 + $0x540] ss:$16 sps:$4 sm:$0xff]  }
 0x228   :  { %v1647_v43 = vmax.f32 %v1535_v57, 0.0  ;;  %v1536_v15 = vadd.f32 %v7230_v54, %v1402_v0  ;;  %v1404_v45 = vadd.f32 %v1108_v49, %v8795_v19  ;;  %v1110_v16 = vadd.f32 %v7476_v1, %v8796_v31  ;;  %2239 = vmatprep.mubr.bf16.mxu0 %v7533_v17  ;;  %2340 = vmatprep.mubr.bf16.mxu1 %v7533_v17  ;;  %v5947_v10 = vld [vmem:[#allocation2 + $0x548] ss:$16 sps:$4 sm:$0xff]   ;;  %v8799_v50 = vld [vmem:[#allocation44_spill] sm:$0xff] }
 0x229   :  { %v1646_v11 = vmax.f32 %v1534_v3, 0.0  ;;  %v1537_v35 = vadd.f32 %v7218_v21, %v1403_v27  ;;  %v1539_v8 = vadd.f32 %v7222_v47, %v1405_v53  ;;  %v1406_v38 = vadd.f32 %v1281_v51, %v8797_v36  ;;  %2240 = vmatmul.mubr.bf16.gmra.mrb[176].mxu0 %v7501_v9  ;;  %2341 = vmatmul.mubr.bf16.gmra.mrb[176].mxu1 %v7501_v9  ;;  %v5952_v57 = vld [vmem:[#allocation2 + $0x564] ss:$16 sps:$4 sm:$0xff]   ;;  %v8801_v53 = vld [vmem:[#allocation45_spill] sm:$0xff] }
 0x22a   :  { %v7559_v52 = vmax.f32 %v1645_v18, %v1647_v43  ;;  %v1648_v33 = vmax.f32 %v1536_v15, 0.0  ;;  %v1538_v1 = vadd.f32 %v7226_v39, %v1404_v45  ;;  %v1407_v37 = vadd.f32 %v1110_v16, %v8798_v62  ;;  %2858 = vmatpush1.bf16.msra.mxu0 %v5938_v4  ;;  %2959 = vmatpush1.bf16.msra.mxu1 %v5941_v44  ;;  %v8800_v27 = vld [vmem:[#allocation132_spill] sm:$0xff]  ;;  %v8802_v15 = vld [vmem:[#allocation46_spill] sm:$0xff]  ;;  %v8803_v45 = vld [vmem:[#allocation47_spill] sm:$0xff] }
 0x22b   :  { %v1649_v28 = vmax.f32 %v1537_v35, 0.0  ;;  %v1651_v59 = vmax.f32 %v1539_v8, 0.0  ;;  %v1540_v32 = vadd.f32 %v7230_v54, %v1406_v38  ;;  %v1283_v41 = vadd.f32 %v7478_v7, %v8799_v50  ;;  %v7566_v20 = vpop.f32.mrb[148].mxu0  ;;  %v7568_v18 = vpop.f32.mrb[148].mxu1  ;;  %2859 = vmatprep.subr.bf16.mxu0 %v5946_v13  ;;  %2960 = vmatprep.subr.bf16.mxu1 %v5949_v34  ;;  %v5955_v7 = vld [vmem:[#allocation2 + $0x56c] ss:$16 sps:$4 sm:$0xff]  }
 0x22c   :  { %v1773_v42 = vmax.f32 %v7510_v29, %v7559_v52  ;;  %v7572_v0 = vmax.f32 %v1646_v11, %v1648_v33  ;;  %v1650_v61 = vmax.f32 %v1538_v1, 0.0  ;;  %v1541_v49 = vadd.f32 %v7218_v21, %v1407_v37  ;;  %v7575_v4 = vpop.f32.mrb[149].mxu0  ;;  %v7577_v44 = vpop.f32.mrb[149].mxu1  ;;  %v8804_v36 = vld [vmem:[#allocation133_spill] sm:$0xff]  ;;  %v8805_v33 = vld [vmem:[#allocation48_spill] sm:$0xff] }
 0x22d   :  { %v7579_v3 = vmax.f32 %v1649_v28, %v1651_v59  ;;  %v1652_v2 = vmax.f32 %v1540_v32, 0.0  ;;  %v1409_v14 = vadd.f32 %v1283_v41, %v8800_v27  ;;  %v1112_v24 = vadd.f32 %v7484_v30, %v8801_v53  ;;  %v7584_v51 = vpop.f32.mrb[150].mxu0  ;;  %v7586_v13 = vpop.f32.mrb[150].mxu1  ;;  %v5950_v30 = vld [vmem:[#allocation2 + $0x560] ss:$16 sps:$4 sm:$0xff]   ;;  %v8807_v28 = vld [vmem:[#allocation135_spill] sm:$0xff] }
 0x22e   :  { %v1774_v34 = vmax.f32 %v7519_v25, %v7572_v0  ;;  %v1653_v43 = vmax.f32 %v1541_v49, 0.0  ;;  %v1285_v19 = vadd.f32 %v7486_v63, %v8802_v15  ;;  %v1116_v31 = vadd.f32 %v7505_v46, %v8803_v45  ;;  %v7594_v16 = vpop.f32.mrb[151].mxu0  ;;  %v7596_v11 = vpop.f32.mrb[151].mxu1  ;;  %2860 = vmatpush1.bf16.msra.mxu0 %v5944_v26  ;;  %2961 = vmatpush1.bf16.msra.mxu1 %v5947_v10  ;;  %v5953_v63 = vld [vmem:[#allocation2 + $0x568] ss:$16 sps:$4 sm:$0xff]   ;;  %v8806_v46 = vld [vmem:[#allocation134_spill] sm:$0xff] }
 0x22f   :  { %v7598_v35 = vmax.f32 %v1650_v61, %v1652_v2  ;;  %v1543_v8 = vadd.f32 %v7222_v47, %v1409_v14  ;;  %v1408_v38 = vadd.f32 %v1112_v24, %v8804_v36  ;;  %v1289_v1 = vadd.f32 %v7507_v22, %v8805_v33  ;;  %2861 = vmatprep.subr.bf16.mxu0 %v5952_v57  ;;  %v5958_v62 = vld [vmem:[#allocation2 + $0x584] ss:$16 sps:$4 sm:$0xff]   ;;  %v8808_v32 = vld [vmem:[#allocation49_spill] sm:$0xff]  ;;  %v8811_v57 = vld [vmem:[#allocation51_spill] sm:$0xff] }
 0x230   :  { %v1410_v37 = vadd.f32 %v1285_v19, %v8806_v46  ;;  %v1411_v59 = vadd.f32 %v1116_v31, %v8807_v28  ;;  %v1118_v26 = vadd.f32 %v7515_v12, %v8808_v32  ;;  %v8809_v10 = vld [vmem:[#allocation50_spill] sm:$0xff]  ;;  %2962 = vmatprep.subr.bf16.mxu1 %v5955_v7  ;;  %v5961_v41 = vld [vmem:[#allocation2 + $0x58c] ss:$16 sps:$4 sm:$0xff]   ;;  %v8810_v2 = vld [vmem:[#allocation136_spill] sm:$0xff]  ;;  %v1120_v27 = vadd.f32 %v7526_v56, %v8811_v57 }
 0x231   :  { %v1291_v50 = vadd.f32 %v7517_v60, %v8809_v10  ;;  %v1655_v61 = vmax.f32 %v1543_v8, 0.0  ;;  %v1542_v49 = vadd.f32 %v7226_v39, %v1408_v38  ;;  %v1413_v22 = vadd.f32 %v1289_v1, %v8810_v2  ;;  %v8812_v24 = vld [vmem:[#allocation137_spill] sm:$0xff]  ;;  %v8813_v12 = vld [vmem:[#allocation138_spill] sm:$0xff]  ;;  %v8814_v36 = vld [vmem:[#allocation139_spill] sm:$0xff] }
 0x232   :  { %v1544_v14 = vadd.f32 %v7230_v54, %v1410_v37  ;;  %v1545_v53 = vadd.f32 %v7218_v21, %v1411_v59  ;;  %v1412_v15 = vadd.f32 %v1118_v26, %v8812_v24  ;;  %2862 = vmatpush1.bf16.msra.mxu0 %v5950_v30  ;;  %v5956_v60 = vld [vmem:[#allocation2 + $0x580] ss:$16 sps:$4 sm:$0xff]   ;;  %v5959_v7 = vld [vmem:[#allocation2 + $0x588] ss:$16 sps:$4 sm:$0xff]   ;;  %v1415_v38 = vadd.f32 %v1120_v27, %v8814_v36  ;;  %v5964_v1 = vld [vmem:[#allocation2 + $0x5a4] ss:$16 sps:$4 sm:$0xff]  }
 0x233   :  { %v1414_v19 = vadd.f32 %v1291_v50, %v8813_v12  ;;  %v1735_v45 = vmax.f32 %v1653_v43, %v1655_v61  ;;  %v1654_v31 = vmax.f32 %v1542_v49, 0.0  ;;  %v1547_v8 = vadd.f32 %v7222_v47, %v1413_v22  ;;  %v7620_v33 = vpop.f32.mrb[152].mxu0  ;;  %v7622_v56 = vpop.f32.mrb[152].mxu1  ;;  %2963 = vmatpush1.bf16.msra.mxu1 %v5953_v63  ;;  %2863 = vmatprep.subr.bf16.mxu0 %v5958_v62  ;;  %v5967_v32 = vld [vmem:[#allocation2 + $0x5ac] ss:$16 sps:$4 sm:$0xff]   ;;  %v8815_v63 = vld [vmem:[#allocation52_spill] sm:$0xff] }
 0x234   :  { %v1656_v46 = vmax.f32 %v1544_v14, 0.0  ;;  %v1657_v37 = vmax.f32 %v1545_v53, 0.0  ;;  %v1546_v28 = vadd.f32 %v7226_v39, %v1412_v15  ;;  %v7626_v59 = vpop.f32.mrb[153].mxu0  ;;  %v7628_v43 = vpop.f32.mrb[153].mxu1  ;;  %2964 = vmatprep.subr.bf16.mxu1 %v5961_v41  ;;  %v1549_v50 = vadd.f32 %v7218_v21, %v1415_v38  ;;  %v8816_v27 = vld [vmem:[#allocation53_spill] sm:$0xff]  ;;  %v8817_v12 = vld [vmem:[#allocation140_spill] sm:$0xff] }
 0x235   :  { %v1548_v30 = vadd.f32 %v7230_v54, %v1414_v19  ;;  %v1775_v26 = vmax.f32 %v7579_v3, %v1735_v45  ;;  %v1659_v10 = vmax.f32 %v1547_v8, 0.0  ;;  %v1293_v62 = vadd.f32 %v7528_v55, %v8815_v63  ;;  %v7634_v61 = vpop.f32.mrb[154].mxu0  ;;  %v7636_v49 = vpop.f32.mrb[154].mxu1  ;;  %v5962_v3 = vld [vmem:[#allocation2 + $0x5a0] ss:$16 sps:$4 sm:$0xff]  }
 0x236   :  { %v1736_v2 = vmax.f32 %v1654_v31, %v1656_v46  ;;  %v1658_v22 = vmax.f32 %v1546_v28, 0.0  ;;  %v1122_v14 = vadd.f32 %v7539_v58, %v8816_v27  ;;  %v7640_v41 = vpop.f32.mrb[155].mxu0  ;;  %v7642_v53 = vpop.f32.mrb[155].mxu1  ;;  %2864 = vmatpush1.bf16.msra.mxu0 %v5956_v60  ;;  %v1661_v15 = vmax.f32 %v1549_v50, 0.0  ;;  %v5965_v45 = vld [vmem:[#allocation2 + $0x5a8] ss:$16 sps:$4 sm:$0xff]  }
 0x237   :  { %v1660_v57 = vmax.f32 %v1548_v30, 0.0  ;;  %v7647_v55 = vpack.c.bf16 %v1775_v26, %v1773_v42  ;;  %v7649_v24 = vmax.f32 %v1657_v37, %v1659_v10  ;;  %v1417_v19 = vadd.f32 %v1293_v62, %v8817_v12  ;;  %2965 = vmatpush1.bf16.msra.mxu1 %v5959_v7  ;;  %2865 = vmatprep.subr.bf16.mxu0 %v5964_v1  ;;  %v5970_v58 = vld [vmem:[#allocation2 + $0x5c4] ss:$16 sps:$4 sm:$0xff]   ;;  %v8818_v60 = vld [vmem:[#allocation141_spill] sm:$0xff]  ;;  %v8820_v42 = vld [vmem:[#allocation55_spill] sm:$0xff] }
 0x238   :  { %v1776_v31 = vmax.f32 %v7598_v35, %v1736_v2  ;;  %v1416_v36 = vadd.f32 %v1122_v14, %v8818_v60  ;;  %v8819_v38 = vld [vmem:[#allocation54_spill] sm:$0xff]  ;;  %2966 = vmatprep.subr.bf16.mxu1 %v5967_v32  ;;  %v1126_v46 = vadd.f32 %v7566_v20, %v8820_v42  ;;  %v8821_v37 = vld [vmem:[#allocation56_spill] sm:$0xff]  ;;  %v8822_v1 = vld [vmem:[#allocation57_spill] sm:$0xff] }
 0x239   :  { %v7653_v8 = vmax.f32 %v1658_v22, %v1660_v57  ;;  %v1295_v29 = vadd.f32 %v7541_v6, %v8819_v38  ;;  %v1551_v52 = vadd.f32 %v7222_v47, %v1417_v19  ;;  %v1299_v7 = vadd.f32 %v7568_v18, %v8821_v37  ;;  %v8823_v6 = vld [vmem:[#allocation142_spill] sm:$0xff]  ;;  %v5971_v50 = vld [vmem:[#allocation2 + $0x5c8] ss:$16 sps:$4 sm:$0xff]   ;;  %v5973_v63 = vld [vmem:[#allocation2 + $0x5cc] ss:$16 sps:$4 sm:$0xff]  }
 0x23a   :  { %v1128_v28 = vadd.f32 %v7575_v4, %v8822_v1  ;;  %v7668_v35 = vpack.c.bf16 %v1776_v31, %v1774_v34  ;;  %v1550_v30 = vadd.f32 %v7226_v39, %v1416_v36  ;;  %v8824_v26 = vld [vmem:[#allocation58_spill] sm:$0xff]  ;;  %2866 = vmatpush1.bf16.msra.mxu0 %v5962_v3  ;;  %v8825_v62 = vld [vmem:[#allocation143_spill] sm:$0xff]  ;;  %v8826_v4 = vld [vmem:[#allocation144_spill] sm:$0xff] }
 0x23b   :  { %v1418_v32 = vadd.f32 %v1295_v29, %v8823_v6  ;;  %v1301_v10 = vadd.f32 %v7577_v44, %v8824_v26  ;;  %v5968_v20 = vld [vmem:[#allocation2 + $0x5c0] ss:$16 sps:$4 sm:$0xff]   ;;  %v1663_v18 = vmax.f32 %v1551_v52, 0.0  ;;  %v1419_v2 = vadd.f32 %v1126_v46, %v8825_v62  ;;  %v8827_v57 = vld [vmem:[#allocation145_spill] sm:$0xff]  ;;  %v7677_v0 = vpop.f32.mrb[156].mxu0  ;;  %v7679_v34 = vpop.f32.mrb[156].mxu1  ;;  %2967 = vmatpush1.bf16.msra.mxu1 %v5965_v45  ;;  %2867 = vmatprep.subr.bf16.mxu0 %v5970_v58 }
 0x23c   :  { %v1421_v22 = vadd.f32 %v1299_v7, %v8826_v4  ;;  %v1420_v25 = vadd.f32 %v1128_v28, %v8827_v57  ;;  %v5976_v27 = vld [vmem:[#allocation2 + $0x5e4] ss:$16 sps:$4 sm:$0xff]   ;;  %v1662_v14 = vmax.f32 %v1550_v30, 0.0  ;;  %v8829_v19 = vld [vmem:[#allocation59_spill] sm:$0xff]  ;;  %2249 = vmatprep.mubr.bf16.mxu0 %v7668_v35  ;;  %2350 = vmatprep.mubr.bf16.mxu1 %v7668_v35  ;;  %v7687_v60 = vpop.f32.mrb[157].mxu0  ;;  %v7689_v36 = vpop.f32.mrb[157].mxu1 }
 0x23d   :  { %v1552_v44 = vadd.f32 %v7230_v54, %v1418_v32  ;;  %v8828_v3 = vld [vmem:[#allocation146_spill] sm:$0xff]  ;;  %v1130_v31 = vadd.f32 %v7584_v51, %v8829_v19  ;;  %v5979_v38 = vld [vmem:[#allocation2 + $0x5ec] ss:$16 sps:$4 sm:$0xff]   ;;  %v7691_v45 = vmax.f32 %v1661_v15, %v1663_v18  ;;  %v1553_v58 = vadd.f32 %v7218_v21, %v1419_v2  ;;  %2250 = vmatmul.mubr.bf16.gmra.mrb[180].mxu0 %v7647_v55  ;;  %v7697_v51 = vpop.f32.mrb[158].mxu0  ;;  %v7699_v42 = vpop.f32.mrb[158].mxu1  ;;  %v8831_v28 = vld [vmem:[#allocation60_spill] sm:$0xff] }
 0x23e   :  { %v1422_v12 = vadd.f32 %v1301_v10, %v8828_v3  ;;  %v1555_v29 = vadd.f32 %v7222_v47, %v1421_v22  ;;  %v1554_v52 = vadd.f32 %v7226_v39, %v1420_v25  ;;  %v8830_v7 = vld [vmem:[#allocation147_spill] sm:$0xff]  ;;  %v1303_v15 = vadd.f32 %v7586_v13, %v8831_v28  ;;  %2351 = vmatmul.mubr.bf16.gmra.mrb[180].mxu1 %v7647_v55  ;;  %v7706_v30 = vpop.f32.mrb[159].mxu0  ;;  %v7708_v6 = vpop.f32.mrb[159].mxu1  ;;  %v5974_v62 = vld [vmem:[#allocation2 + $0x5e0] ss:$16 sps:$4 sm:$0xff]   ;;  %v8833_v3 = vld [vmem:[#allocation61_spill] sm:$0xff] }
 0x23f   :  { %v1664_v46 = vmax.f32 %v1552_v44, 0.0  ;;  %v1423_v1 = vadd.f32 %v1130_v31, %v8830_v7  ;;  %2968 = vmatprep.subr.bf16.mxu1 %v5973_v63  ;;  %v1777_v32 = vmax.f32 %v7649_v24, %v7691_v45  ;;  %v1665_v26 = vmax.f32 %v1553_v58, 0.0  ;;  %2868 = vmatpush1.bf16.msra.mxu0 %v5968_v20  ;;  %v8832_v22 = vld [vmem:[#allocation148_spill] sm:$0xff]  ;;  %v5977_v25 = vld [vmem:[#allocation2 + $0x5e8] ss:$16 sps:$4 sm:$0xff]   ;;  %v8834_v19 = vld [vmem:[#allocation62_spill] sm:$0xff] }
 0x240   :  { %v1556_v37 = vadd.f32 %v7230_v54, %v1422_v12  ;;  %v1667_v10 = vmax.f32 %v1555_v29, 0.0  ;;  %v1666_v18 = vmax.f32 %v1554_v52, 0.0  ;;  %2969 = vmatpush1.bf16.msra.mxu1 %v5971_v50  ;;  %v1425_v57 = vadd.f32 %v1303_v15, %v8832_v22  ;;  %2869 = vmatprep.subr.bf16.mxu0 %v5976_v27  ;;  %v5982_v63 = vld [vmem:[#allocation2 + $0x204] ss:$16 sps:$4 sm:$0xff]   ;;  %v8835_v50 = vld [vmem:[#allocation63_spill] sm:$0xff] }
 0x241   :  { %v7712_v2 = vmax.f32 %v1662_v14, %v1664_v46  ;;  %v1557_v13 = vadd.f32 %v7218_v21, %v1423_v1  ;;  %2970 = vmatprep.subr.bf16.mxu1 %v5979_v38  ;;  %v1132_v12 = vadd.f32 %v7594_v16, %v8833_v3  ;;  %v1305_v20 = vadd.f32 %v7596_v11, %v8834_v19  ;;  %v5985_v31 = vld [vmem:[#allocation2 + $0x20c] ss:$16 sps:$4 sm:$0xff]   ;;  %v8839_v28 = vld [vmem:[#allocation64_spill] sm:$0xff] }
 0x242   :  { %v1668_v4 = vmax.f32 %v1556_v37, 0.0  ;;  %v1741_v44 = vmax.f32 %v1665_v26, %v1667_v10  ;;  %v1136_v14 = vadd.f32 %v7620_v33, %v8835_v50  ;;  %v1559_v27 = vadd.f32 %v7222_v47, %v1425_v57  ;;  %v8836_v38 = vld [vmem:[#allocation149_spill] sm:$0xff]  ;;  %v8837_v37 = vld [vmem:[#allocation150_spill] sm:$0xff]  ;;  %v8838_v1 = vld [vmem:[#allocation151_spill] sm:$0xff] }
 0x243   :  { %v1778_v58 = vmax.f32 %v7653_v8, %v7712_v2  ;;  %v1669_v52 = vmax.f32 %v1557_v13, 0.0  ;;  %v1424_v46 = vadd.f32 %v1132_v12, %v8836_v38  ;;  %v1426_v7 = vadd.f32 %v1305_v20, %v8837_v37  ;;  %v7730_v15 = vpop.f32.mrb[160].mxu0  ;;  %v7732_v33 = vpop.f32.mrb[160].mxu1  ;;  %2870 = vmatpush1.bf16.msra.mxu0 %v5974_v62  ;;  %v8840_v8 = vld [vmem:[#allocation65_spill] sm:$0xff]  ;;  %v8843_v12 = vld [vmem:[#allocation152_spill] sm:$0xff]  ;;  %v8852_v45 = vld [vmem:[#allocation71_spill] sm:$0xff] }
 0x244   :  { %v1742_v29 = vmax.f32 %v1666_v18, %v1668_v4  ;;  %v1427_v16 = vadd.f32 %v1136_v14, %v8838_v1  ;;  %v1309_v11 = vadd.f32 %v7622_v56, %v8839_v28  ;;  %v1671_v26 = vmax.f32 %v1559_v27, 0.0  ;;  %v8841_v18 = vld [vmem:[#allocation66_spill] sm:$0xff]  ;;  %v8842_v4 = vld [vmem:[#allocation67_spill] sm:$0xff]  ;;  %v7740_v22 = vpop.f32.mrb[161].mxu0  ;;  %v7742_v57 = vpop.f32.mrb[161].mxu1  ;;  %2971 = vmatpush1.bf16.msra.mxu1 %v5977_v25  ;;  %3361 = vmatprep.subr.bf16.mxu0 %v5982_v63  ;;  %v8844_v20 = vld [vmem:[#allocation153_spill] sm:$0xff] }
 0x245   :  { %v1138_v10 = vadd.f32 %v7626_v59, %v8840_v8  ;;  %v1311_v2 = vadd.f32 %v7628_v43, %v8841_v18  ;;  %v1140_v13 = vadd.f32 %v7634_v61, %v8842_v4  ;;  %v1558_v56 = vadd.f32 %v7226_v39, %v1424_v46  ;;  %v7748_v19 = vpop.f32.mrb[162].mxu0  ;;  %v7750_v43 = vpop.f32.mrb[162].mxu1  ;;  %3464 = vmatprep.subr.bf16.mxu1 %v5985_v31  ;;  %v8845_v14 = vld [vmem:[#allocation154_spill] sm:$0xff]  ;;  %v8846_v25 = vld [vmem:[#allocation155_spill] sm:$0xff] }
 0x246   :  { %v1560_v62 = vadd.f32 %v7230_v54, %v1426_v7  ;;  %v1561_v3 = vadd.f32 %v7218_v21, %v1427_v16  ;;  %v1429_v59 = vadd.f32 %v1309_v11, %v8843_v12  ;;  %v1743_v61 = vmax.f32 %v1669_v52, %v1671_v26  ;;  %v7755_v38 = vpop.f32.mrb[163].mxu0  ;;  %v7757_v46 = vpop.f32.mrb[163].mxu1 }
 0x247   :  { %v1428_v50 = vadd.f32 %v1138_v10, %v8844_v20  ;;  %v1430_v27 = vadd.f32 %v1311_v2, %v8845_v14  ;;  %v1431_v63 = vadd.f32 %v1140_v13, %v8846_v25  ;;  %v1670_v37 = vmax.f32 %v1558_v56, 0.0  ;;  %v8847_v10 = vld [vmem:[#allocation68_spill] sm:$0xff]  ;;  %v8848_v2 = vld [vmem:[#allocation69_spill] sm:$0xff] }
 0x248   :  { %v1672_v7 = vmax.f32 %v1560_v62, 0.0  ;;  %v1673_v1 = vmax.f32 %v1561_v3, 0.0  ;;  %v1563_v16 = vadd.f32 %v7222_v47, %v1429_v59  ;;  %v1779_v28 = vmax.f32 %v1741_v44, %v1743_v61  ;;  %v8849_v59 = vld [vmem:[#allocation156_spill] sm:$0xff]  ;;  %v8850_v20 = vld [vmem:[#allocation157_spill] sm:$0xff] }
 0x249   :  { %v1562_v11 = vadd.f32 %v7226_v39, %v1428_v50  ;;  %v1564_v31 = vadd.f32 %v7230_v54, %v1430_v27  ;;  %v1565_v52 = vadd.f32 %v7218_v21, %v1431_v63  ;;  %v1313_v18 = vadd.f32 %v7636_v49, %v8847_v10  ;;  %v8851_v27 = vld [vmem:[#allocation70_spill] sm:$0xff]  ;;  %v8853_v25 = vld [vmem:[#allocation72_spill] sm:$0xff] }
 0x24a   :  { %v1744_v26 = vmax.f32 %v1670_v37, %v1672_v7  ;;  %v1675_v8 = vmax.f32 %v1563_v16, 0.0  ;;  %v1142_v4 = vadd.f32 %v7640_v41, %v8848_v2  ;;  %v7770_v13 = vpack.c.bf16 %v1779_v28, %v1777_v32  ;;  %v8854_v28 = vld [vmem:[#allocation73_spill] sm:$0xff] }
 0x24b   :  { %v1674_v44 = vmax.f32 %v1562_v11, 0.0  ;;  %v1676_v56 = vmax.f32 %v1564_v31, 0.0  ;;  %v1677_v62 = vmax.f32 %v1565_v52, 0.0  ;;  %v1433_v61 = vadd.f32 %v1313_v18, %v8849_v59  ;;  %v7776_v14 = vpop.f32.mrb[164].mxu0  ;;  %v7778_v49 = vpop.f32.mrb[164].mxu1  ;;  %v8858_v18 = vld [vmem:[#allocation74_spill] sm:$0xff] }
 0x24c   :  { %v1780_v3 = vmax.f32 %v1742_v29, %v1744_v26  ;;  %v7772_v12 = vmax.f32 %v1673_v1, %v1675_v8  ;;  %v1432_v50 = vadd.f32 %v1142_v4, %v8850_v20  ;;  %v1315_v24 = vadd.f32 %v7642_v53, %v8851_v27  ;;  %v7788_v63 = vpop.f32.mrb[165].mxu0  ;;  %v7790_v37 = vpop.f32.mrb[165].mxu1  ;;  %v8857_v8 = vld [vmem:[#allocation160_spill] sm:$0xff]  ;;  %v8860_v59 = vld [vmem:[#allocation75_spill] sm:$0xff]  ;;  %v8861_v27 = vld [vmem:[#allocation162_spill] sm:$0xff] }
 0x24d   :  { %v7780_v41 = vmax.f32 %v1674_v44, %v1676_v56  ;;  %v1146_v32 = vadd.f32 %v7677_v0, %v8852_v45  ;;  %v1319_v29 = vadd.f32 %v7679_v34, %v8853_v25  ;;  %v1567_v1 = vadd.f32 %v7222_v47, %v1433_v61  ;;  %v7798_v53 = vpop.f32.mrb[166].mxu0  ;;  %v7800_v31 = vpop.f32.mrb[166].mxu1  ;;  %v8855_v0 = vld [vmem:[#allocation158_spill] sm:$0xff]  ;;  %v8856_v34 = vld [vmem:[#allocation159_spill] sm:$0xff] }
 0x24e   :  { %v7792_v7 = vpack.c.bf16 %v1780_v3, %v1778_v58  ;;  %v1566_v16 = vadd.f32 %v7226_v39, %v1432_v50  ;;  %v1148_v11 = vadd.f32 %v7687_v60, %v8854_v28  ;;  %v1434_v52 = vadd.f32 %v1315_v24, %v8855_v0  ;;  %v7807_v2 = vpop.f32.mrb[167].mxu0  ;;  %v7809_v4 = vpop.f32.mrb[167].mxu1  ;;  %v8859_v60 = vld [vmem:[#allocation161_spill] sm:$0xff]  ;;  %v8862_v25 = vld [vmem:[#allocation163_spill] sm:$0xff] }
 0x24f   :  { %v1435_v26 = vadd.f32 %v1146_v32, %v8856_v34  ;;  %v1437_v10 = vadd.f32 %v1319_v29, %v8857_v8  ;;  %v1321_v58 = vadd.f32 %v7689_v36, %v8858_v18  ;;  %v1679_v44 = vmax.f32 %v1567_v1, 0.0 }
 0x250   :  { %v1678_v56 = vmax.f32 %v1566_v16, 0.0  ;;  %v1436_v3 = vadd.f32 %v1148_v11, %v8859_v60  ;;  %v1150_v61 = vadd.f32 %v7697_v51, %v8860_v59  ;;  %2259 = vmatprep.mubr.bf16.mxu0 %v7792_v7  ;;  %2360 = vmatprep.mubr.bf16.mxu1 %v7792_v7  ;;  %v1568_v20 = vadd.f32 %v7230_v54, %v1434_v52  ;;  %v8863_v51 = vld [vmem:[#allocation76_spill] sm:$0xff]  ;;  %v8866_v59 = vld [vmem:[#allocation78_spill] sm:$0xff] }
 0x251   :  { %v1569_v50 = vadd.f32 %v7218_v21, %v1435_v26  ;;  %v1571_v36 = vadd.f32 %v7222_v47, %v1437_v10  ;;  %v1438_v24 = vadd.f32 %v1321_v58, %v8861_v27  ;;  %2260 = vmatmul.mubr.bf16.gmra.mrb[184].mxu0 %v7770_v13  ;;  %v1747_v45 = vmax.f32 %v1677_v62, %v1679_v44  ;;  %v8864_v62 = vld [vmem:[#allocation164_spill] sm:$0xff]  ;;  %v8865_v44 = vld [vmem:[#allocation77_spill] sm:$0xff] }
 0x252   :  { %v1570_v32 = vadd.f32 %v7226_v39, %v1436_v3  ;;  %v1439_v29 = vadd.f32 %v1150_v61, %v8862_v25  ;;  %v1323_v1 = vadd.f32 %v7699_v42, %v8863_v51  ;;  %2361 = vmatmul.mubr.bf16.gmra.mrb[184].mxu1 %v7770_v13  ;;  %v1680_v16 = vmax.f32 %v1568_v20, 0.0  ;;  %v8867_v20 = vld [vmem:[#allocation79_spill] sm:$0xff]  ;;  %v8868_v27 = vld [vmem:[#allocation165_spill] sm:$0xff]  ;;  %v8870_v25 = vld [vmem:[#allocation166_spill] sm:$0xff] }
 0x253   :  { %v1681_v28 = vmax.f32 %v1569_v50, 0.0  ;;  %v1683_v11 = vmax.f32 %v1571_v36, 0.0  ;;  %v1572_v0 = vadd.f32 %v7230_v54, %v1438_v24  ;;  %v1781_v52 = vmax.f32 %v7772_v12, %v1747_v45 }
 0x254   :  { %v1682_v34 = vmax.f32 %v1570_v32, 0.0  ;;  %v1573_v26 = vadd.f32 %v7218_v21, %v1439_v29  ;;  %v1441_v8 = vadd.f32 %v1323_v1, %v8864_v62  ;;  %v1748_v10 = vmax.f32 %v1678_v56, %v1680_v16  ;;  %v8869_v56 = vld [vmem:[#allocation80_spill] sm:$0xff]  ;;  %v8871_v29 = vld [vmem:[#allocation167_spill] sm:$0xff]  ;;  %v8872_v1 = vld [vmem:[#allocation81_spill] sm:$0xff] }
 0x255   :  { %v1749_v18 = vmax.f32 %v1681_v28, %v1683_v11  ;;  %v1684_v58 = vmax.f32 %v1572_v0, 0.0  ;;  %v1152_v42 = vadd.f32 %v7706_v30, %v8865_v44  ;;  %v1325_v61 = vadd.f32 %v7708_v6, %v8866_v59  ;;  %v8873_v28 = vld [vmem:[#allocation168_spill] sm:$0xff]  ;;  %v8874_v11 = vld [vmem:[#allocation82_spill] sm:$0xff]  ;;  %v8875_v0 = vld [vmem:[#allocation83_spill] sm:$0xff] }
 0x256   :  { %v1685_v60 = vmax.f32 %v1573_v26, 0.0  ;;  %v1575_v3 = vadd.f32 %v7222_v47, %v1441_v8  ;;  %v1156_v12 = vadd.f32 %v7730_v15, %v8867_v20  ;;  %v1782_v50 = vmax.f32 %v7780_v41, %v1748_v10  ;;  %v8876_v8 = vld [vmem:[#allocation169_spill] sm:$0xff]  ;;  %v8877_v44 = vld [vmem:[#allocation170_spill] sm:$0xff] }
 0x257   :  { %v1750_v36 = vmax.f32 %v1682_v34, %v1684_v58  ;;  %v1440_v24 = vadd.f32 %v1152_v42, %v8868_v27  ;;  %v1329_v45 = vadd.f32 %v7732_v33, %v8869_v56  ;;  %v1442_v30 = vadd.f32 %v1325_v61, %v8870_v25 }
 0x258   :  { %v1687_v32 = vmax.f32 %v1575_v3, 0.0  ;;  %v1443_v51 = vadd.f32 %v1156_v12, %v8871_v29  ;;  %v1158_v16 = vadd.f32 %v7740_v22, %v8872_v1  ;;  %v1331_v41 = vadd.f32 %v7742_v57, %v8874_v11  ;;  %v8878_v3 = vld [vmem:[#allocation172_spill] sm:$0xff] }
 0x259   :  { %v1574_v6 = vadd.f32 %v7226_v39, %v1440_v24  ;;  %v1445_v15 = vadd.f32 %v1329_v45, %v8873_v28  ;;  %v1160_v34 = vadd.f32 %v7748_v19, %v8875_v0  ;;  %v1576_v33 = vadd.f32 %v7230_v54, %v1442_v30  ;;  %v8879_v24 = vld [vmem:[#allocation84_spill] sm:$0xff]  ;;  %v8880_v30 = vld [vmem:[#allocation85_spill] sm:$0xff] }
 0x25a   :  { %v1751_v26 = vmax.f32 %v1685_v60, %v1687_v32  ;;  %v1577_v62 = vadd.f32 %v7218_v21, %v1443_v51  ;;  %v1444_v10 = vadd.f32 %v1158_v16, %v8876_v8  ;;  %v1446_v42 = vadd.f32 %v1331_v41, %v8877_v44  ;;  %v8881_v16 = vld [vmem:[#allocation173_spill] sm:$0xff]  ;;  %v8883_v41 = vld [vmem:[#allocation86_spill] sm:$0xff]  ;;  %v8888_v44 = vld [vmem:[#allocation176_spill] sm:$0xff] }
 0x25b   :  { %v1686_v58 = vmax.f32 %v1574_v6, 0.0  ;;  %v1579_v22 = vadd.f32 %v7222_v47, %v1445_v15  ;;  %v1447_v59 = vadd.f32 %v1160_v34, %v8878_v3  ;;  %v1688_v20 = vmax.f32 %v1576_v33, 0.0  ;;  %v8882_v15 = vld [vmem:[#allocation174_spill] sm:$0xff]  ;;  %v8884_v34 = vld [vmem:[#allocation87_spill] sm:$0xff]  ;;  %v8885_v33 = vld [vmem:[#allocation88_spill] sm:$0xff] }
 0x25c   :  { %v1783_v61 = vmax.f32 %v1749_v18, %v1751_v26  ;;  %v1689_v57 = vmax.f32 %v1577_v62, 0.0  ;;  %v1578_v12 = vadd.f32 %v7226_v39, %v1444_v10  ;;  %v1580_v60 = vadd.f32 %v7230_v54, %v1446_v42  ;;  %v8886_v62 = vld [vmem:[#allocation89_spill] sm:$0xff] }
 0x25d   :  { %v1691_v19 = vmax.f32 %v1579_v22, 0.0  ;;  %v1581_v27 = vadd.f32 %v7218_v21, %v1447_v59  ;;  %v1333_v56 = vadd.f32 %v7750_v43, %v8879_v24  ;;  %v1752_v32 = vmax.f32 %v1686_v58, %v1688_v20  ;;  %v8887_v58 = vld [vmem:[#allocation175_spill] sm:$0xff]  ;;  %v8889_v3 = vld [vmem:[#allocation177_spill] sm:$0xff]  ;;  %v8890_v59 = vld [vmem:[#allocation178_spill] sm:$0xff] }
 0x25e   :  { %v7862_v45 = vpack.c.bf16 %v1783_v61, %v1781_v52  ;;  %v1690_v25 = vmax.f32 %v1578_v12, 0.0  ;;  %v1162_v29 = vadd.f32 %v7755_v38, %v8880_v30  ;;  %v1692_v51 = vmax.f32 %v1580_v60, 0.0  ;;  %v8891_v20 = vld [vmem:[#allocation90_spill] sm:$0xff] }
 0x25f   :  { %v1753_v18 = vmax.f32 %v1689_v57, %v1691_v19  ;;  %v1693_v1 = vmax.f32 %v1581_v27, 0.0  ;;  %v1449_v6 = vadd.f32 %v1333_v56, %v8881_v16  ;;  %v1784_v28 = vmax.f32 %v1750_v36, %v1752_v32  ;;  %v8893_v56 = vld [vmem:[#allocation179_spill] sm:$0xff] }
 0x260   :  { %v1448_v11 = vadd.f32 %v1162_v29, %v8882_v15  ;;  %v1335_v0 = vadd.f32 %v7757_v46, %v8883_v41  ;;  %v1166_v43 = vadd.f32 %v7776_v14, %v8884_v34  ;;  %v1754_v52 = vmax.f32 %v1690_v25, %v1692_v51  ;;  %v8894_v29 = vld [vmem:[#allocation92_spill] sm:$0xff]  ;;  %v8895_v41 = vld [vmem:[#allocation93_spill] sm:$0xff] }
 0x261   :  { %v1583_v26 = vadd.f32 %v7222_v47, %v1449_v6  ;;  %v1339_v38 = vadd.f32 %v7778_v49, %v8885_v33  ;;  %v1168_v8 = vadd.f32 %v7788_v63, %v8886_v62  ;;  %v7877_v10 = vpack.c.bf16 %v1784_v28, %v1782_v50  ;;  %v8892_v50 = vld [vmem:[#allocation91_spill] sm:$0xff] }
 0x262   :  { %v1582_v36 = vadd.f32 %v7226_v39, %v1448_v11  ;;  %v1450_v22 = vadd.f32 %v1335_v0, %v8887_v58  ;;  %v1451_v46 = vadd.f32 %v1166_v43, %v8888_v44  ;;  %v1341_v57 = vadd.f32 %v7790_v37, %v8891_v20  ;;  %v5995_v20 = vld [vmem:[#allocation2 + $0x248] ss:$16 sps:$4 sm:$0xff]  }
 0x263   :  { %v1695_v42 = vmax.f32 %v1583_v26, 0.0  ;;  %v1453_v14 = vadd.f32 %v1339_v38, %v8889_v3  ;;  %v1452_v61 = vadd.f32 %v1168_v8, %v8890_v59  ;;  %v1170_v19 = vadd.f32 %v7798_v53, %v8892_v50  ;;  %2269 = vmatprep.mubr.bf16.mxu0 %v7877_v10  ;;  %2370 = vmatprep.mubr.bf16.mxu1 %v7877_v10  ;;  %v5989_v3 = vld [vmem:[#allocation2 + $0x228] ss:$16 sps:$4 sm:$0xff]   ;;  %v5997_v59 = vld [vmem:[#allocation2 + $0x24c] ss:$16 sps:$4 sm:$0xff]  }
 0x264   :  { %v1694_v49 = vmax.f32 %v1582_v36, 0.0  ;;  %v1584_v12 = vadd.f32 %v7230_v54, %v1450_v22  ;;  %v1585_v63 = vadd.f32 %v7218_v21, %v1451_v46  ;;  %v1454_v32 = vadd.f32 %v1341_v57, %v8893_v56  ;;  %2270 = vmatmul.mubr.bf16.gmra.mrb[188].mxu0 %v7862_v45  ;;  %2371 = vmatmul.mubr.bf16.gmra.mrb[188].mxu1 %v7862_v45  ;;  %v6000_v57 = vld [vmem:[#allocation2 + $0x264] ss:$16 sps:$4 sm:$0xff]   ;;  %v6015_v56 = vld [vmem:[#allocation2 + $0x2ac] ss:$16 sps:$4 sm:$0xff]  }
 0x265   :  { %v1755_v60 = vmax.f32 %v1693_v1, %v1695_v42  ;;  %v1587_v27 = vadd.f32 %v7222_v47, %v1453_v14  ;;  %v1586_v24 = vadd.f32 %v7226_v39, %v1452_v61  ;;  %v1589_v30 = vadd.f32 %v7218_v21, %v1170_v19  ;;  %v8896_v21 = vld [vmem:[#allocation94_spill] sm:$0xff]  ;;  %v6009_v19 = vld [vmem:[#allocation2 + $0x28c] ss:$16 sps:$4 sm:$0xff]  }
 0x266   :  { %v1696_v37 = vmax.f32 %v1584_v12, 0.0  ;;  %v1697_v25 = vmax.f32 %v1585_v63, 0.0  ;;  %v1343_v53 = vadd.f32 %v7800_v31, %v8894_v29  ;;  %v1588_v6 = vadd.f32 %v7230_v54, %v1454_v32  ;;  %v5986_v42 = vld [vmem:[#allocation2 + $0x220] ss:$16 sps:$4 sm:$0xff]   ;;  %v5994_v14 = vld [vmem:[#allocation2 + $0x244] ss:$16 sps:$4 sm:$0xff]  }
 0x267   :  { %v1785_v51 = vmax.f32 %v1753_v18, %v1755_v60  ;;  %v1699_v16 = vmax.f32 %v1587_v27, 0.0  ;;  %v1698_v1 = vmax.f32 %v1586_v24, 0.0  ;;  %v1701_v15 = vmax.f32 %v1589_v30, 0.0  ;;  %v5992_v61 = vld [vmem:[#allocation2 + $0x240] ss:$16 sps:$4 sm:$0xff]  }
 0x268   :  { %v1756_v28 = vmax.f32 %v1694_v49, %v1696_v37  ;;  %v1591_v11 = vadd.f32 %v7222_v47, %v1343_v53  ;;  %v1172_v0 = vadd.f32 %v7807_v2, %v8895_v41  ;;  %v1700_v43 = vmax.f32 %v1588_v6, 0.0  ;;  %v6003_v49 = vld [vmem:[#allocation2 + $0x26c] ss:$16 sps:$4 sm:$0xff]   ;;  %v5998_v12 = vld [vmem:[#allocation2 + $0x260] ss:$16 sps:$4 sm:$0xff]  }
 0x269   :  { %v1757_v34 = vmax.f32 %v1697_v25, %v1699_v16  ;;  %v1345_v26 = vadd.f32 %v7809_v4, %v8896_v21  ;;  %v5988_v4 = vld [vmem:[#allocation2 + $0x224] ss:$16 sps:$4 sm:$0xff]   ;;  %v6001_v63 = vld [vmem:[#allocation2 + $0x268] ss:$16 sps:$4 sm:$0xff]   ;;  %v6004_v60 = vld [vmem:[#allocation2 + $0x280] ss:$16 sps:$4 sm:$0xff]  }
 0x26a   :  { %v1786_v31 = vmax.f32 %v1754_v52, %v1756_v28  ;;  %v1703_v33 = vmax.f32 %v1591_v11, 0.0  ;;  %v1590_v18 = vadd.f32 %v7226_v39, %v1172_v0  ;;  %v1758_v38 = vmax.f32 %v1698_v1, %v1700_v43  ;;  %v5983_v39 = vld [vmem:[#allocation2 + $0x208] ss:$16 sps:$4 sm:$0xff]   ;;  %v5991_v52 = vld [vmem:[#allocation2 + $0x22c] ss:$16 sps:$4 sm:$0xff]  }
 0x26b   :  { %v1592_v62 = vadd.f32 %v7230_v54, %v1345_v26  ;;  %v5980_v54 = vld [vmem:[#allocation2 + $0x200] ss:$16 sps:$4 sm:$0xff]   ;;  %v6006_v50 = vld [vmem:[#allocation2 + $0x284] ss:$16 sps:$4 sm:$0xff]   ;;  %v6007_v27 = vld [vmem:[#allocation2 + $0x288] ss:$16 sps:$4 sm:$0xff]  }
 0x26c   :  { %v1759_v8 = vmax.f32 %v1701_v15, %v1703_v33  ;;  %v1702_v36 = vmax.f32 %v1590_v18, 0.0  ;;  %v6012_v24 = vld [vmem:[#allocation2 + $0x2a4] ss:$16 sps:$4 sm:$0xff]   ;;  %v6010_v32 = vld [vmem:[#allocation2 + $0x2a0] ss:$16 sps:$4 sm:$0xff]  }
 0x26d   :  { %v1704_v58 = vmax.f32 %v1592_v62, 0.0  ;;  %v6013_v37 = vld [vmem:[#allocation2 + $0x2a8] ss:$16 sps:$4 sm:$0xff]   ;;  %v6018_v25 = vld [vmem:[#allocation2 + $0x2c4] ss:$16 sps:$4 sm:$0xff]  }
 0x26e   :  { %v1787_v22 = vmax.f32 %v1757_v34, %v1759_v8  ;;  %v6021_v30 = vld [vmem:[#allocation2 + $0x2cc] ss:$16 sps:$4 sm:$0xff]   ;;  %v6016_v29 = vld [vmem:[#allocation2 + $0x2c0] ss:$16 sps:$4 sm:$0xff]   ;;  %v6019_v53 = vld [vmem:[#allocation2 + $0x2c8] ss:$16 sps:$4 sm:$0xff]  }
 0x26f   :  { %v1760_v47 = vmax.f32 %v1702_v36, %v1704_v58  ;;  %v6027_v16 = vld [vmem:[#allocation2 + $0x2ec] ss:$16 sps:$4 sm:$0xff]   ;;  %v6022_v1 = vld [vmem:[#allocation2 + $0x2e0] ss:$16 sps:$4 sm:$0xff]   ;;  %v6025_v6 = vld [vmem:[#allocation2 + $0x2e8] ss:$16 sps:$4 sm:$0xff]  }
 0x270   :  { %v7908_v44 = vpack.c.bf16 %v1787_v22, %v1785_v51  ;;  %v6024_v51 = vld [vmem:[#allocation2 + $0x2e4] ss:$16 sps:$4 sm:$0xff]   ;;  %v6033_v15 = vld [vmem:[#allocation2 + $0x30c] ss:$16 sps:$4 sm:$0xff]   ;;  %v6028_v11 = vld [vmem:[#allocation2 + $0x300] ss:$16 sps:$4 sm:$0xff]  }
 0x271   :  { %v1788_v2 = vmax.f32 %v1758_v38, %v1760_v47  ;;  %v6030_v28 = vld [vmem:[#allocation2 + $0x304] ss:$16 sps:$4 sm:$0xff]   ;;  %v6031_v41 = vld [vmem:[#allocation2 + $0x308] ss:$16 sps:$4 sm:$0xff]   ;;  %v6039_v34 = vld [vmem:[#allocation2 + $0x32c] ss:$16 sps:$4 sm:$0xff]  }
 0x272   :  { %v6036_v0 = vld [vmem:[#allocation2 + $0x324] ss:$16 sps:$4 sm:$0xff]   ;;  %v6034_v43 = vld [vmem:[#allocation2 + $0x320] ss:$16 sps:$4 sm:$0xff]   ;;  %v6037_v21 = vld [vmem:[#allocation2 + $0x328] ss:$16 sps:$4 sm:$0xff]  }
 0x273   :  { %v7910_v46 = vpack.c.bf16 %v1788_v2, %v1786_v31  ;;  %v6042_v26 = vld [vmem:[#allocation2 + $0x344] ss:$16 sps:$4 sm:$0xff]   ;;  %v6045_v31 = vld [vmem:[#allocation2 + $0x34c] ss:$16 sps:$4 sm:$0xff]   ;;  %v6040_v33 = vld [vmem:[#allocation2 + $0x340] ss:$16 sps:$4 sm:$0xff]  }
 0x274   :  { %v6043_v18 = vld [vmem:[#allocation2 + $0x348] ss:$16 sps:$4 sm:$0xff]   ;;  %v6048_v38 = vld [vmem:[#allocation2 + $0x364] ss:$16 sps:$4 sm:$0xff]   ;;  %v6051_v62 = vld [vmem:[#allocation2 + $0x36c] ss:$16 sps:$4 sm:$0xff]  }
 0x275   :  { %2279 = vmatprep.mubr.bf16.mxu0 %v7910_v46  ;;  %2380 = vmatprep.mubr.bf16.mxu1 %v7910_v46  ;;  %v6046_v8 = vld [vmem:[#allocation2 + $0x360] ss:$16 sps:$4 sm:$0xff]   ;;  %v6049_v36 = vld [vmem:[#allocation2 + $0x368] ss:$16 sps:$4 sm:$0xff]   ;;  %v6054_v58 = vld [vmem:[#allocation2 + $0x384] ss:$16 sps:$4 sm:$0xff]  }
 0x276   :  { %2280 = vmatmul.mubr.bf16.gmra.mrb[192].mxu0 %v7908_v44  ;;  %2381 = vmatmul.mubr.bf16.gmra.mrb[192].mxu1 %v7908_v44  ;;  %v6057_v22 = vld [vmem:[#allocation2 + $0x38c] ss:$16 sps:$4 sm:$0xff]   ;;  %v6052_v47 = vld [vmem:[#allocation2 + $0x380] ss:$16 sps:$4 sm:$0xff]   ;;  %v6055_v2 = vld [vmem:[#allocation2 + $0x388] ss:$16 sps:$4 sm:$0xff]  }
 0x277   :  { %2871 = vmatprep.mubr.bf16.mxu0 %v7319_v48  ;;  %2972 = vmatprep.mubr.bf16.mxu1 %v7319_v48 }
 0x27e   :  { %2872 = vmatmul.mubr.bf16.vlgmr.msra.gmra.mrb[196].mxu0 %v7303_v5  ;;  %2973 = vmatmul.mubr.bf16.vlgmr.msra.gmra.mrb[196].mxu1 %v7303_v5 }
 0x27f   :  { %3362 = vmatpush1.bf16.msra.mxu0 %v5980_v54  ;;  %3465 = vmatpush1.bf16.msra.mxu1 %v5983_v39  ;;  %v6060_v54 = vld [vmem:[#allocation2 + $0x3a4] ss:$16 sps:$4 sm:$0xff]   ;;  %v6063_v39 = vld [vmem:[#allocation2 + $0x3ac] ss:$16 sps:$4 sm:$0xff]  }
 0x280   :  { %2879 = vmatprep.mubr.bf16.mxu0 %v7406_v40  ;;  %2980 = vmatprep.mubr.bf16.mxu1 %v7406_v40 }
 0x281   :  { %3363 = vmatprep.subr.bf16.mxu0 %v5988_v4  ;;  %3466 = vmatprep.subr.bf16.mxu1 %v5991_v52  ;;  %v6058_v4 = vld [vmem:[#allocation2 + $0x3a0] ss:$16 sps:$4 sm:$0xff]   ;;  %v6061_v52 = vld [vmem:[#allocation2 + $0x3a8] ss:$16 sps:$4 sm:$0xff]  }
 0x283   :  { %3364 = vmatpush1.bf16.msra.mxu0 %v5986_v42  ;;  %3467 = vmatpush1.bf16.msra.mxu1 %v5989_v3  ;;  %v6066_v42 = vld [vmem:[#allocation2 + $0x3c4] ss:$16 sps:$4 sm:$0xff]   ;;  %v6069_v3 = vld [vmem:[#allocation2 + $0x3cc] ss:$16 sps:$4 sm:$0xff]  }
 0x284   :  { %3365 = vmatprep.subr.bf16.mxu0 %v5994_v14  ;;  %3468 = vmatprep.subr.bf16.mxu1 %v5997_v59  ;;  %v6064_v14 = vld [vmem:[#allocation2 + $0x3c0] ss:$16 sps:$4 sm:$0xff]   ;;  %v6067_v59 = vld [vmem:[#allocation2 + $0x3c8] ss:$16 sps:$4 sm:$0xff]  }
 0x286   :  { %2880 = vmatmul.mubr.bf16.gmra.mrb[200].mxu0 %v7392_v23  ;;  %2981 = vmatmul.mubr.bf16.gmra.mrb[200].mxu1 %v7392_v23 }
 0x287   :  { %3366 = vmatpush1.bf16.msra.mxu0 %v5992_v61  ;;  %3469 = vmatpush1.bf16.msra.mxu1 %v5995_v20  ;;  %v6072_v61 = vld [vmem:[#allocation2 + $0x3e4] ss:$16 sps:$4 sm:$0xff]   ;;  %v6075_v20 = vld [vmem:[#allocation2 + $0x3ec] ss:$16 sps:$4 sm:$0xff]  }
 0x288   :  { %2889 = vmatprep.mubr.bf16.mxu0 %v7533_v17  ;;  %2990 = vmatprep.mubr.bf16.mxu1 %v7533_v17 }
 0x289   :  { %3367 = vmatprep.subr.bf16.mxu0 %v6000_v57  ;;  %3470 = vmatprep.subr.bf16.mxu1 %v6003_v49  ;;  %v6070_v57 = vld [vmem:[#allocation2 + $0x3e0] ss:$16 sps:$4 sm:$0xff]   ;;  %v6073_v49 = vld [vmem:[#allocation2 + $0x3e8] ss:$16 sps:$4 sm:$0xff]  }
 0x28b   :  { %3368 = vmatpush1.bf16.msra.mxu0 %v5998_v12  ;;  %3471 = vmatpush1.bf16.msra.mxu1 %v6001_v63 }
 0x28c   :  { %3369 = vmatprep.subr.bf16.mxu0 %v6006_v50  ;;  %3472 = vmatprep.subr.bf16.mxu1 %v6009_v19 }
 0x28e   :  { %2890 = vmatmul.mubr.bf16.gmra.mrb[204].mxu0 %v7501_v9  ;;  %2991 = vmatmul.mubr.bf16.gmra.mrb[204].mxu1 %v7501_v9 }
 0x28f   :  { %3370 = vmatpush1.bf16.msra.mxu0 %v6004_v60  ;;  %3473 = vmatpush1.bf16.msra.mxu1 %v6007_v27  ;;  %v6077_v27 = vld [vmem:[#allocation4] sm:$0xff]  }
 0x290   :  { %2899 = vmatprep.mubr.bf16.mxu0 %v7668_v35  ;;  %3000 = vmatprep.mubr.bf16.mxu1 %v7668_v35 }
 0x291   :  { %3371 = vmatprep.subr.bf16.mxu0 %v6012_v24  ;;  %3474 = vmatprep.subr.bf16.mxu1 %v6015_v56  ;;  %v6079_v24 = vld [vmem:[#allocation4 + $0x8] sm:$0xff]   ;;  %v6080_v56 = vld [vmem:[#allocation4 + $0x50] sm:$0xff]  }
 0x293   :  { %3372 = vmatpush1.bf16.msra.mxu0 %v6010_v32  ;;  %3475 = vmatpush1.bf16.msra.mxu1 %v6013_v37  ;;  %v6081_v32 = vld [vmem:[#allocation4 + $0x10] sm:$0xff]   ;;  %v6082_v37 = vld [vmem:[#allocation4 + $0x58] sm:$0xff]  }
 0x294   :  { %3373 = vmatprep.subr.bf16.mxu0 %v6018_v25  ;;  %3476 = vmatprep.subr.bf16.mxu1 %v6021_v30 }
 0x296   :  { %2900 = vmatmul.mubr.bf16.gmra.mrb[208].mxu0 %v7647_v55  ;;  %3001 = vmatmul.mubr.bf16.gmra.mrb[208].mxu1 %v7647_v55 }
 0x297   :  { %3374 = vmatpush1.bf16.msra.mxu0 %v6016_v29  ;;  %3477 = vmatpush1.bf16.msra.mxu1 %v6019_v53 }
 0x298   :  { %2909 = vmatprep.mubr.bf16.mxu0 %v7792_v7  ;;  %3010 = vmatprep.mubr.bf16.mxu1 %v7792_v7 }
 0x299   :  { %3375 = vmatprep.subr.bf16.mxu0 %v6024_v51  ;;  %3478 = vmatprep.subr.bf16.mxu1 %v6027_v16 }
 0x29b   :  { %3376 = vmatpush1.bf16.msra.mxu0 %v6022_v1  ;;  %3479 = vmatpush1.bf16.msra.mxu1 %v6025_v6  ;;  %v6083_v6 = vld [vmem:[#allocation4 + $0x18] sm:$0xff]  }
 0x29c   :  { %3377 = vmatprep.subr.bf16.mxu0 %v6030_v28  ;;  %3480 = vmatprep.subr.bf16.mxu1 %v6033_v15  ;;  %v6084_v28 = vld [vmem:[#allocation4 + $0x60] sm:$0xff]  }
 0x29d   :  { %v6085_v15 = vld [vmem:[#allocation4 + $0x20] sm:$0xff]  }
 0x29e   :  { %2910 = vmatmul.mubr.bf16.gmra.mrb[212].mxu0 %v7770_v13  ;;  %3011 = vmatmul.mubr.bf16.gmra.mrb[212].mxu1 %v7770_v13 }
 0x29f   :  { %3378 = vmatpush1.bf16.msra.mxu0 %v6028_v11  ;;  %3481 = vmatpush1.bf16.msra.mxu1 %v6031_v41  ;;  %v6086_v11 = vld [vmem:[#allocation4 + $0xc0] sm:$0xff]  }
 0x2a0   :  { %2919 = vmatprep.mubr.bf16.mxu0 %v7877_v10  ;;  %3020 = vmatprep.mubr.bf16.mxu1 %v7877_v10  ;;  %v6087_v41 = vld [vmem:[#allocation4 + $0x80] sm:$0xff]  }
 0x2a1   :  { %3379 = vmatprep.subr.bf16.mxu0 %v6036_v0  ;;  %3482 = vmatprep.subr.bf16.mxu1 %v6039_v34  ;;  %v6088_v0 = vld [vmem:[#allocation4 + $0x68] sm:$0xff]  }
 0x2a2   :  { %v6089_v34 = vld [vmem:[#allocation4 + $0xc8] sm:$0xff]  }
 0x2a3   :  { %3380 = vmatpush1.bf16.msra.mxu0 %v6034_v43  ;;  %3483 = vmatpush1.bf16.msra.mxu1 %v6037_v21  ;;  %v6090_v43 = vld [vmem:[#allocation4 + $0x28] sm:$0xff]  }
 0x2a4   :  { %3381 = vmatprep.subr.bf16.mxu0 %v6042_v26  ;;  %3484 = vmatprep.subr.bf16.mxu1 %v6045_v31  ;;  %v6091_v21 = vld [vmem:[#allocation4 + $0x88] sm:$0xff]   ;;  %v6092_v31 = vld [vmem:[#allocation4 + $0xd0] sm:$0xff]  }
 0x2a6   :  { %2920 = vmatmul.mubr.bf16.gmra.mrb[216].mxu0 %v7862_v45  ;;  %3021 = vmatmul.mubr.bf16.gmra.mrb[216].mxu1 %v7862_v45 }
 0x2a7   :  { %3382 = vmatpush1.bf16.msra.mxu0 %v6040_v33  ;;  %3485 = vmatpush1.bf16.msra.mxu1 %v6043_v18 }
 0x2a8   :  { %2929 = vmatprep.mubr.bf16.mxu0 %v7910_v46  ;;  %3030 = vmatprep.mubr.bf16.mxu1 %v7910_v46 }
 0x2a9   :  { %3383 = vmatprep.subr.bf16.mxu0 %v6048_v38  ;;  %3486 = vmatprep.subr.bf16.mxu1 %v6051_v62  ;;  %v6093_v38 = vld [vmem:[#allocation4 + $0x90] sm:$0xff]  }
 0x2ab   :  { %3384 = vmatpush1.bf16.msra.mxu0 %v6046_v8  ;;  %3487 = vmatpush1.bf16.msra.mxu1 %v6049_v36 }
 0x2ac   :  { %3385 = vmatprep.subr.bf16.mxu0 %v6054_v58  ;;  %3488 = vmatprep.subr.bf16.mxu1 %v6057_v22 }
 0x2ae   :  { %2930 = vmatmul.mubr.bf16.gmra.mrb[220].mxu0 %v7908_v44  ;;  %3031 = vmatmul.mubr.bf16.gmra.mrb[220].mxu1 %v7908_v44 }
 0x2af   :  { %3386 = vmatpush1.bf16.msra.mxu0 %v6052_v47  ;;  %3489 = vmatpush1.bf16.msra.mxu1 %v6055_v2  ;;  %v6096_v47 = vld [vmem:[#allocation4 + $0xd8] sm:$0xff]  }
 0x2b0   :  { %3393 = vmatprep.mubr.bf16.mxu0 %v7319_v48  ;;  %3496 = vmatprep.mubr.bf16.mxu1 %v7319_v48  ;;  %v6097_v2 = vld [vmem:[#allocation4 + $0x98] sm:$0xff]  }
 0x2b1   :  { %3387 = vmatprep.subr.bf16.mxu0 %v6060_v54  ;;  %3490 = vmatprep.subr.bf16.mxu1 %v6063_v39  ;;  %v6094_v54 = vld [vmem:[#allocation4 + $0x70] sm:$0xff]  }
 0x2b2   :  { %v6095_v39 = vld [vmem:[#allocation4 + $0x30] sm:$0xff]  }
 0x2b3   :  { %3388 = vmatpush1.bf16.msra.mxu0 %v6058_v4  ;;  %3491 = vmatpush1.bf16.msra.mxu1 %v6061_v52  ;;  %v6098_v4 = vld [vmem:[#allocation4 + $0xe0] sm:$0xff]  }
 0x2b4   :  { %3389 = vmatprep.subr.bf16.mxu0 %v6066_v42  ;;  %3492 = vmatprep.subr.bf16.mxu1 %v6069_v3  ;;  %v6099_v52 = vld [vmem:[#allocation4 + $0xa0] sm:$0xff]   ;;  %v6100_v42 = vld [vmem:[#allocation4 + $0x78] sm:$0xff]   ;;  %v6102_v3 = vld [vmem:[#allocation4 + $0xe8] sm:$0xff]  }
 0x2b7   :  { %3390 = vmatpush1.bf16.msra.mxu0 %v6064_v14  ;;  %3493 = vmatpush1.bf16.msra.mxu1 %v6067_v59  ;;  %v6101_v14 = vld [vmem:[#allocation4 + $0x38] sm:$0xff]   ;;  %v6103_v59 = vld [vmem:[#allocation4 + $0xa8] sm:$0xff]  }
 0x2b8   :  { %3391 = vmatprep.subr.bf16.mxu0 %v6072_v61  ;;  %3494 = vmatprep.subr.bf16.mxu1 %v6075_v20 }
 0x2bb   :  { %3392 = vmatpush1.bf16.msra.mxu0 %v6070_v57  ;;  %3495 = vmatpush1.bf16.msra.mxu1 %v6073_v49 }
 0x2bc   :  { %5582 = vmatprep.subr.bf16.mxu1 %v6086_v11 }
 0x2be   :  { %3394 = vmatmul.mubr.bf16.vlgmr.msra.gmra.mrb[224].mxu0 %v7303_v5  ;;  %3497 = vmatmul.mubr.bf16.vlgmr.msra.gmra.mrb[224].mxu1 %v7303_v5 }
 0x2bf   :  { %3403 = vmatprep.mubr.bf16.mxu0 %v7406_v40  ;;  %3506 = vmatprep.mubr.bf16.mxu1 %v7406_v40 }
 0x2c0   :  { %5583 = vmatpush3.bf16.msra.mxu1 %v6087_v41 }
 0x2c1   :  { %5584 = vmatprep.subr.bf16.mxu1 %v6089_v34 }
 0x2c4   :  { %5585 = vmatpush3.bf16.msra.mxu1 %v6091_v21 }
 0x2c5   :  { %5586 = vmatprep.subr.bf16.mxu1 %v6092_v31 }
 0x2c6   :  { %3404 = vmatmul.mubr.bf16.gmra.mrb[228].mxu0 %v7392_v23  ;;  %3507 = vmatmul.mubr.bf16.gmra.mrb[228].mxu1 %v7392_v23 }
 0x2c7   :  { %3413 = vmatprep.mubr.bf16.mxu0 %v7533_v17  ;;  %3516 = vmatprep.mubr.bf16.mxu1 %v7533_v17 }
 0x2c8   :  { %5587 = vmatpush3.bf16.msra.mxu1 %v6093_v38 }
 0x2c9   :  { %5588 = vmatprep.subr.bf16.mxu1 %v6096_v47 }
 0x2cc   :  { %5589 = vmatpush3.bf16.msra.mxu1 %v6097_v2 }
 0x2cd   :  { %5590 = vmatprep.subr.bf16.mxu1 %v6098_v4 }
 0x2ce   :  { %3414 = vmatmul.mubr.bf16.gmra.mrb[232].mxu0 %v7501_v9  ;;  %3517 = vmatmul.mubr.bf16.gmra.mrb[232].mxu1 %v7501_v9 }
 0x2cf   :  { %3423 = vmatprep.mubr.bf16.mxu0 %v7668_v35  ;;  %3526 = vmatprep.mubr.bf16.mxu1 %v7668_v35 }
 0x2d0   :  { %5591 = vmatpush3.bf16.msra.mxu1 %v6099_v52 }
 0x2d1   :  { %5592 = vmatprep.subr.bf16.mxu1 %v6102_v3 }
 0x2d4   :  { %5593 = vmatpush3.bf16.msra.mxu1 %v6103_v59 }
 0x2d5   :  { %v7960_v5 = vpop.f32.mrb[168].mxu0 }
 0x2d6   :  { %3424 = vmatmul.mubr.bf16.gmra.mrb[236].mxu0 %v7647_v55  ;;  %3527 = vmatmul.mubr.bf16.gmra.mrb[236].mxu1 %v7647_v55  ;;  %v7964_v48 = vpop.f32.mrb[168].mxu1  ;;  %v7966_v23 = vpop.f32.mrb[169].mxu0 }
 0x2d7   :  { %3433 = vmatprep.mubr.bf16.mxu0 %v7792_v7  ;;  %3536 = vmatprep.mubr.bf16.mxu1 %v7792_v7  ;;  %v7968_v40 = vpop.f32.mrb[169].mxu1  ;;  %v7970_v9 = vpop.f32.mrb[170].mxu0 }
 0x2d8   :  { %v7972_v17 = vpop.f32.mrb[170].mxu1  ;;  %v7974_v35 = vpop.f32.mrb[171].mxu0 }
 0x2d9   :  { %v7976_v12 = vpop.f32.mrb[171].mxu1 }
 0x2de   :  { %3434 = vmatmul.mubr.bf16.gmra.mrb[240].mxu0 %v7770_v13  ;;  %3537 = vmatmul.mubr.bf16.gmra.mrb[240].mxu1 %v7770_v13 }
 0x2df   :  { %3443 = vmatprep.mubr.bf16.mxu0 %v7877_v10  ;;  %3546 = vmatprep.mubr.bf16.mxu1 %v7877_v10  ;;  %v6076_v10 = vld [vmem:[#allocation4 + $0x40] sm:$0xff]  }
 0x2e0   :  { %5560 = vmatprep.subr.bf16.mxu0 %v6076_v10 }
 0x2e1   :  { %5561 = vmatpush3.bf16.msra.mxu0 %v6077_v27 }
 0x2e6   :  { %3444 = vmatmul.mubr.bf16.gmra.mrb[244].mxu0 %v7862_v45  ;;  %3547 = vmatmul.mubr.bf16.gmra.mrb[244].mxu1 %v7862_v45 }
 0x2e7   :  { %3453 = vmatprep.mubr.bf16.mxu0 %v7910_v46  ;;  %3556 = vmatprep.mubr.bf16.mxu1 %v7910_v46  ;;  %v6078_v46 = vld [vmem:[#allocation4 + $0x48] sm:$0xff]  }
 0x2e8   :  { %v7986_v55 = vpop.f32.mrb[172].mxu0  ;;  %v7988_v7 = vpop.f32.mrb[172].mxu1  ;;  %5562 = vmatprep.subr.bf16.mxu0 %v6078_v46 }
 0x2e9   :  { %v7990_v63 = vpop.f32.mrb[173].mxu0  ;;  %v7992_v50 = vpop.f32.mrb[173].mxu1  ;;  %5563 = vmatpush3.bf16.msra.mxu0 %v6079_v24 }
 0x2ea   :  { %v7994_v13 = vpop.f32.mrb[174].mxu0  ;;  %v7996_v19 = vpop.f32.mrb[174].mxu1  ;;  %5564 = vmatprep.subr.bf16.mxu0 %v6080_v56  ;;  %v6104_v56 = vld [vmem:[#allocation4 + $0xf0] sm:$0xff]  }
 0x2eb   :  { %v7998_v60 = vpop.f32.mrb[175].mxu0  ;;  %v8000_v45 = vpop.f32.mrb[175].mxu1  ;;  %5594 = vmatprep.subr.bf16.mxu1 %v6104_v56 }
 0x2ed   :  { %5565 = vmatpush3.bf16.msra.mxu0 %v6081_v32  ;;  %v6105_v32 = vld [vmem:[#allocation4 + $0x140] sm:$0xff]  }
 0x2ee   :  { %3454 = vmatmul.mubr.bf16.gmra.mrb[248].mxu0 %v7908_v44  ;;  %3557 = vmatmul.mubr.bf16.gmra.mrb[248].mxu1 %v7908_v44 }
 0x2ef   :  { %5566 = vmatprep.subr.bf16.mxu0 %v6082_v37  ;;  %v6106_v37 = vld [vmem:[#allocation4 + $0xb0] sm:$0xff]  }
 0x2f0   :  { %5595 = vmatpush3.bf16.msra.mxu1 %v6106_v37 }
 0x2f1   :  { %5567 = vmatpush3.bf16.msra.mxu0 %v6083_v6  ;;  %v6108_v6 = vld [vmem:[#allocation4 + $0xf8] sm:$0xff]  }
 0x2f2   :  { %5568 = vmatprep.subr.bf16.mxu0 %v6084_v28  ;;  %v6110_v28 = vld [vmem:[#allocation4 + $0xb8] sm:$0xff]   ;;  %5596 = vmatprep.subr.bf16.mxu1 %v6108_v6 }
 0x2f4   :  { %5597 = vmatpush3.bf16.msra.mxu1 %v6110_v28 }
 0x2f5   :  { %5569 = vmatpush3.bf16.msra.mxu0 %v6085_v15 }
 0x2f6   :  { %5570 = vmatprep.subr.bf16.mxu0 %v6088_v0  ;;  %v6113_v0 = vld [vmem:[#allocation4 + $0x1c0] sm:$0xff]  }
 0x2f7   :  { %5626 = vmatprep.subr.bf16.mxu1 %v6113_v0 }
 0x2f9   :  { %5571 = vmatpush3.bf16.msra.mxu0 %v6090_v43 }
 0x2fa   :  { %5572 = vmatprep.subr.bf16.mxu0 %v6094_v54 }
 0x2fc   :  { %v8004_v25 = vpop.f32.mrb[176].mxu0  ;;  %v8006_v30 = vpop.f32.mrb[176].mxu1 }
 0x2fd   :  { %v8008_v29 = vpop.f32.mrb[177].mxu0  ;;  %v8010_v53 = vpop.f32.mrb[177].mxu1  ;;  %5573 = vmatpush3.bf16.msra.mxu0 %v6095_v39 }
 0x2fe   :  { %v8012_v44 = vpop.f32.mrb[178].mxu0  ;;  %v8014_v51 = vpop.f32.mrb[178].mxu1  ;;  %5574 = vmatprep.subr.bf16.mxu0 %v6100_v42 }
 0x2ff   :  { %8897 = vst [vmem:[#allocation8_spill] sm:$0xff] %v8012_v44  ;;  %8898 = vst [vmem:[#allocation9_spill] sm:$0xff] %v8014_v51  ;;  %v8016_v16 = vpop.f32.mrb[179].mxu0  ;;  %v8018_v1 = vpop.f32.mrb[179].mxu1 }
 0x300   :  { %8899 = vst [vmem:[#allocation95_spill] sm:$0xff] %v8016_v16  ;;  %8900 = vst [vmem:[#allocation10_spill] sm:$0xff] %v8018_v1 }
 0x301   :  { %5575 = vmatpush3.bf16.msra.mxu0 %v6101_v14 }
 0x302   :  { %5604 = vmatprep.subr.bf16.mxu0 %v6105_v32 }
 0x310   :  { %v8020_v26 = vpop.f32.mrb[180].mxu0 }
 0x311   :  { %8901 = vst [vmem:[#allocation96_spill] sm:$0xff] %v8020_v26  ;;  %v8022_v33 = vpop.f32.mrb[180].mxu1  ;;  %v8024_v18 = vpop.f32.mrb[181].mxu0 }
 0x312   :  { %8902 = vst [vmem:[#allocation97_spill] sm:$0xff] %v8022_v33  ;;  %8903 = vst [vmem:[#allocation11_spill] sm:$0xff] %v8024_v18  ;;  %v8026_v62 = vpop.f32.mrb[181].mxu1  ;;  %v8028_v8 = vpop.f32.mrb[182].mxu0 }
 0x313   :  { %8904 = vst [vmem:[#allocation98_spill] sm:$0xff] %v8026_v62  ;;  %8905 = vst [vmem:[#allocation99_spill] sm:$0xff] %v8028_v8  ;;  %v8030_v36 = vpop.f32.mrb[182].mxu1  ;;  %v8032_v58 = vpop.f32.mrb[183].mxu0 }
 0x314   :  { %8906 = vst [vmem:[#allocation12_spill] sm:$0xff] %v8030_v36  ;;  %8907 = vst [vmem:[#allocation100_spill] sm:$0xff] %v8032_v58  ;;  %v8034_v22 = vpop.f32.mrb[183].mxu1 }
 0x315   :  { %8908 = vst [vmem:[#allocation13_spill] sm:$0xff] %v8034_v22 }
 0x324   :  { %v8036_v61 = vpop.f32.mrb[184].mxu0 }
 0x325   :  { %8909 = vst [vmem:[#allocation14_spill] sm:$0xff] %v8036_v61  ;;  %v8038_v20 = vpop.f32.mrb[184].mxu1  ;;  %v8040_v57 = vpop.f32.mrb[185].mxu0 }
 0x326   :  { %8910 = vst [vmem:[#allocation15_spill] sm:$0xff] %v8038_v20  ;;  %8911 = vst [vmem:[#allocation101_spill] sm:$0xff] %v8040_v57  ;;  %v8042_v49 = vpop.f32.mrb[185].mxu1  ;;  %v8044_v10 = vpop.f32.mrb[186].mxu0 }
 0x327   :  { %8912 = vst [vmem:[#allocation102_spill] sm:$0xff] %v8042_v49  ;;  %8913 = vst [vmem:[#allocation103_spill] sm:$0xff] %v8044_v10  ;;  %v8046_v27 = vpop.f32.mrb[186].mxu1  ;;  %v8048_v46 = vpop.f32.mrb[187].mxu0 }
 0x328   :  { %8914 = vst [vmem:[#allocation16_spill] sm:$0xff] %v8046_v27  ;;  %8915 = vst [vmem:[#allocation17_spill] sm:$0xff] %v8048_v46  ;;  %v8050_v24 = vpop.f32.mrb[187].mxu1 }
 0x329   :  { %8916 = vst [vmem:[#allocation18_spill] sm:$0xff] %v8050_v24 }
 0x337   :  { %v8052_v15 = vpop.f32.mrb[188].mxu0  ;;  %v8054_v11 = vpop.f32.mrb[188].mxu1 }
 0x338   :  { %8917 = vst [vmem:[#allocation19_spill] sm:$0xff] %v8052_v15  ;;  %8918 = vst [vmem:[#allocation104_spill] sm:$0xff] %v8054_v11  ;;  %v8056_v41 = vpop.f32.mrb[189].mxu0  ;;  %v8058_v34 = vpop.f32.mrb[189].mxu1 }
 0x339   :  { %8919 = vst [vmem:[#allocation105_spill] sm:$0xff] %v8056_v41  ;;  %8920 = vst [vmem:[#allocation106_spill] sm:$0xff] %v8058_v34  ;;  %v8060_v43 = vpop.f32.mrb[190].mxu0  ;;  %v8062_v21 = vpop.f32.mrb[190].mxu1 }
 0x33a   :  { %8921 = vst [vmem:[#allocation107_spill] sm:$0xff] %v8060_v43  ;;  %8922 = vst [vmem:[#allocation20_spill] sm:$0xff] %v8062_v21  ;;  %v8064_v31 = vpop.f32.mrb[191].mxu0  ;;  %v8066_v38 = vpop.f32.mrb[191].mxu1 }
 0x33b   :  { %8923 = vst [vmem:[#allocation21_spill] sm:$0xff] %v8064_v31  ;;  %8924 = vst [vmem:[#allocation108_spill] sm:$0xff] %v8066_v38 }
 0x349   :  { %v8068_v47 = vpop.f32.mrb[192].mxu0  ;;  %v8070_v2 = vpop.f32.mrb[192].mxu1 }
 0x34a   :  { %8925 = vst [vmem:[#allocation109_spill] sm:$0xff] %v8068_v47  ;;  %8926 = vst [vmem:[#allocation22_spill] sm:$0xff] %v8070_v2  ;;  %v8072_v54 = vpop.f32.mrb[193].mxu0  ;;  %v8074_v39 = vpop.f32.mrb[193].mxu1 }
 0x34b   :  { %8927 = vst [vmem:[#allocation23_spill] sm:$0xff] %v8072_v54  ;;  %8928 = vst [vmem:[#allocation24_spill] sm:$0xff] %v8074_v39  ;;  %v2285_v4 = vpop.f32.mrb[194].mxu0  ;;  %v2386_v52 = vpop.f32.mrb[194].mxu1 }
 0x34c   :  { %v2286_v42 = vpop.f32.mrb[195].mxu0  ;;  %v2387_v3 = vpop.f32.mrb[195].mxu1 }
 0x351   :  { %v2873_v14 = vpop.f32.mrb[196].mxu0  ;;  %v2974_v59 = vpop.f32.mrb[196].mxu1 }
 0x352   :  { %v2874_v56 = vpop.f32.mrb[197].mxu0  ;;  %v2975_v32 = vpop.f32.mrb[197].mxu1 }
 0x353   :  { %v2875_v37 = vpop.f32.mrb[198].mxu0  ;;  %v2976_v6 = vpop.f32.mrb[198].mxu1 }
 0x354   :  { %v2877_v28 = vpop.f32.mrb[199].mxu0  ;;  %v2978_v0 = vpop.f32.mrb[199].mxu1 }
 0x359   :  { %v8076_v38 = vpop.f32.mrb[200].mxu0  ;;  %v8078_v47 = vpop.f32.mrb[200].mxu1 }
 0x35a   :  { %v8080_v2 = vpop.f32.mrb[201].mxu0  ;;  %v8082_v54 = vpop.f32.mrb[201].mxu1 }
 0x35b   :  { %v8084_v4 = vpop.f32.mrb[202].mxu0  ;;  %v8086_v52 = vpop.f32.mrb[202].mxu1 }
 0x35c   :  { %v8088_v42 = vpop.f32.mrb[203].mxu0  ;;  %v8090_v3 = vpop.f32.mrb[203].mxu1 }
 0x361   :  { %v8092_v14 = vpop.f32.mrb[204].mxu0  ;;  %v8094_v59 = vpop.f32.mrb[204].mxu1 }
 0x362   :  { %v8096_v56 = vpop.f32.mrb[205].mxu0  ;;  %v8098_v32 = vpop.f32.mrb[205].mxu1 }
 0x363   :  { %v8100_v39 = vpop.f32.mrb[206].mxu0  ;;  %v8102_v31 = vpop.f32.mrb[206].mxu1 }
 0x364   :  { %v8104_v21 = vpop.f32.mrb[207].mxu0  ;;  %v8106_v43 = vpop.f32.mrb[207].mxu1 }
 0x369   :  { %v8108_v34 = vpop.f32.mrb[208].mxu0  ;;  %v8110_v41 = vpop.f32.mrb[208].mxu1 }
 0x36a   :  { %v8112_v11 = vpop.f32.mrb[209].mxu0  ;;  %v8114_v15 = vpop.f32.mrb[209].mxu1 }
 0x36b   :  { %8929 = vst [vmem:[#allocation110_spill] sm:$0xff] %v8112_v11  ;;  %8930 = vst [vmem:[#allocation25_spill] sm:$0xff] %v8114_v15  ;;  %v8116_v24 = vpop.f32.mrb[210].mxu0  ;;  %v8118_v46 = vpop.f32.mrb[210].mxu1 }
 0x36c   :  { %8931 = vst [vmem:[#allocation26_spill] sm:$0xff] %v8116_v24  ;;  %8932 = vst [vmem:[#allocation111_spill] sm:$0xff] %v8118_v46  ;;  %v8120_v27 = vpop.f32.mrb[211].mxu0  ;;  %v8122_v10 = vpop.f32.mrb[211].mxu1 }
 0x36d   :  { %8933 = vst [vmem:[#allocation112_spill] sm:$0xff] %v8120_v27  ;;  %8934 = vst [vmem:[#allocation27_spill] sm:$0xff] %v8122_v10 }
 0x371   :  { %v8124_v49 = vpop.f32.mrb[212].mxu0  ;;  %v8126_v57 = vpop.f32.mrb[212].mxu1 }
 0x372   :  { %8935 = vst [vmem:[#allocation113_spill] sm:$0xff] %v8124_v49  ;;  %8936 = vst [vmem:[#allocation114_spill] sm:$0xff] %v8126_v57  ;;  %v8128_v20 = vpop.f32.mrb[213].mxu0  ;;  %v8130_v61 = vpop.f32.mrb[213].mxu1 }
 0x373   :  { %8937 = vst [vmem:[#allocation115_spill] sm:$0xff] %v8128_v20  ;;  %8938 = vst [vmem:[#allocation28_spill] sm:$0xff] %v8130_v61  ;;  %v8132_v22 = vpop.f32.mrb[214].mxu0  ;;  %v8134_v58 = vpop.f32.mrb[214].mxu1 }
 0x374   :  { %8939 = vst [vmem:[#allocation116_spill] sm:$0xff] %v8132_v22  ;;  %8940 = vst [vmem:[#allocation29_spill] sm:$0xff] %v8134_v58  ;;  %v8136_v36 = vpop.f32.mrb[215].mxu0  ;;  %v8138_v8 = vpop.f32.mrb[215].mxu1 }
 0x375   :  { %8941 = vst [vmem:[#allocation30_spill] sm:$0xff] %v8136_v36  ;;  %8942 = vst [vmem:[#allocation31_spill] sm:$0xff] %v8138_v8 }
 0x379   :  { %v8140_v62 = vpop.f32.mrb[216].mxu0  ;;  %v8142_v18 = vpop.f32.mrb[216].mxu1 }
 0x37a   :  { %8943 = vst [vmem:[#allocation117_spill] sm:$0xff] %v8140_v62  ;;  %8944 = vst [vmem:[#allocation118_spill] sm:$0xff] %v8142_v18  ;;  %v8144_v33 = vpop.f32.mrb[217].mxu0  ;;  %v8146_v49 = vpop.f32.mrb[217].mxu1 }
 0x37b   :  { %8945 = vst [vmem:[#allocation32_spill] sm:$0xff] %v8144_v33  ;;  %8946 = vst [vmem:[#allocation33_spill] sm:$0xff] %v8146_v49  ;;  %v8148_v57 = vpop.f32.mrb[218].mxu0  ;;  %v8150_v20 = vpop.f32.mrb[218].mxu1 }
 0x37c   :  { %8947 = vst [vmem:[#allocation119_spill] sm:$0xff] %v8148_v57  ;;  %8948 = vst [vmem:[#allocation34_spill] sm:$0xff] %v8150_v20  ;;  %v8152_v61 = vpop.f32.mrb[219].mxu0  ;;  %v8154_v22 = vpop.f32.mrb[219].mxu1 }
 0x37d   :  { %8949 = vst [vmem:[#allocation35_spill] sm:$0xff] %v8152_v61  ;;  %8950 = vst [vmem:[#allocation120_spill] sm:$0xff] %v8154_v22  ;;  %v3623_v22 = vld [vmem:[%s8539_s4] sm:$0xf]  ;;  %v8959_v61 = vld [vmem:[#allocation171_spill] sm:$0xff] }
 0x381   :  { %v8156_v58 = vpop.f32.mrb[220].mxu0  ;;  %v8158_v36 = vpop.f32.mrb[220].mxu1 }
 0x382   :  { %8951 = vst [vmem:[#allocation121_spill] sm:$0xff] %v8156_v58  ;;  %8952 = vst [vmem:[#allocation122_spill] sm:$0xff] %v8158_v36  ;;  %v8160_v8 = vpop.f32.mrb[221].mxu0  ;;  %v8162_v62 = vpop.f32.mrb[221].mxu1  ;;  %v8960_v58 = vsub.s32 0, %v8959_v61 }
 0x383   :  { %8953 = vst [vmem:[#allocation123_spill] sm:$0xff] %v8160_v8  ;;  %8954 = vst [vmem:[#allocation36_spill] sm:$0xff] %v8162_v62  ;;  %v8164_v18 = vpop.f32.mrb[222].mxu0  ;;  %v8166_v33 = vpop.f32.mrb[222].mxu1  ;;  %v8961_v8 = vsub.s32 2, %v8959_v61 }
 0x384   :  { %8955 = vst [vmem:[#allocation37_spill] sm:$0xff] %v8164_v18  ;;  %8956 = vst [vmem:[#allocation124_spill] sm:$0xff] %v8166_v33  ;;  %v8168_v49 = vpop.f32.mrb[223].mxu0  ;;  %v8170_v57 = vpop.f32.mrb[223].mxu1  ;;  %v8177_v20 = vrot.slane %v3623_v22, %v8960_v58  ;;  %v8962_v33 = vsub.s32 1, %v8959_v61 }
 0x385   :  { %8957 = vst [vmem:[#allocation38_spill] sm:$0xff] %v8168_v49  ;;  %8958 = vst [vmem:[#allocation125_spill] sm:$0xff] %v8170_v57  ;;  %v8181_v36 = vrot.slane %v3623_v22, %v8961_v8  ;;  %v8963_v57 = vsub.s32 3, %v8959_v61 }
 0x386   :  { %v8185_v26 = vrot.slane %v3623_v22, %v8962_v33 }
 0x387   :  { %v8189_v49 = vrot.slane %v3623_v22, %v8963_v57 }
 0x391   :  { %v3395_v62 = vpop.f32.mrb[224].mxu0  ;;  %v3498_v18 = vpop.f32.mrb[224].mxu1 }
 0x392   :  { %v3567_v10 = vadd.f32 %v3395_v62, %v2875_v37  ;;  %v3569_v27 = vadd.f32 %v3498_v18, %v2976_v6  ;;  %v3397_v46 = vpop.f32.mrb[225].mxu0  ;;  %v3500_v1 = vpop.f32.mrb[225].mxu1 }
 0x393   :  { %v3568_v58 = vadd.f32 %v3397_v46, %v2877_v28  ;;  %v3570_v24 = vadd.f32 %v3500_v1, %v2978_v0  ;;  %v3399_v15 = vpop.f32.mrb[226].mxu0  ;;  %v3502_v16 = vpop.f32.mrb[226].mxu1 }
 0x394   :  { %v3645_v8 = vadd.f32 %v8177_v20, %v3567_v10  ;;  %v3647_v51 = vadd.f32 %v8181_v36, %v3569_v27  ;;  %v3400_v11 = vadd.f32 %v3399_v15, %v7960_v5  ;;  %v3503_v33 = vadd.f32 %v3502_v16, %v7964_v48  ;;  %v3401_v44 = vpop.f32.mrb[227].mxu0  ;;  %v3504_v61 = vpop.f32.mrb[227].mxu1 }
 0x395   :  { %v3646_v22 = vadd.f32 %v8185_v26, %v3568_v58  ;;  %v3648_v18 = vadd.f32 %v8189_v49, %v3570_v24  ;;  %v3402_v62 = vadd.f32 %v3401_v44, %v7966_v23  ;;  %v3505_v1 = vadd.f32 %v3504_v61, %v7968_v40 }
 0x396   :  { %v3701_v57 = vmax.f32 %v3645_v8, 0.0  ;;  %v3703_v46 = vmax.f32 %v3647_v51, 0.0  ;;  %v3571_v10 = vadd.f32 %v3400_v11, %v8076_v38  ;;  %v3573_v27 = vadd.f32 %v3503_v33, %v8078_v47 }
 0x397   :  { %v3702_v37 = vmax.f32 %v3646_v22, 0.0  ;;  %v3704_v5 = vmax.f32 %v3648_v18, 0.0  ;;  %v3572_v48 = vadd.f32 %v3402_v62, %v8080_v2  ;;  %v3574_v16 = vadd.f32 %v3505_v1, %v8082_v54 }
 0x398   :  { %v3757_v15 = vmax.f32 %v3701_v57, %v3703_v46  ;;  %v3649_v6 = vadd.f32 %v8177_v20, %v3571_v10  ;;  %v3651_v24 = vadd.f32 %v8181_v36, %v3573_v27 }
 0x399   :  { %v8205_v23 = vmax.f32 %v3702_v37, %v3704_v5  ;;  %v3405_v40 = vpop.f32.mrb[228].mxu0  ;;  %v3508_v44 = vpop.f32.mrb[228].mxu1  ;;  %v8210_v2 = vadd.f32 %v8185_v26, %v3572_v48  ;;  %v8213_v54 = vadd.f32 %v8189_v49, %v3574_v16 }
 0x39a   :  { %v3705_v51 = vmax.f32 %v3649_v6, 0.0  ;;  %v3707_v28 = vmax.f32 %v3651_v24, 0.0  ;;  %v3406_v11 = vadd.f32 %v3405_v40, %v7970_v9  ;;  %v3509_v38 = vadd.f32 %v3508_v44, %v7972_v17  ;;  %v3407_v47 = vpop.f32.mrb[229].mxu0  ;;  %v3510_v0 = vpop.f32.mrb[229].mxu1 }
 0x39b   :  { %v3408_v58 = vadd.f32 %v3407_v47, %v7974_v35  ;;  %v3511_v8 = vadd.f32 %v3510_v0, %v7976_v12  ;;  %v3409_v33 = vpop.f32.mrb[230].mxu0  ;;  %v3512_v61 = vpop.f32.mrb[230].mxu1 }
 0x39c   :  { %v3759_v22 = vmax.f32 %v3705_v51, %v3707_v28  ;;  %v3575_v18 = vadd.f32 %v3406_v11, %v8084_v4  ;;  %v3577_v9 = vadd.f32 %v3509_v38, %v8086_v52  ;;  %v3410_v17 = vadd.f32 %v3409_v33, %v7986_v55  ;;  %v3411_v62 = vpop.f32.mrb[231].mxu0  ;;  %v3514_v1 = vpop.f32.mrb[231].mxu1 }
 0x39d   :  { %v3576_v57 = vadd.f32 %v3408_v58, %v8088_v42  ;;  %v3578_v46 = vadd.f32 %v3511_v8, %v8090_v3  ;;  %v3513_v10 = vadd.f32 %v3512_v61, %v7988_v7  ;;  %v3412_v35 = vadd.f32 %v3411_v62, %v7990_v63 }
 0x39e   :  { %v8224_v12 = vmax.f32 %v3757_v15, %v3759_v22  ;;  %v3653_v27 = vadd.f32 %v8177_v20, %v3575_v18  ;;  %v3655_v4 = vadd.f32 %v8181_v36, %v3577_v9  ;;  %v3579_v52 = vadd.f32 %v3410_v17, %v8092_v14 }
 0x39f   :  { %v3581_v55 = vadd.f32 %v3513_v10, %v8094_v59  ;;  %v3580_v37 = vadd.f32 %v3412_v35, %v8096_v56  ;;  %v3706_v42 = vmax.f32 %v8210_v2, 0.0  ;;  %v3708_v63 = vmax.f32 %v8213_v54, 0.0 }
 0x3a0   :  { %v3709_v5 = vmax.f32 %v3653_v27, 0.0  ;;  %v3711_v3 = vmax.f32 %v3655_v4, 0.0  ;;  %v3657_v7 = vadd.f32 %v8177_v20, %v3579_v52  ;;  %v8235_v48 = vadd.f32 %v8185_v26, %v3576_v57 }
 0x3a1   :  { %v8238_v16 = vadd.f32 %v8189_v49, %v3578_v46  ;;  %v3659_v14 = vadd.f32 %v8181_v36, %v3581_v55  ;;  %v3415_v15 = vpop.f32.mrb[232].mxu0  ;;  %v3518_v59 = vpop.f32.mrb[232].mxu1  ;;  %v3515_v24 = vadd.f32 %v3514_v1, %v7992_v50  ;;  %v8244_v11 = vadd.f32 %v8185_v26, %v3580_v37 }
 0x3a2   :  { %v3761_v6 = vmax.f32 %v3709_v5, %v3711_v3  ;;  %v3713_v56 = vmax.f32 %v3657_v7, 0.0  ;;  %v3416_v40 = vadd.f32 %v3415_v15, %v7994_v13  ;;  %v3417_v44 = vpop.f32.mrb[233].mxu0  ;;  %v3520_v51 = vpop.f32.mrb[233].mxu1  ;;  %v3519_v38 = vadd.f32 %v3518_v59, %v7996_v19  ;;  %v8964_v7 = vld [vmem:[#allocation8_spill] sm:$0xff] }
 0x3a3   :  { %v3715_v28 = vmax.f32 %v3659_v14, 0.0  ;;  %v3418_v47 = vadd.f32 %v3417_v44, %v7998_v60  ;;  %v3419_v0 = vpop.f32.mrb[234].mxu0  ;;  %v3522_v2 = vpop.f32.mrb[234].mxu1  ;;  %v3582_v54 = vadd.f32 %v3515_v24, %v8098_v32  ;;  %v3521_v50 = vadd.f32 %v3520_v51, %v8000_v45  ;;  %v8967_v51 = vld [vmem:[#allocation95_spill] sm:$0xff] }
 0x3a4   :  { %v3583_v58 = vadd.f32 %v3416_v40, %v8100_v39  ;;  %v3420_v13 = vadd.f32 %v3419_v0, %v8004_v25  ;;  %v3421_v8 = vpop.f32.mrb[235].mxu0  ;;  %v3524_v33 = vpop.f32.mrb[235].mxu1  ;;  %v3585_v22 = vadd.f32 %v3519_v38, %v8102_v31  ;;  %v3523_v19 = vadd.f32 %v3522_v2, %v8006_v30  ;;  %v8966_v40 = vld [vmem:[#allocation9_spill] sm:$0xff]  ;;  %v8969_v0 = vld [vmem:[#allocation26_spill] sm:$0xff] }
 0x3a5   :  { %v3763_v61 = vmax.f32 %v3713_v56, %v3715_v28  ;;  %v3584_v18 = vadd.f32 %v3418_v47, %v8104_v21  ;;  %v3799_v60 = vpack.c.bf16 %v8224_v12, %v8224_v12  ;;  %v3586_v39 = vadd.f32 %v3521_v50, %v8106_v43  ;;  %v8965_v56 = vld [vmem:[#allocation110_spill] sm:$0xff]  ;;  %v8968_v38 = vld [vmem:[#allocation25_spill] sm:$0xff] }
 0x3a6   :  { %v3661_v32 = vadd.f32 %v8177_v20, %v3583_v58  ;;  %v3587_v45 = vadd.f32 %v3420_v13, %v8108_v34  ;;  %v3710_v25 = vmax.f32 %v8235_v48, 0.0  ;;  %v3663_v17 = vadd.f32 %v8181_v36, %v3585_v22  ;;  %v8971_v13 = vld [vmem:[#allocation111_spill] sm:$0xff] }
 0x3a7   :  { %v8261_v9 = vmax.f32 %v3761_v6, %v3763_v61  ;;  %v3589_v31 = vadd.f32 %v3523_v19, %v8110_v41  ;;  %v3712_v21 = vmax.f32 %v8238_v16, 0.0  ;;  %v3714_v30 = vmax.f32 %v8244_v11, 0.0  ;;  %v6109_v19 = vld [vmem:[#allocation4 + $0x148] sm:$0xff]  }
 0x3a8   :  { %v3717_v62 = vmax.f32 %v3661_v32, 0.0  ;;  %v3665_v1 = vadd.f32 %v8177_v20, %v3587_v45  ;;  %v3660_v57 = vadd.f32 %v8189_v49, %v3582_v54  ;;  %v3719_v43 = vmax.f32 %v3663_v17, 0.0 }
 0x3a9   :  { %v8270_v34 = vadd.f32 %v8185_v26, %v3584_v18  ;;  %v3667_v46 = vadd.f32 %v8181_v36, %v3589_v31  ;;  %v3425_v10 = vpop.f32.mrb[236].mxu0  ;;  %v3528_v35 = vpop.f32.mrb[236].mxu1  ;;  %v8274_v12 = vadd.f32 %v8189_v49, %v3586_v39  ;;  %v3760_v27 = vmax.f32 %v3706_v42, %v3708_v63  ;;  %v8973_v39 = vld [vmem:[#allocation27_spill] sm:$0xff] }
 0x3aa   :  { %v3721_v41 = vmax.f32 %v3665_v1, 0.0  ;;  %v3422_v4 = vadd.f32 %v3421_v8, %v8008_v29  ;;  %v3427_v52 = vpop.f32.mrb[237].mxu0  ;;  %v3530_v55 = vpop.f32.mrb[237].mxu1  ;;  %v3765_v37 = vmax.f32 %v3717_v62, %v3719_v43  ;;  %v3525_v3 = vadd.f32 %v3524_v33, %v8010_v53  ;;  %v8970_v53 = vld [vmem:[#allocation10_spill] sm:$0xff]  ;;  %v8972_v33 = vld [vmem:[#allocation112_spill] sm:$0xff] }
 0x3ab   :  { %v3723_v5 = vmax.f32 %v3667_v46, 0.0  ;;  %v3426_v14 = vadd.f32 %v3425_v10, %v8964_v7  ;;  %v3429_v15 = vpop.f32.mrb[238].mxu0  ;;  %v3532_v59 = vpop.f32.mrb[238].mxu1  ;;  %v3786_v6 = vmax.f32 %v8205_v23, %v3760_v27  ;;  %v3529_v44 = vadd.f32 %v3528_v35, %v8966_v40  ;;  %v6107_v23 = vld [vmem:[#allocation4 + $0x100] sm:$0xff]   ;;  %v8977_v40 = vld [vmem:[#allocation11_spill] sm:$0xff] }
 0x3ac   :  { %v3588_v24 = vadd.f32 %v3422_v4, %v8965_v56  ;;  %v3428_v42 = vadd.f32 %v3427_v52, %v8967_v51  ;;  %v3431_v63 = vpop.f32.mrb[239].mxu0  ;;  %v3534_v29 = vpop.f32.mrb[239].mxu1  ;;  %v3590_v47 = vadd.f32 %v3525_v3, %v8968_v38  ;;  %v3531_v54 = vadd.f32 %v3530_v55, %v8970_v53  ;;  %v8974_v1 = vld [vmem:[#allocation96_spill] sm:$0xff]  ;;  %v6111_v4 = vld [vmem:[#allocation4 + $0x108] sm:$0xff]   ;;  %v8978_v38 = vld [vmem:[#allocation114_spill] sm:$0xff] }
 0x3ad   :  { %v3767_v28 = vmax.f32 %v3721_v41, %v3723_v5  ;;  %v3591_v2 = vadd.f32 %v3426_v14, %v8969_v0  ;;  %v3800_v58 = vpack.c.bf16 %v3786_v6, %v3786_v6  ;;  %v3593_v8 = vadd.f32 %v3529_v44, %v8971_v13  ;;  %v8976_v3 = vld [vmem:[#allocation97_spill] sm:$0xff]  ;;  %v8979_v0 = vld [vmem:[#allocation98_spill] sm:$0xff]  ;;  %v8983_v13 = vld [vmem:[#allocation28_spill] sm:$0xff] }
 0x3ae   :  { %v8287_v50 = vadd.f32 %v8185_v26, %v3588_v24  ;;  %v3592_v61 = vadd.f32 %v3428_v42, %v8972_v33  ;;  %v3716_v22 = vmax.f32 %v3660_v57, 0.0  ;;  %v3594_v45 = vadd.f32 %v3531_v54, %v8973_v39  ;;  %v6112_v24 = vld [vmem:[#allocation4 + $0x150] sm:$0xff]   ;;  %v8982_v54 = vld [vmem:[#allocation12_spill] sm:$0xff]  ;;  %v6116_v39 = vld [vmem:[#allocation4 + $0x158] sm:$0xff]  }
 0x3af   :  { %v8291_v18 = vmax.f32 %v3765_v37, %v3767_v28  ;;  %v3669_v32 = vadd.f32 %v8177_v20, %v3591_v2  ;;  %v3801_v17 = vpack.c.bf16 %v8261_v9, %v8261_v9  ;;  %v3718_v31 = vmax.f32 %v8270_v34, 0.0  ;;  %4748 = vmatprep.mubr.bf16.mxu0 %v3800_v58  ;;  %v8975_v37 = vld [vmem:[#allocation113_spill] sm:$0xff]  ;;  %v6114_v33 = vld [vmem:[#allocation4 + $0x110] sm:$0xff]  }
 0x3b0   :  { %v3671_v62 = vadd.f32 %v8181_v36, %v3593_v8  ;;  %v3430_v43 = vadd.f32 %v3429_v15, %v8974_v1  ;;  %v3720_v46 = vmax.f32 %v8274_v12, 0.0  ;;  %v3722_v57 = vmax.f32 %v8287_v50, 0.0  ;;  %4749 = vmatmul.mubr.bf16.vlgmr.msra.gmra.mrb[252].mxu0 %v3799_v60  ;;  %v8986_v1 = vld [vmem:[#allocation29_spill] sm:$0xff] }
 0x3b1   :  { %v8303_v10 = vadd.f32 %v8189_v49, %v3590_v47  ;;  %v3725_v35 = vmax.f32 %v3669_v32, 0.0  ;;  %v3435_v41 = vpop.f32.mrb[240].mxu0  ;;  %v3538_v27 = vpop.f32.mrb[240].mxu1  ;;  %5605 = vmatpush3.bf16.msra.mxu0 %v6107_v23  ;;  %v8306_v55 = vadd.f32 %v8185_v26, %v3592_v61  ;;  %v3533_v7 = vadd.f32 %v3532_v59, %v8976_v3  ;;  %v8984_v61 = vld [vmem:[#allocation100_spill] sm:$0xff]  ;;  %v8994_v12 = vld [vmem:[#allocation101_spill] sm:$0xff] }
 0x3b2   :  { %v3727_v52 = vmax.f32 %v3671_v62, 0.0  ;;  %v3595_v5 = vadd.f32 %v3430_v43, %v8975_v37  ;;  %v3437_v14 = vpop.f32.mrb[241].mxu0  ;;  %v3540_v15 = vpop.f32.mrb[241].mxu1  ;;  %5606 = vmatprep.subr.bf16.mxu0 %v6109_v19  ;;  %v8311_v6 = vadd.f32 %v8189_v49, %v3594_v45  ;;  %v3762_v60 = vmax.f32 %v3710_v25, %v3712_v21  ;;  %v8980_v25 = vld [vmem:[#allocation115_spill] sm:$0xff]  ;;  %v6115_v32 = vld [vmem:[#allocation4 + $0x180] sm:$0xff]   ;;  %v8988_v37 = vld [vmem:[#allocation13_spill] sm:$0xff] }
 0x3b3   :  { %v3764_v56 = vmax.f32 %v3714_v30, %v3716_v22  ;;  %v3432_v44 = vadd.f32 %v3431_v63, %v8977_v40  ;;  %v3439_v51 = vpop.f32.mrb[242].mxu0  ;;  %v3542_v42 = vpop.f32.mrb[242].mxu1  ;;  %v3597_v47 = vadd.f32 %v3533_v7, %v8978_v38  ;;  %v3535_v2 = vadd.f32 %v3534_v29, %v8979_v0  ;;  %v8981_v21 = vld [vmem:[#allocation99_spill] sm:$0xff]  ;;  %v8985_v45 = vld [vmem:[#allocation116_spill] sm:$0xff] }
 0x3b4   :  { %v3769_v59 = vmax.f32 %v3725_v35, %v3727_v52  ;;  %v3673_v28 = vadd.f32 %v8177_v20, %v3595_v5  ;;  %v8323_v53 = vpop.f32.mrb[243].mxu0  ;;  %v8325_v16 = vpop.f32.mrb[243].mxu1  ;;  %v3436_v30 = vadd.f32 %v3435_v41, %v8981_v21  ;;  %v3539_v63 = vadd.f32 %v3538_v27, %v8982_v54  ;;  %v6117_v27 = vld [vmem:[#allocation4 + $0x1c8] sm:$0xff]  }
 0x3b5   :  { %v3788_v48 = vmax.f32 %v3762_v60, %v3764_v56  ;;  %v3596_v11 = vadd.f32 %v3432_v44, %v8980_v25  ;;  %5607 = vmatpush3.bf16.msra.mxu0 %v6111_v4  ;;  %v3675_v23 = vadd.f32 %v8181_v36, %v3597_v47  ;;  %v3598_v8 = vadd.f32 %v3535_v2, %v8983_v13  ;;  %v8987_v4 = vld [vmem:[#allocation30_spill] sm:$0xff] }
 0x3b6   :  { %v3729_v58 = vmax.f32 %v3673_v28, 0.0  ;;  %v3438_v29 = vadd.f32 %v3437_v14, %v8984_v61  ;;  %v3803_v22 = vpack.c.bf16 %v8291_v18, %v8291_v18  ;;  %5608 = vmatprep.subr.bf16.mxu0 %v6112_v24  ;;  %v3599_v62 = vadd.f32 %v3436_v30, %v8985_v45  ;;  %v8989_v60 = vld [vmem:[#allocation14_spill] sm:$0xff]  ;;  %v8992_v30 = vld [vmem:[#allocation15_spill] sm:$0xff] }
 0x3b7   :  { %v3802_v19 = vpack.c.bf16 %v3788_v48, %v3788_v48  ;;  %v3601_v43 = vadd.f32 %v3539_v63, %v8986_v1  ;;  %v3731_v35 = vmax.f32 %v3675_v23, 0.0  ;;  %v8338_v41 = vadd.f32 %v8185_v26, %v3596_v11  ;;  %v8991_v11 = vld [vmem:[#allocation117_spill] sm:$0xff]  ;;  %v6120_v63 = vld [vmem:[#allocation4 + $0x160] sm:$0xff]   ;;  %v6121_v61 = vld [vmem:[#allocation4 + $0x1d0] sm:$0xff]  }
 0x3b8   :  { %v3600_v52 = vadd.f32 %v3438_v29, %v8987_v4  ;;  %v3541_v5 = vadd.f32 %v3540_v15, %v8988_v37  ;;  %v3724_v3 = vmax.f32 %v8303_v10, 0.0  ;;  %v3677_v7 = vadd.f32 %v8177_v20, %v3599_v62  ;;  %v6118_v10 = vld [vmem:[#allocation4 + $0x118] sm:$0xff]   ;;  %v6122_v1 = vld [vmem:[#allocation4 + $0x120] sm:$0xff]  }
 0x3b9   :  { %4788 = vmatprep.mubr.bf16.mxu1 %v3802_v19  ;;  %v3679_v14 = vadd.f32 %v8181_v36, %v3601_v43  ;;  %v3440_v56 = vadd.f32 %v3439_v51, %v8989_v60  ;;  %v3445_v24 = vpop.f32.mrb[244].mxu0  ;;  %v3548_v40 = vpop.f32.mrb[244].mxu1  ;;  %v3726_v44 = vmax.f32 %v8306_v55, 0.0  ;;  %v3728_v28 = vmax.f32 %v8311_v6, 0.0  ;;  %5609 = vmatpush3.bf16.msra.mxu0 %v6114_v33  ;;  %v8990_v15 = vld [vmem:[#allocation31_spill] sm:$0xff]  ;;  %v6119_v51 = vld [vmem:[#allocation4 + $0x188] sm:$0xff]  }
 0x3ba   :  { %v3771_v38 = vmax.f32 %v3729_v58, %v3731_v35  ;;  %4789 = vmatmul.mubr.bf16.vlgmr.msra.gmra.mrb[252].mxu1 %v3801_v17  ;;  %v3602_v47 = vadd.f32 %v3541_v5, %v8990_v15  ;;  %v3447_v0 = vpop.f32.mrb[245].mxu0  ;;  %v3550_v2 = vpop.f32.mrb[245].mxu1  ;;  %5610 = vmatprep.subr.bf16.mxu0 %v6116_v39  ;;  %v3733_v48 = vmax.f32 %v3677_v7, 0.0  ;;  %v3543_v54 = vadd.f32 %v3542_v42, %v8992_v30  ;;  %v8998_v5 = vld [vmem:[#allocation33_spill] sm:$0xff]  ;;  %v9001_v15 = vld [vmem:[#allocation119_spill] sm:$0xff]  ;;  %v9009_v6 = vld [vmem:[#allocation122_spill] sm:$0xff] }
 0x3bb   :  { %5627 = vmatpush3.bf16.msra.mxu1 %v6115_v32  ;;  %v3735_v25 = vmax.f32 %v3679_v14, 0.0  ;;  %v3603_v21 = vadd.f32 %v3440_v56, %v8991_v11  ;;  %v8354_v58 = vpop.f32.mrb[246].mxu0  ;;  %v8356_v9 = vpop.f32.mrb[246].mxu1  ;;  %v3730_v23 = vmax.f32 %v8338_v41, 0.0  ;;  %v8362_v13 = vadd.f32 %v8189_v49, %v3598_v8  ;;  %v8993_v32 = vld [vmem:[#allocation118_spill] sm:$0xff]  ;;  %v6124_v7 = vld [vmem:[#allocation4 + $0x168] sm:$0xff]  }
 0x3bc   :  { %v8358_v17 = vmax.f32 %v3769_v59, %v3771_v38  ;;  %5628 = vmatprep.subr.bf16.mxu1 %v6117_v27  ;;  %v3766_v33 = vmax.f32 %v3718_v31, %v3720_v46  ;;  %v8368_v42 = vpop.f32.mrb[247].mxu0  ;;  %v8370_v29 = vpop.f32.mrb[247].mxu1  ;;  %v3605_v39 = vadd.f32 %v3543_v54, %v8993_v32  ;;  %v3768_v8 = vmax.f32 %v3722_v57, %v3724_v3  ;;  %v8995_v46 = vld [vmem:[#allocation102_spill] sm:$0xff]  ;;  %v8996_v27 = vld [vmem:[#allocation103_spill] sm:$0xff]  ;;  %v8999_v14 = vld [vmem:[#allocation16_spill] sm:$0xff] }
 0x3bd   :  { %v3773_v19 = vmax.f32 %v3733_v48, %v3735_v25  ;;  %v3681_v59 = vadd.f32 %v8177_v20, %v3603_v21  ;;  %5611 = vmatpush3.bf16.msra.mxu0 %v6118_v10  ;;  %v8377_v45 = vadd.f32 %v8185_v26, %v3600_v52  ;;  %v8380_v34 = vadd.f32 %v8189_v49, %v3602_v47  ;;  %v6123_v57 = vld [vmem:[#allocation4 + $0x190] sm:$0xff]   ;;  %v8997_v52 = vld [vmem:[#allocation32_spill] sm:$0xff]  ;;  %v6126_v30 = vld [vmem:[#allocation4 + $0x128] sm:$0xff]  }
 0x3be   :  { %v3442_v31 = vadd.f32 %v8323_v53, %v8994_v12  ;;  %v3545_v62 = vadd.f32 %v8325_v16, %v8995_v46  ;;  %v3683_v35 = vadd.f32 %v8181_v36, %v3605_v39  ;;  %5612 = vmatprep.subr.bf16.mxu0 %v6120_v63  ;;  %v3790_v50 = vmax.f32 %v3766_v33, %v3768_v8  ;;  %v6125_v53 = vld [vmem:[#allocation4 + $0x1d8] sm:$0xff]   ;;  %v9000_v16 = vld [vmem:[#allocation17_spill] sm:$0xff]  ;;  %v9003_v54 = vld [vmem:[#allocation34_spill] sm:$0xff] }
 0x3bf   :  { %5629 = vmatpush3.bf16.msra.mxu1 %v6119_v51  ;;  %v3737_v43 = vmax.f32 %v3681_v59, 0.0  ;;  %v3446_v4 = vadd.f32 %v3445_v24, %v8996_v27  ;;  %v3549_v60 = vadd.f32 %v3548_v40, %v8999_v14  ;;  %v3448_v56 = vadd.f32 %v3447_v0, %v9000_v16  ;;  %v9002_v51 = vld [vmem:[#allocation18_spill] sm:$0xff]  ;;  %v9004_v63 = vld [vmem:[#allocation35_spill] sm:$0xff]  ;;  %v9005_v8 = vld [vmem:[#allocation120_spill] sm:$0xff] }
 0x3c0   :  { %5630 = vmatprep.subr.bf16.mxu1 %v6121_v61  ;;  %v3604_v37 = vadd.f32 %v3442_v31, %v8997_v52  ;;  %v3606_v3 = vadd.f32 %v3545_v62, %v8998_v5  ;;  %v3739_v38 = vmax.f32 %v3683_v35, 0.0  ;;  %v3804_v10 = vpack.c.bf16 %v3790_v50, %v3790_v50  ;;  %v6127_v32 = vld [vmem:[#allocation4 + $0x198] sm:$0xff]   ;;  %v6128_v31 = vld [vmem:[#allocation4 + $0x170] sm:$0xff]   ;;  %v6129_v50 = vld [vmem:[#allocation4 + $0x1e0] sm:$0xff]  }
 0x3c1   :  { %v3607_v47 = vadd.f32 %v3446_v4, %v9001_v15  ;;  %v3551_v48 = vadd.f32 %v3550_v2, %v9002_v51  ;;  %v3455_v25 = vpop.f32.mrb[248].mxu0  ;;  %v3558_v11 = vpop.f32.mrb[248].mxu1  ;;  %5613 = vmatpush3.bf16.msra.mxu0 %v6122_v1  ;;  %v3609_v40 = vadd.f32 %v3549_v60, %v9003_v54  ;;  %v3608_v0 = vadd.f32 %v3448_v56, %v9004_v63  ;;  %v9006_v5 = vld [vmem:[#allocation19_spill] sm:$0xff]  ;;  %v9007_v14 = vld [vmem:[#allocation104_spill] sm:$0xff]  ;;  %v9010_v55 = vld [vmem:[#allocation105_spill] sm:$0xff] }
 0x3c2   :  { %v8395_v24 = vadd.f32 %v8185_v26, %v3604_v37  ;;  %v8398_v21 = vadd.f32 %v8189_v49, %v3606_v3  ;;  %v3457_v33 = vpop.f32.mrb[249].mxu0  ;;  %v8402_v61 = vpop.f32.mrb[249].mxu1  ;;  %v3732_v59 = vmax.f32 %v8362_v13, 0.0  ;;  %v3775_v2 = vmax.f32 %v3737_v43, %v3739_v38  ;;  %4828 = vmatprep.mubr.bf16.mxu0 %v3804_v10  ;;  %5614 = vmatprep.subr.bf16.mxu0 %v6124_v7  ;;  %v6133_v54 = vld [vmem:[#allocation4 + $0x1e8] sm:$0xff]   ;;  %v9013_v41 = vld [vmem:[#allocation20_spill] sm:$0xff] }
 0x3c3   :  { %5631 = vmatpush3.bf16.msra.mxu1 %v6123_v57  ;;  %v3685_v39 = vadd.f32 %v8177_v20, %v3607_v47  ;;  %v3610_v12 = vadd.f32 %v3551_v48, %v9005_v8  ;;  %v8407_v46 = vpop.f32.mrb[250].mxu0  ;;  %v8409_v62 = vpop.f32.mrb[250].mxu1  ;;  %v3734_v1 = vmax.f32 %v8377_v45, 0.0  ;;  %v3736_v35 = vmax.f32 %v8380_v34, 0.0  ;;  %v6131_v47 = vld [vmem:[#allocation4 + $0x1a0] sm:$0xff]  }
 0x3c4   :  { %5632 = vmatprep.subr.bf16.mxu1 %v6125_v53  ;;  %v3687_v13 = vadd.f32 %v8181_v36, %v3609_v40  ;;  %v8415_v43 = vadd.f32 %v8185_v26, %v3608_v0  ;;  %v8417_v57 = vpop.f32.mrb[251].mxu0  ;;  %v8419_v27 = vpop.f32.mrb[251].mxu1  ;;  %v8421_v4 = vmax.f32 %v3773_v19, %v3775_v2  ;;  %v3738_v52 = vmax.f32 %v8395_v24, 0.0  ;;  %v6130_v19 = vld [vmem:[#allocation4 + $0x130] sm:$0xff]   ;;  %v9012_v0 = vld [vmem:[#allocation107_spill] sm:$0xff]  ;;  %v9015_v8 = vld [vmem:[#allocation36_spill] sm:$0xff] }
 0x3c5   :  { %v3741_v37 = vmax.f32 %v3685_v39, 0.0  ;;  %v3450_v3 = vadd.f32 %v8354_v58, %v9006_v5  ;;  %v3740_v7 = vmax.f32 %v8398_v21, 0.0  ;;  %5615 = vmatpush3.bf16.msra.mxu0 %v6126_v30  ;;  %v3553_v60 = vadd.f32 %v8356_v9, %v9007_v14  ;;  %v9008_v58 = vld [vmem:[#allocation121_spill] sm:$0xff]  ;;  %v6132_v9 = vld [vmem:[#allocation4 + $0x178] sm:$0xff]   ;;  %v6145_v45 = vld [vmem:[#allocation4 + $0x2c0] sm:$0xff]  }
 0x3c6   :  { %v3743_v53 = vmax.f32 %v3687_v13, 0.0  ;;  %v3770_v16 = vmax.f32 %v3726_v44, %v3728_v28  ;;  %v3742_v56 = vmax.f32 %v8415_v43, 0.0  ;;  %v8435_v38 = vadd.f32 %v8189_v49, %v3610_v12  ;;  %5616 = vmatprep.subr.bf16.mxu0 %v6128_v31  ;;  %v9011_v28 = vld [vmem:[#allocation106_spill] sm:$0xff]  ;;  %v6134_v31 = vld [vmem:[#allocation4 + $0x138] sm:$0xff]   ;;  %v9017_v5 = vld [vmem:[#allocation37_spill] sm:$0xff] }
 0x3c7   :  { %5633 = vmatpush3.bf16.msra.mxu1 %v6127_v32  ;;  %v3611_v10 = vadd.f32 %v3450_v3, %v9008_v58  ;;  %v3772_v15 = vmax.f32 %v3730_v23, %v3732_v59  ;;  %v3613_v48 = vadd.f32 %v3553_v60, %v9009_v6  ;;  %v3452_v44 = vadd.f32 %v8368_v42, %v9010_v55  ;;  %v9014_v32 = vld [vmem:[#allocation123_spill] sm:$0xff]  ;;  %v9016_v42 = vld [vmem:[#allocation21_spill] sm:$0xff]  ;;  %v6146_v21 = vld [vmem:[#allocation4 + $0x210] sm:$0xff]  }
 0x3c8   :  { %v3777_v51 = vmax.f32 %v3741_v37, %v3743_v53  ;;  %5634 = vmatprep.subr.bf16.mxu1 %v6129_v50  ;;  %v3555_v30 = vadd.f32 %v8370_v29, %v9011_v28  ;;  %v3456_v2 = vadd.f32 %v3455_v25, %v9012_v0  ;;  %v3559_v23 = vadd.f32 %v3558_v11, %v9013_v41  ;;  %v6135_v37 = vld [vmem:[#allocation4 + $0x1a8] sm:$0xff]   ;;  %v9018_v25 = vld [vmem:[#allocation124_spill] sm:$0xff] }
 0x3c9   :  { %v3689_v40 = vadd.f32 %v8177_v20, %v3611_v10  ;;  %v3792_v63 = vmax.f32 %v3770_v16, %v3772_v15  ;;  %v3691_v59 = vadd.f32 %v8181_v36, %v3613_v48  ;;  %v3612_v39 = vadd.f32 %v3452_v44, %v9014_v32  ;;  %5617 = vmatpush3.bf16.msra.mxu0 %v6130_v19  ;;  %v6137_v11 = vld [vmem:[#allocation4 + $0x240] sm:$0xff]   ;;  %v9019_v19 = vld [vmem:[#allocation38_spill] sm:$0xff]  ;;  %v9021_v6 = vld [vmem:[#allocation109_spill] sm:$0xff] }
 0x3ca   :  { %v3614_v12 = vadd.f32 %v3555_v30, %v9015_v8  ;;  %v3458_v13 = vadd.f32 %v3457_v33, %v9016_v42  ;;  %5618 = vmatprep.subr.bf16.mxu0 %v6132_v9  ;;  %v3615_v3 = vadd.f32 %v3456_v2, %v9017_v5  ;;  %v3617_v53 = vadd.f32 %v3559_v23, %v9018_v25  ;;  %v6136_v10 = vld [vmem:[#allocation4 + $0x1f0] sm:$0xff]   ;;  %v9022_v0 = vld [vmem:[#allocation125_spill] sm:$0xff] }
 0x3cb   :  { %v3745_v50 = vmax.f32 %v3689_v40, 0.0  ;;  %v3806_v29 = vpack.c.bf16 %v3792_v63, %v3792_v63  ;;  %5635 = vmatpush3.bf16.msra.mxu1 %v6131_v47  ;;  %v3747_v14 = vmax.f32 %v3691_v59, 0.0  ;;  %v3690_v60 = vadd.f32 %v8185_v26, %v3612_v39  ;;  %v9020_v47 = vld [vmem:[#allocation108_spill] sm:$0xff]  ;;  %v6141_v23 = vld [vmem:[#allocation4 + $0x248] sm:$0xff]   ;;  %v9024_v39 = vld [vmem:[#allocation23_spill] sm:$0xff] }
 0x3cc   :  { %v3692_v16 = vadd.f32 %v8189_v49, %v3614_v12  ;;  %5636 = vmatprep.subr.bf16.mxu1 %v6133_v54  ;;  %v3616_v58 = vadd.f32 %v3458_v13, %v9019_v19  ;;  %v3693_v33 = vadd.f32 %v8177_v20, %v3615_v3  ;;  %v3695_v15 = vadd.f32 %v8181_v36, %v3617_v53  ;;  %v6139_v54 = vld [vmem:[#allocation4 + $0x200] sm:$0xff]   ;;  %v6140_v12 = vld [vmem:[#allocation4 + $0x1f8] sm:$0xff]  }
 0x3cd   :  { %4868 = vmatprep.mubr.bf16.mxu1 %v3806_v29  ;;  %v3561_v9 = vadd.f32 %v8402_v61, %v9020_v47  ;;  %v3460_v48 = vadd.f32 %v8407_v46, %v9021_v6  ;;  %v3744_v55 = vmax.f32 %v8435_v38, 0.0  ;;  %v3779_v44 = vmax.f32 %v3745_v50, %v3747_v14  ;;  %5619 = vmatpush3.bf16.msra.mxu0 %v6134_v31  ;;  %v6138_v61 = vld [vmem:[#allocation4 + $0x1b0] sm:$0xff]   ;;  %v6157_v6 = vld [vmem:[#allocation4 + $0x2d8] sm:$0xff]  }
 0x3ce   :  { %v3746_v28 = vmax.f32 %v3690_v60, 0.0  ;;  %v3694_v30 = vadd.f32 %v8185_v26, %v3616_v58  ;;  %v3749_v40 = vmax.f32 %v3693_v33, 0.0  ;;  %v3751_v63 = vmax.f32 %v3695_v15, 0.0  ;;  %5648 = vmatprep.subr.bf16.mxu0 %v6137_v11  ;;  %v9023_v38 = vld [vmem:[#allocation22_spill] sm:$0xff]  ;;  %v6148_v60 = vld [vmem:[#allocation4 + $0x258] sm:$0xff]   ;;  %v6152_v33 = vld [vmem:[#allocation4 + $0x260] sm:$0xff]  }
 0x3cf   :  { %5637 = vmatpush3.bf16.msra.mxu1 %v6135_v37  ;;  %v3618_v2 = vadd.f32 %v3561_v9, %v9022_v0  ;;  %v3697_v41 = vadd.f32 %v8177_v20, %v3460_v48  ;;  %v8467_v59 = vmax.f32 %v3777_v51, %v3779_v44  ;;  %v3748_v46 = vmax.f32 %v3692_v16, 0.0  ;;  %v9025_v20 = vld [vmem:[#allocation24_spill] sm:$0xff]  ;;  %v6143_v37 = vld [vmem:[#allocation4 + $0x208] sm:$0xff]   ;;  %v6150_v58 = vld [vmem:[#allocation4 + $0x218] sm:$0xff]  }
 0x3d0   :  { %v3563_v32 = vadd.f32 %v8409_v62, %v9023_v38  ;;  %5638 = vmatprep.subr.bf16.mxu1 %v6136_v10  ;;  %v3462_v8 = vadd.f32 %v8417_v57, %v9024_v39  ;;  %v3781_v31 = vmax.f32 %v3749_v40, %v3751_v63  ;;  %v3750_v42 = vmax.f32 %v3694_v30, 0.0  ;;  %4829 = vmatmul.mubr.bf16.vlgmr.msra.gmra.mrb[0].mxu0 %v3803_v22  ;;  %v6144_v22 = vld [vmem:[#allocation4 + $0x250] sm:$0xff]   ;;  %v6149_v16 = vld [vmem:[#allocation4 + $0x2c8] sm:$0xff]   ;;  %v6164_v40 = vld [vmem:[#allocation4 + $0x278] sm:$0xff]  }
 0x3d1   :  { %v3696_v13 = vadd.f32 %v8189_v49, %v3618_v2  ;;  %v3565_v51 = vadd.f32 %v8419_v27, %v9025_v20  ;;  %v3753_v50 = vmax.f32 %v3697_v41, 0.0  ;;  %5649 = vmatpush3.bf16.msra.mxu0 %v6139_v54  ;;  %v3774_v57 = vmax.f32 %v3734_v1, %v3736_v35  ;;  %v6151_v10 = vld [vmem:[#allocation4 + $0x288] sm:$0xff]   ;;  %v6153_v15 = vld [vmem:[#allocation4 + $0x2d0] sm:$0xff]   ;;  %v6163_v54 = vld [vmem:[#allocation4 + $0x2a0] sm:$0xff]  }
 0x3d2   :  { %v3699_v29 = vadd.f32 %v8181_v36, %v3563_v32  ;;  %v3698_v62 = vadd.f32 %v8185_v26, %v3462_v8  ;;  %v3776_v18 = vmax.f32 %v3738_v52, %v3740_v7  ;;  %5650 = vmatprep.subr.bf16.mxu0 %v6141_v23  ;;  %v6142_v36 = vld [vmem:[#allocation4 + $0x1b8] sm:$0xff]   ;;  %v3778_v26 = vmax.f32 %v3742_v56, %v3744_v55  ;;  %v6147_v7 = vld [vmem:[#allocation4 + $0x280] sm:$0xff]   ;;  %v6155_v47 = vld [vmem:[#allocation4 + $0x290] sm:$0xff]  }
 0x3d3   :  { %v3752_v5 = vmax.f32 %v3696_v13, 0.0  ;;  %v3700_v3 = vadd.f32 %v8189_v49, %v3565_v51  ;;  %5639 = vmatpush3.bf16.msra.mxu1 %v6138_v61  ;;  %v3780_v1 = vmax.f32 %v3746_v28, %v3748_v46  ;;  %v3805_v43 = vpack.c.bf16 %v8358_v17, %v8358_v17  ;;  %v6154_v17 = vld [vmem:[#allocation4 + $0x220] sm:$0xff]   ;;  %v6156_v9 = vld [vmem:[#allocation4 + $0x268] sm:$0xff]   ;;  %v6159_v55 = vld [vmem:[#allocation4 + $0x298] sm:$0xff]  }
 0x3d4   :  { %v3755_v34 = vmax.f32 %v3699_v29, 0.0  ;;  %v3754_v27 = vmax.f32 %v3698_v62, 0.0  ;;  %5640 = vmatprep.subr.bf16.mxu1 %v6140_v12  ;;  %v3794_v25 = vmax.f32 %v3774_v57, %v3776_v18  ;;  %v6158_v48 = vld [vmem:[#allocation4 + $0x228] sm:$0xff]   ;;  %v6160_v44 = vld [vmem:[#allocation4 + $0x270] sm:$0xff]   ;;  %v6161_v28 = vld [vmem:[#allocation4 + $0x2e0] sm:$0xff]   ;;  %v3807_v46 = vpack.c.bf16 %v8421_v4, %v8421_v4 }
 0x3d5   :  { %v3756_v35 = vmax.f32 %v3700_v3, 0.0  ;;  %v3782_v49 = vmax.f32 %v3750_v42, %v3752_v5  ;;  %5651 = vmatpush3.bf16.msra.mxu0 %v6143_v37  ;;  %v3796_v11 = vmax.f32 %v3778_v26, %v3780_v1  ;;  %v6162_v30 = vld [vmem:[#allocation4 + $0x230] sm:$0xff]   ;;  %v6165_v63 = vld [vmem:[#allocation4 + $0x2e8] sm:$0xff]   ;;  %v6166_v0 = vld [vmem:[#allocation4 + $0x238] sm:$0xff]   ;;  %v3809_v20 = vpack.c.bf16 %v8467_v59, %v8467_v59 }
 0x3d6   :  { %v3783_v53 = vmax.f32 %v3753_v50, %v3755_v34  ;;  %v3808_v52 = vpack.c.bf16 %v3794_v25, %v3794_v25  ;;  %5652 = vmatprep.subr.bf16.mxu0 %v6144_v22  ;;  %v6167_v2 = vld [vmem:[#allocation4 + $0x2a8] sm:$0xff]   ;;  %v6169_v41 = vld [vmem:[#allocation4 + $0x340] sm:$0xff]   ;;  %v6168_v61 = vld [vmem:[#allocation4 + $0x2f0] sm:$0xff]   ;;  %v6251_v22 = vmov 0.0  }
 0x3d7   :  { %v3784_v24 = vmax.f32 %v3754_v27, %v3756_v35  ;;  %5641 = vmatpush3.bf16.msra.mxu1 %v6142_v36  ;;  %v3810_v14 = vpack.c.bf16 %v3796_v11, %v3796_v11  ;;  %v6171_v23 = vld [vmem:[#allocation4 + $0x300] sm:$0xff]   ;;  %v6170_v38 = vld [vmem:[#allocation4 + $0x2b0] sm:$0xff]   ;;  %v6173_v32 = vld [vmem:[#allocation4 + $0x348] sm:$0xff]  }
 0x3d8   :  { %v8494_v56 = vmax.f32 %v3781_v31, %v3783_v53  ;;  %5670 = vmatprep.subr.bf16.mxu1 %v6145_v45  ;;  %4908 = vmatprep.mubr.bf16.mxu0 %v3808_v52  ;;  %v6172_v8 = vld [vmem:[#allocation4 + $0x2f8] sm:$0xff]   ;;  %v6175_v12 = vld [vmem:[#allocation4 + $0x308] sm:$0xff]   ;;  %v6176_v42 = vld [vmem:[#allocation4 + $0x350] sm:$0xff]  }
 0x3d9   :  { %v3798_v19 = vmax.f32 %v3782_v49, %v3784_v24  ;;  %5653 = vmatpush3.bf16.msra.mxu0 %v6146_v21  ;;  %v6174_v31 = vld [vmem:[#allocation4 + $0x2b8] sm:$0xff]   ;;  %v6177_v13 = vld [vmem:[#allocation4 + $0x310] sm:$0xff]   ;;  %v6180_v50 = vld [vmem:[#allocation4 + $0x360] sm:$0xff]  }
 0x3da   :  { %4869 = vmatmul.mubr.bf16.vlgmr.msra.gmra.mrb[0].mxu1 %v3805_v43  ;;  %5654 = vmatprep.subr.bf16.mxu0 %v6148_v60  ;;  %v6178_v4 = vld [vmem:[#allocation4 + $0x358] sm:$0xff]   ;;  %v6181_v29 = vld [vmem:[#allocation4 + $0x320] sm:$0xff]   ;;  %v6182_v62 = vld [vmem:[#allocation4 + $0x368] sm:$0xff]   ;;  %v3811_v59 = vpack.c.bf16 %v8494_v56, %v8494_v56 }
 0x3db   :  { %5671 = vmatpush3.bf16.msra.mxu1 %v6147_v7  ;;  %4948 = vmatprep.mubr.bf16.mxu1 %v3810_v14  ;;  %v3812_v39 = vpack.c.bf16 %v3798_v19, %v3798_v19  ;;  %v6179_v51 = vld [vmem:[#allocation4 + $0x318] sm:$0xff]   ;;  %v6183_v57 = vld [vmem:[#allocation4 + $0x328] sm:$0xff]   ;;  %v6184_v37 = vld [vmem:[#allocation4 + $0x370] sm:$0xff]  }
 0x3dc   :  { %5672 = vmatprep.subr.bf16.mxu1 %v6149_v16  ;;  %v6185_v5 = vld [vmem:[#allocation4 + $0x330] sm:$0xff]   ;;  %v6186_v3 = vld [vmem:[#allocation4 + $0x378] sm:$0xff]   ;;  %v6188_v36 = vld [vmem:[%s8542_s7] sm:$0xff]  }
 0x3dd   :  { %5655 = vmatpush3.bf16.msra.mxu0 %v6150_v58  ;;  %v6187_v18 = vld [vmem:[#allocation4 + $0x338] sm:$0xff]   ;;  %v6189_v26 = vld [vmem:[%s8542_s7 + $0x8] sm:$0xff]   ;;  %v6190_v34 = vld [vmem:[%s8542_s7 + $0x10] sm:$0xff]  }
 0x3de   :  { %5656 = vmatprep.subr.bf16.mxu0 %v6152_v33  ;;  %v6191_v27 = vld [vmem:[%s8542_s7 + $0x18] sm:$0xff]   ;;  %v6192_v45 = vld [vmem:[%s8542_s7 + $0x20] sm:$0xff]   ;;  %v6193_v1 = vld [vmem:[%s8542_s7 + $0x28] sm:$0xff]  }
 0x3df   :  { %5673 = vmatpush3.bf16.msra.mxu1 %v6151_v10  ;;  %v6194_v35 = vld [vmem:[%s8542_s7 + $0x30] sm:$0xff]   ;;  %v6195_v25 = vld [vmem:[%s8542_s7 + $0x38] sm:$0xff]   ;;  %v5438_v52 = vld [vmem:[%s8541_s6] ss:$0 sm:$0xff] }
 0x3e0   :  { %5674 = vmatprep.subr.bf16.mxu1 %v6153_v15 }
 0x3e1   :  { %5657 = vmatpush3.bf16.msra.mxu0 %v6154_v17 }
 0x3e2   :  { %5658 = vmatprep.subr.bf16.mxu0 %v6156_v9 }
 0x3e3   :  { %5675 = vmatpush3.bf16.msra.mxu1 %v6155_v47 }
 0x3e4   :  { %5676 = vmatprep.subr.bf16.mxu1 %v6157_v6 }
 0x3e5   :  { %5659 = vmatpush3.bf16.msra.mxu0 %v6158_v48 }
 0x3e6   :  { %5660 = vmatprep.subr.bf16.mxu0 %v6160_v44 }
 0x3e7   :  { %5677 = vmatpush3.bf16.msra.mxu1 %v6159_v55 }
 0x3e8   :  { %5678 = vmatprep.subr.bf16.mxu1 %v6161_v28 }
 0x3e9   :  { %5661 = vmatpush3.bf16.msra.mxu0 %v6162_v30 }
 0x3ea   :  { %5662 = vmatprep.subr.bf16.mxu0 %v6164_v40 }
 0x3eb   :  { %5679 = vmatpush3.bf16.msra.mxu1 %v6163_v54 }
 0x3ec   :  { %5680 = vmatprep.subr.bf16.mxu1 %v6165_v63 }
 0x3ed   :  { %5663 = vmatpush3.bf16.msra.mxu0 %v6166_v0 }
 0x3ee   :  { %5692 = vmatprep.subr.bf16.mxu0 %v6169_v41 }
 0x3ef   :  { %5681 = vmatpush3.bf16.msra.mxu1 %v6167_v2 }
 0x3f0   :  { %5682 = vmatprep.subr.bf16.mxu1 %v6168_v61  ;;  %4909 = vmatmul.mubr.bf16.vlgmr.msra.gmra.mrb[4].mxu0 %v3807_v46 }
 0x3f1   :  { %5693 = vmatpush3.bf16.msra.mxu0 %v6171_v23  ;;  %4988 = vmatprep.mubr.bf16.mxu0 %v3812_v39 }
 0x3f2   :  { %5694 = vmatprep.subr.bf16.mxu0 %v6173_v32 }
 0x3f3   :  { %5683 = vmatpush3.bf16.msra.mxu1 %v6170_v38 }
 0x3f4   :  { %5684 = vmatprep.subr.bf16.mxu1 %v6172_v8 }
 0x3f5   :  { %5695 = vmatpush3.bf16.msra.mxu0 %v6175_v12 }
 0x3f6   :  { %5696 = vmatprep.subr.bf16.mxu0 %v6176_v42 }
 0x3f7   :  { %5685 = vmatpush3.bf16.msra.mxu1 %v6174_v31 }
 0x3f8   :  { %5723 = vmatprep.subr.bf16.mxu1 %v6251_v22 }
 0x3f9   :  { %5697 = vmatpush3.bf16.msra.mxu0 %v6177_v13 }
 0x3fa   :  { %4949 = vmatmul.mubr.bf16.vlgmr.msra.gmra.mrb[4].mxu1 %v3809_v20  ;;  %5698 = vmatprep.subr.bf16.mxu0 %v6178_v4 }
 0x3fb   :  { %5724 = vmatpush3.bf16.msra.mxu1 %v6188_v36  ;;  %5739 = vmatprep.mubr.msk.bf16.mxu1 %vm6252_vm2, %v6251_v22 }
 0x3fc   :  { %5725 = vmatprep.subr.bf16.mxu1 %v6251_v22 }
 0x3fd   :  { %5699 = vmatpush3.bf16.msra.mxu0 %v6179_v51  ;;  %v5551_v51 = vld [vmem:[%s8543_s8] ss:$0 sm:$0xff] }
 0x3fe   :  { %5700 = vmatprep.subr.bf16.mxu0 %v6180_v50 }
 0x3ff   :  { %5726 = vmatpush3.bf16.msra.mxu1 %v6189_v26 }
 0x400   :  { %5727 = vmatprep.subr.bf16.mxu1 %v6251_v22 }
 0x401   :  { %5701 = vmatpush3.bf16.msra.mxu0 %v6181_v29 }
 0x402   :  { %5702 = vmatprep.subr.bf16.mxu0 %v6182_v62 }
 0x403   :  { %5728 = vmatpush3.bf16.msra.mxu1 %v6190_v34 }
 0x404   :  { %5729 = vmatprep.subr.bf16.mxu1 %v6251_v22 }
 0x405   :  { %5703 = vmatpush3.bf16.msra.mxu0 %v6183_v57 }
 0x406   :  { %5704 = vmatprep.subr.bf16.mxu0 %v6184_v37 }
 0x407   :  { %5730 = vmatpush3.bf16.msra.mxu1 %v6191_v27 }
 0x408   :  { %5731 = vmatprep.subr.bf16.mxu1 %v6251_v22 }
 0x409   :  { %5705 = vmatpush3.bf16.msra.mxu0 %v6185_v5 }
 0x40a   :  { %5706 = vmatprep.subr.bf16.mxu0 %v6186_v3 }
 0x40b   :  { %5732 = vmatpush3.bf16.msra.mxu1 %v6192_v45 }
 0x40c   :  { %5733 = vmatprep.subr.bf16.mxu1 %v6251_v22 }
 0x40d   :  { %5707 = vmatpush3.bf16.msra.mxu0 %v6187_v18 }
 0x40f   :  { %5734 = vmatpush3.bf16.msra.mxu1 %v6193_v1 }
 0x410   :  { %4989 = vmatmul.mubr.bf16.vlgmr.msra.gmra.mrb[8].mxu0 %v3811_v59  ;;  %5735 = vmatprep.subr.bf16.mxu1 %v6251_v22 }
 0x413   :  { %5736 = vmatpush3.bf16.msra.mxu1 %v6194_v35 }
 0x414   :  { %5737 = vmatprep.subr.bf16.mxu1 %v6251_v22 }
 0x417   :  { %5738 = vmatpush3.bf16.msra.mxu1 %v6195_v25 }
 0x483   :  { %v5576_v49 = vpop.f32.mrb[252].mxu0 }
 0x484   :  { %v5577_v53 = vpop.f32.mrb[253].mxu0 }
 0x485   :  { %v5578_v21 = vadd.f32 %v5577_v53, %v5576_v49  ;;  %v5579_v11 = vpop.f32.mrb[254].mxu0 }
 0x486   :  { %v5580_v24 = vpop.f32.mrb[255].mxu0 }
 0x487   :  { %v4751_v56 = vadd.f32 %v5578_v21, %v5438_v52 }
 0x48d   :  { %v5598_v7 = vpop.f32.mrb[252].mxu1 }
 0x48e   :  { %v5599_v43 = vpop.f32.mrb[253].mxu1 }
 0x48f   :  { %v5600_v14 = vadd.f32 %v5599_v43, %v5598_v7  ;;  %v5601_v60 = vpop.f32.mrb[254].mxu1 }
 0x490   :  { %v5602_v16 = vpop.f32.mrb[255].mxu1 }
 0x491   :  { %v4791_v19 = vadd.f32 %v5600_v14, %v4751_v56 }
 0x4a3   :  { %v5620_v58 = vpop.f32.mrb[0].mxu0 }
 0x4a4   :  { %v5621_v10 = vpop.f32.mrb[1].mxu0 }
 0x4a5   :  { %v5622_v33 = vadd.f32 %v5621_v10, %v5620_v58  ;;  %v5623_v15 = vpop.f32.mrb[2].mxu0 }
 0x4a6   :  { %v5624_v17 = vpop.f32.mrb[3].mxu0 }
 0x4a7   :  { %v4831_v47 = vadd.f32 %v5622_v33, %v4791_v19 }
 0x4ad   :  { %v5642_v9 = vpop.f32.mrb[0].mxu1 }
 0x4ae   :  { %v5643_v6 = vpop.f32.mrb[1].mxu1 }
 0x4af   :  { %v5644_v48 = vadd.f32 %v5643_v6, %v5642_v9  ;;  %v5645_v55 = vpop.f32.mrb[2].mxu1 }
 0x4b0   :  { %v5646_v44 = vpop.f32.mrb[3].mxu1 }
 0x4b1   :  { %v4871_v28 = vadd.f32 %v5644_v48, %v4831_v47 }
 0x4c3   :  { %v5664_v30 = vpop.f32.mrb[4].mxu0 }
 0x4c4   :  { %v5665_v54 = vpop.f32.mrb[5].mxu0 }
 0x4c5   :  { %v5666_v40 = vadd.f32 %v5665_v54, %v5664_v30  ;;  %v5667_v63 = vpop.f32.mrb[6].mxu0 }
 0x4c6   :  { %v5668_v0 = vpop.f32.mrb[7].mxu0 }
 0x4c7   :  { %v4911_v2 = vadd.f32 %v5666_v40, %v4871_v28 }
 0x4cd   :  { %v5686_v41 = vpop.f32.mrb[4].mxu1 }
 0x4ce   :  { %v5687_v61 = vpop.f32.mrb[5].mxu1 }
 0x4cf   :  { %v5688_v23 = vadd.f32 %v5687_v61, %v5686_v41  ;;  %v5689_v46 = vpop.f32.mrb[6].mxu1 }
 0x4d0   :  { %v5690_v38 = vpop.f32.mrb[7].mxu1 }
 0x4d1   :  { %v4951_v32 = vadd.f32 %v5688_v23, %v4911_v2 }
 0x4e3   :  { %v5708_v39 = vpop.f32.mrb[8].mxu0 }
 0x4e4   :  { %v5709_v8 = vpop.f32.mrb[9].mxu0 }
 0x4e5   :  { %v5710_v12 = vadd.f32 %v5709_v8, %v5708_v39  ;;  %v5711_v31 = vpop.f32.mrb[10].mxu0 }
 0x4e6   :  { %v5712_v42 = vpop.f32.mrb[11].mxu0 }
 0x4e7   :  { %v4991_v13 = vadd.f32 %v5710_v12, %v4951_v32 }
 0x4e9   :  { %v4996_v4 = vmax.f32 %v4991_v13, 0.0 }
 0x4eb   :  { %v4997_v20 = vpack.c.bf16 %v4996_v4, %v4996_v4 }
 0x4ed   :  { %5740 = vmatmul.mubr.bf16.vlgmr.msra.gmra.mrb[8].mxu1 %v4997_v20 }
 0x5c0   :  { %v5103_v50 = vpop.f32.mrb[8].mxu1 }
 0x5c1   :  { %v5104_v29 = vadd.f32 %v5551_v51, %v5103_v50  ;;  %v5741_v62 = vpop.f32.mrb[9].mxu1 }
 0x5c2   :  { %v5106_v57 = vpop.f32.mrb[10].mxu1 }
 0x5c3   :  { %5109 = vst [vmem:[%s8544_s9] sm:$0xff] %v5104_v29  ;;  %v5742_v37 = vpop.f32.mrb[11].mxu1 }
 0x5c4   :  { %5114 = vsyncpa [#allocation3], 1 }
 0x5c5   :  { %5115 = vsyncpa [#allocation5], 1 }

</bundles_post_ra>
